<compile_context>
chip_gen: v5e
topology: v5e:2x2
jax: 0.10.0
libtpu: 0.0.40
codegen_flags: <defaults>
</compile_context>

<pallas_src>
import jax
import jax.numpy as jnp
from jax.experimental import pallas as pl
from jax.experimental.pallas import tpu as pltpu


# ---------------------------------------------------------------------------
# Fused Pallas kernel: embedding + GRU(2) + BiLSTM(2) + numeric_fc + MLP head
# ---------------------------------------------------------------------------

def _fused_kernel(hl_ref, xn_ref, emb_ref,
                  g0_wih_ref, g0_whh_ref, g0_bi_ref, g0_bhn_ref,
                  g1_wih_ref, g1_whh_ref, g1_bi_ref, g1_bhn_ref,
                  l0f_wih_ref, l0r_wih_ref, l0_whh_ref, l0f_b_ref, l0r_b_ref,
                  l1f_wih_ref, l1r_wih_ref, l1_whh_ref, l1f_b_ref, l1r_b_ref,
                  wnum_ref, bnum_ref,
                  w1_text_ref, w1_num_ref, b1_ref, w2_ref, b2_ref,
                  w3_ref, b3_ref,
                  out_ref):
    f32, bf16 = jnp.float32, jnp.bfloat16

    H = g0_whh_ref.shape[0]
    Tn = wnum_ref.shape[0] // (2 * H)
    B = xn_ref.shape[0] // Tn            # padded batch (multiple of 8)
    Tt = hl_ref.shape[0] // B
    V = emb_ref.shape[0]

    def mm(a, b):
        # bf16 operands, f32 accumulation on the MXU.
        return jnp.dot(a.astype(bf16), b, preferred_element_type=f32)

    def rows(x, t):
        # static, sublane-tile-aligned row-block slice for time step t
        return x[t * B:(t + 1) * B, :]

    # ---------------- embedding lookup as one-hot @ table (MXU) -------------
    ids = hl_ref[...]                                              # (Tt*B, 1)
    iota = jax.lax.broadcasted_iota(jnp.int32, (Tt * B, V), 1)
    onehot = jnp.where(ids == iota, jnp.float32(1.0), jnp.float32(0.0))
    Xt = jnp.dot(onehot.astype(bf16), emb_ref[...],
                 preferred_element_type=f32)                       # (Tt*B, E)

    # ---------------- text branch: 2-layer GRU (gate order r, z, n) ---------
    def gru_layer(X, wih, whh, bi, bhn, T, collect):
        gi = mm(X, wih) + bi                                       # (T*B, 3H)
        h = jnp.zeros((B, H), f32)
        outs = []
        for t in range(T):                                         # unrolled
            gi_t = rows(gi, t)
            gh = mm(h, whh)                                        # (B, 3H)
            r = jax.nn.sigmoid(gi_t[:, :H] + gh[:, :H])
            z = jax.nn.sigmoid(gi_t[:, H:2 * H] + gh[:, H:2 * H])
            n = jnp.tanh(gi_t[:, 2 * H:] + r * (gh[:, 2 * H:] + bhn))
            h = (1.0 - z) * n + z * h
            if collect:
                outs.append(h)
        return outs if collect else h

    h0 = gru_layer(Xt, g0_wih_ref[...], g0_whh_ref[...],
                   g0_bi_ref[...], g0_bhn_ref[...], Tt, True)
    X1t = jnp.concatenate(h0, axis=0)                              # (Tt*B, H)
    text_out = gru_layer(X1t, g1_wih_ref[...], g1_whh_ref[...],
                         g1_bi_ref[...], g1_bhn_ref[...], Tt, False)  # (B, H)

    # ---------------- numeric branch: 2-layer BiLSTM (gates i, f, g, o) -----
    def cell(gi_t, gh_blk, c):
        i = jax.nn.sigmoid(gi_t[:, :H] + gh_blk[:, :H])
        f = jax.nn.sigmoid(gi_t[:, H:2 * H] + gh_blk[:, H:2 * H])
        g = jnp.tanh(gi_t[:, 2 * H:3 * H] + gh_blk[:, 2 * H:3 * H])
        o = jax.nn.sigmoid(gi_t[:, 3 * H:] + gh_blk[:, 3 * H:])
        c_new = f * c + i * g
        return o * jnp.tanh(c_new), c_new

    Xn = xn_ref[...]                                               # (Tn*B, NS)
    gi0f = mm(Xn, l0f_wih_ref[...]) + l0f_b_ref[...]               # (Tn*B, 4H)
    gi0r = mm(Xn, l0r_wih_ref[...]) + l0r_b_ref[...]

    whh0 = l0_whh_ref[...]                                         # (2H, 8H)
    zz = jnp.zeros((B, H), f32)
    hfr = jnp.zeros((B, 2 * H), f32)
    cf, cr = zz, zz
    f0 = [None] * Tn
    r0 = [None] * Tn
    for s in range(Tn):                  # fwd + rev interleaved, unrolled
        tf, tr = s, Tn - 1 - s
        gh = mm(hfr, whh0)                                         # (B, 8H)
        hf, cf = cell(rows(gi0f, tf), gh[:, :4 * H], cf)
        hr, cr = cell(rows(gi0r, tr), gh[:, 4 * H:], cr)
        f0[tf] = hf
        r0[tr] = hr
        hfr = jnp.concatenate([hf, hr], axis=1)

    # layer 1: input at time t is [f0[t] | r0[t]]
    X1n = jnp.concatenate(
        [jnp.concatenate([f0[t], r0[t]], axis=1) for t in range(Tn)], axis=0)
    gi1f = mm(X1n, l1f_wih_ref[...]) + l1f_b_ref[...]              # (Tn*B, 4H)
    gi1r = mm(X1n, l1r_wih_ref[...]) + l1r_b_ref[...]

    whh1 = l1_whh_ref[...]                                         # (2H, 8H)
    wnum = wnum_ref[...]                                           # (Tn*2H, H)
    hfr = jnp.zeros((B, 2 * H), f32)
    cf, cr = zz, zz
    num_acc = jnp.zeros((B, H), f32)
    for s in range(Tn):
        tf, tr = s, Tn - 1 - s
        gh = mm(hfr, whh1)
        hf, cf = cell(rows(gi1f, tf), gh[:, :4 * H], cf)
        hr, cr = cell(rows(gi1r, tr), gh[:, 4 * H:], cr)
        hfr = jnp.concatenate([hf, hr], axis=1)
        # flatten(lstm_out) @ Wnum^T, decomposed into per-step paired slices
        num_acc = num_acc + mm(hfr, wnum[s * 2 * H:(s + 1) * 2 * H, :])
    num_out = num_acc + bnum_ref[...]                              # (B, H)

    # ---------------- MLP head (Dropout == identity at inference) -----------
    h1 = jnp.tanh(mm(text_out, w1_text_ref[...])
                  + mm(num_out, w1_num_ref[...]) + b1_ref[...])
    h2 = jnp.tanh(mm(h1, w2_ref[...]) + b2_ref[...])
    out_ref[...] = (mm(h2, w3_ref[...]) + b3_ref[...]).astype(out_ref.dtype)


# ---------------------------------------------------------------------------
# Single pallas_call wrapper: batch pad + time-major layout, then one kernel
# ---------------------------------------------------------------------------

_KERNEL_WEIGHT_NAMES = (
    "emb",
    "g0_wih", "g0_whh", "g0_bi", "g0_bhn",
    "g1_wih", "g1_whh", "g1_bi", "g1_bhn",
    "l0f_wih", "l0r_wih", "l0_whh", "l0f_b", "l0r_b",
    "l1f_wih", "l1r_wih", "l1_whh", "l1f_b", "l1r_b",
    "wnum", "bnum",
    "w1_text", "w1_num", "b1", "w2", "b2", "w3", "b3",
)

_VMEM_SPEC = pl.BlockSpec(memory_space=pltpu.MemorySpace.VMEM)


@jax.jit
def text_and_numeric_forward(kparams, headline, numeric):
    B, Tt = headline.shape
    _, Tn, NS = numeric.shape
    B_pad = -(-B // 8) * 8                        # pad batch to a sublane tile

    hl = jnp.pad(headline.astype(jnp.int32), ((0, B_pad - B), (0, 0)))
    xn = jnp.pad(numeric.astype(jnp.float32), ((0, B_pad - B), (0, 0), (0, 0)))

    # time-major (T*B_pad, F) layouts built in XLA (fuses with pad/cast)
    hl_tm = hl.T.reshape(Tt * B_pad, 1)
    xn_tm = jnp.swapaxes(xn, 0, 1).reshape(Tn * B_pad, NS).astype(jnp.bfloat16)

    weights = [kparams[n] for n in _KERNEL_WEIGHT_NAMES]
    out = pl.pallas_call(
        _fused_kernel,
        out_shape=jax.ShapeDtypeStruct((B_pad, 1), jnp.float32),
        in_specs=[_VMEM_SPEC] * (2 + len(weights)),
        out_specs=_VMEM_SPEC,
    )(hl_tm, xn_tm, *weights)
    return out[:B]


# ---------------------------------------------------------------------------
# One-time weight packing: transpose, fuse gates/directions, cast matmul
# operands to bf16 (biases stay f32).  Input: PyTorch-layout f32 params.
# ---------------------------------------------------------------------------

def prepare_params(p):
    f32, bf16 = jnp.float32, jnp.bfloat16
    H = p["gru_w_hh_l0"].shape[1]

    kp = {"emb": p["embedding"].astype(bf16)}

    # GRU layers (gate order r, z, n); fold b_hh into the bias for r/z only.
    for l in (0, 1):
        wih, whh = p[f"gru_w_ih_l{l}"], p[f"gru_w_hh_l{l}"]
        bih, bhh = p[f"gru_b_ih_l{l}"], p[f"gru_b_hh_l{l}"]
        kp[f"g{l}_wih"] = wih.T.astype(bf16)                        # (in, 3H)
        kp[f"g{l}_whh"] = whh.T.astype(bf16)                        # (H, 3H)
        bi = bih.at[:2 * H].add(bhh[:2 * H])
        kp[f"g{l}_bi"] = bi.reshape(1, 3 * H).astype(f32)
        kp[f"g{l}_bhn"] = bhh[2 * H:].reshape(1, H).astype(f32)

    # BiLSTM: fused per-gate input projections + block-diag recurrent weights.
    for l, names in ((0, ("l0", "l0r")), (1, ("l1", "l1r"))):
        whh_bd = jnp.zeros((2 * H, 8 * H), f32)
        for d, name in enumerate(names):
            wih, whh = p[f"lstm_w_ih_{name}"], p[f"lstm_w_hh_{name}"]
            b = p[f"lstm_b_ih_{name}"] + p[f"lstm_b_hh_{name}"]
            tag = f"l{l}{'f' if d == 0 else 'r'}"
            kp[f"{tag}_wih"] = wih.T.astype(bf16)                   # (in, 4H)
            kp[f"{tag}_b"] = b.reshape(1, 4 * H).astype(f32)
            whh_bd = whh_bd.at[d * H:(d + 1) * H,
                               d * 4 * H:(d + 1) * 4 * H].set(whh.T)
        kp[f"l{l}_whh"] = whh_bd.astype(bf16)                       # (2H, 8H)

    # numeric_fc: W^T (10H, H) -> per-step paired (2H, H) slices aligned with
    # the step-s state [f1[s] | r1[Tn-1-s]] of the layer-1 loop.
    W = p["num_fc_w"]                                               # (H, 10H)
    Tn = W.shape[1] // (2 * H)
    Wt = W.T.reshape(Tn, 2, H, H)                                   # [t, dir]
    wnum_pairs = jnp.concatenate(
        [jnp.concatenate([Wt[s, 0], Wt[Tn - 1 - s, 1]], axis=0)
         for s in range(Tn)], axis=0)                               # (Tn*2H, H)
    kp["wnum"] = wnum_pairs.astype(bf16)
    kp["bnum"] = p["num_fc_b"].reshape(1, H).astype(f32)

    # fully_connected head; fc1 split into text / numeric halves of the concat.
    w1t = p["fc1_w"].T                                              # (2H, 64)
    kp["w1_text"] = w1t[:H, :].astype(bf16)
    kp["w1_num"] = w1t[H:, :].astype(bf16)
    kp["b1"] = p["fc1_b"].reshape(1, -1).astype(f32)
    kp["w2"] = p["fc2_w"].T.astype(bf16)
    kp["b2"] = p["fc2_b"].reshape(1, -1).astype(f32)
    kp["w3"] = p["fc3_w"].T.astype(bf16)
    kp["b3"] = p["fc3_b"].reshape(1, -1).astype(f32)
    return kp


# ---------------------------------------------------------------------------
# Deterministic parameter initialization (PyTorch layouts; PyTorch-like init)
# ---------------------------------------------------------------------------

def init_params(key, vocab_size, E, H, NS):
    def uni(k, shape, fan):
        bound = 1.0 / jnp.sqrt(jnp.float32(fan))
        return jax.random.uniform(k, shape, jnp.float32, -bound, bound)

    keys = iter(jax.random.split(key, 64))
    p = {}
    p["embedding"] = jax.random.normal(next(keys), (vocab_size, E), jnp.float32)

    # GRU: 2 layers, gate order (r, z, n)
    for l, in_dim in ((0, E), (1, H)):
        p[f"gru_w_ih_l{l}"] = uni(next(keys), (3 * H, in_dim), H)
        p[f"gru_w_hh_l{l}"] = uni(next(keys), (3 * H, H), H)
        p[f"gru_b_ih_l{l}"] = uni(next(keys), (3 * H,), H)
        p[f"gru_b_hh_l{l}"] = uni(next(keys), (3 * H,), H)

    # Bidirectional LSTM: 2 layers x 2 directions, gate order (i, f, g, o)
    for name, in_dim in (("l0", NS), ("l0r", NS), ("l1", 2 * H), ("l1r", 2 * H)):
        p[f"lstm_w_ih_{name}"] = uni(next(keys), (4 * H, in_dim), H)
        p[f"lstm_w_hh_{name}"] = uni(next(keys), (4 * H, H), H)
        p[f"lstm_b_ih_{name}"] = uni(next(keys), (4 * H,), H)
        p[f"lstm_b_hh_{name}"] = uni(next(keys), (4 * H,), H)

    # numeric_fc: Linear(10H -> H)
    p["num_fc_w"] = uni(next(keys), (H, 10 * H), 10 * H)
    p["num_fc_b"] = uni(next(keys), (H,), 10 * H)

    # fully_connected: Linear(2H,64) Tanh Dropout Linear(64,32) Tanh Dropout Linear(32,1)
    p["fc1_w"] = uni(next(keys), (64, 2 * H), 2 * H)
    p["fc1_b"] = uni(next(keys), (64,), 2 * H)
    p["fc2_w"] = uni(next(keys), (32, 64), 64)
    p["fc2_b"] = uni(next(keys), (32,), 64)
    p["fc3_w"] = uni(next(keys), (1, 32), 32)
    p["fc3_b"] = uni(next(keys), (1,), 32)
    return p


# ---------------------------------------------------------------------------

if __name__ == "__main__":
    vocab_size, embedding_size, hidden_size, numeric_size = 50, 32, 32, 4
    B, T_TEXT = 2, 8
    T_NUM = 5  # required: flatten(lstm_out) has T_NUM * 2H = 10H features

    root = jax.random.PRNGKey(0)
    k_params, k_head, k_num = jax.random.split(root, 3)

    torch_layout_params = init_params(k_params, vocab_size, embedding_size,
                                      hidden_size, numeric_size)
    kparams = prepare_params(torch_layout_params)   # pack / fuse / cast ONCE

    headline = jax.random.randint(k_head, (B, T_TEXT), 0, vocab_size,
                                  dtype=jnp.int32)
    numeric = jax.random.normal(k_num, (B, T_NUM, numeric_size), jnp.float32)

    out = text_and_numeric_forward(kparams, headline, numeric)
    out = jax.block_until_ready(out)
    assert out.shape == (B, 1) and out.dtype == jnp.float32
    assert bool(jnp.all(jnp.isfinite(out)))
    print("KERNEL_OK")
</pallas_src>

<mosaic_0001>
module attributes {stable_mosaic.version = 11 : i64} {
  func.func @_fused_kernel(%arg0: memref<64x1xi32, #tpu.memory_space<vmem>>, %arg1: memref<40x4xbf16, #tpu.memory_space<vmem>>, %arg2: memref<50x32xbf16, #tpu.memory_space<vmem>>, %arg3: memref<32x96xbf16, #tpu.memory_space<vmem>>, %arg4: memref<32x96xbf16, #tpu.memory_space<vmem>>, %arg5: memref<1x96xf32, #tpu.memory_space<vmem>>, %arg6: memref<1x32xf32, #tpu.memory_space<vmem>>, %arg7: memref<32x96xbf16, #tpu.memory_space<vmem>>, %arg8: memref<32x96xbf16, #tpu.memory_space<vmem>>, %arg9: memref<1x96xf32, #tpu.memory_space<vmem>>, %arg10: memref<1x32xf32, #tpu.memory_space<vmem>>, %arg11: memref<4x128xbf16, #tpu.memory_space<vmem>>, %arg12: memref<4x128xbf16, #tpu.memory_space<vmem>>, %arg13: memref<64x256xbf16, #tpu.memory_space<vmem>>, %arg14: memref<1x128xf32, #tpu.memory_space<vmem>>, %arg15: memref<1x128xf32, #tpu.memory_space<vmem>>, %arg16: memref<64x128xbf16, #tpu.memory_space<vmem>>, %arg17: memref<64x128xbf16, #tpu.memory_space<vmem>>, %arg18: memref<64x256xbf16, #tpu.memory_space<vmem>>, %arg19: memref<1x128xf32, #tpu.memory_space<vmem>>, %arg20: memref<1x128xf32, #tpu.memory_space<vmem>>, %arg21: memref<320x32xbf16, #tpu.memory_space<vmem>>, %arg22: memref<1x32xf32, #tpu.memory_space<vmem>>, %arg23: memref<32x64xbf16, #tpu.memory_space<vmem>>, %arg24: memref<32x64xbf16, #tpu.memory_space<vmem>>, %arg25: memref<1x64xf32, #tpu.memory_space<vmem>>, %arg26: memref<64x32xbf16, #tpu.memory_space<vmem>>, %arg27: memref<1x32xf32, #tpu.memory_space<vmem>>, %arg28: memref<32x1xbf16, #tpu.memory_space<vmem>>, %arg29: memref<1x1xf32, #tpu.memory_space<vmem>>, %arg30: memref<8x1xf32, #tpu.memory_space<vmem>>) attributes {dimension_semantics = [], scalar_prefetch = 0 : i64, scratch_operands = 0 : i64, tpu.core_type = #tpu.core_type<tc>} {
    %c0 = arith.constant 0 : index
    %c0_0 = arith.constant 0 : index
    %0 = vector.load %arg0[%c0, %c0_0] : memref<64x1xi32, #tpu.memory_space<vmem>>, vector<64x1xi32>
    %1 = tpu.iota {dimensions = array<i32: 1>} : vector<64x50xi32>
    %2 = vector.broadcast %0 : vector<64x1xi32> to vector<64x50xi32>
    %3 = arith.cmpi eq, %2, %1 : vector<64x50xi32>
    %cst = arith.constant 1.000000e+00 : f32
    %cst_1 = arith.constant 0.000000e+00 : f32
    %4 = vector.broadcast %cst : f32 to vector<64x50xf32>
    %5 = vector.broadcast %cst_1 : f32 to vector<64x50xf32>
    %6 = arith.select %3, %4, %5 : vector<64x50xi1>, vector<64x50xf32>
    %7 = arith.truncf %6 : vector<64x50xf32> to vector<64x50xbf16>
    %c0_2 = arith.constant 0 : index
    %c0_3 = arith.constant 0 : index
    %8 = vector.load %arg2[%c0_2, %c0_3] : memref<50x32xbf16, #tpu.memory_space<vmem>>, vector<50x32xbf16>
    %cst_4 = arith.constant dense<0.000000e+00> : vector<64x32xf32>
    %9 = tpu.matmul %7, %8, %cst_4 {dimension_numbers = #tpu.dot_dimension_numbers<[1], [0], [0], [1], [0, 0, 1, 1], [], []>} : vector<64x50xbf16>, vector<50x32xbf16>, vector<64x32xf32> -> vector<64x32xf32>
    %c0_5 = arith.constant 0 : index
    %c0_6 = arith.constant 0 : index
    %10 = vector.load %arg3[%c0_5, %c0_6] : memref<32x96xbf16, #tpu.memory_space<vmem>>, vector<32x96xbf16>
    %c0_7 = arith.constant 0 : index
    %c0_8 = arith.constant 0 : index
    %11 = vector.load %arg4[%c0_7, %c0_8] : memref<32x96xbf16, #tpu.memory_space<vmem>>, vector<32x96xbf16>
    %c0_9 = arith.constant 0 : index
    %c0_10 = arith.constant 0 : index
    %12 = vector.load %arg5[%c0_9, %c0_10] : memref<1x96xf32, #tpu.memory_space<vmem>>, vector<1x96xf32>
    %c0_11 = arith.constant 0 : index
    %c0_12 = arith.constant 0 : index
    %13 = vector.load %arg6[%c0_11, %c0_12] : memref<1x32xf32, #tpu.memory_space<vmem>>, vector<1x32xf32>
    %14 = arith.truncf %9 : vector<64x32xf32> to vector<64x32xbf16>
    %cst_13 = arith.constant dense<0.000000e+00> : vector<64x96xf32>
    %15 = tpu.matmul %14, %10, %cst_13 {dimension_numbers = #tpu.dot_dimension_numbers<[1], [0], [0], [1], [0, 0, 1, 1], [], []>} : vector<64x32xbf16>, vector<32x96xbf16>, vector<64x96xf32> -> vector<64x96xf32>
    %16 = vector.broadcast %12 : vector<1x96xf32> to vector<64x96xf32>
    %17 = arith.addf %15, %16 : vector<64x96xf32>
    %cst_14 = arith.constant 0.000000e+00 : f32
    %18 = vector.broadcast %cst_14 : f32 to vector<8x32xf32>
    %19 = vector.extract_strided_slice %17 {offsets = [0, 0], sizes = [8, 96], strides = [1, 1]} : vector<64x96xf32> to vector<8x96xf32>
    %20 = arith.truncf %18 : vector<8x32xf32> to vector<8x32xbf16>
    %cst_15 = arith.constant dense<0.000000e+00> : vector<8x96xf32>
    %21 = tpu.matmul %20, %11, %cst_15 {dimension_numbers = #tpu.dot_dimension_numbers<[1], [0], [0], [1], [0, 0, 1, 1], [], []>} : vector<8x32xbf16>, vector<32x96xbf16>, vector<8x96xf32> -> vector<8x96xf32>
    %22 = vector.extract_strided_slice %19 {offsets = [0, 0], sizes = [8, 32], strides = [1, 1]} : vector<8x96xf32> to vector<8x32xf32>
    %23 = vector.extract_strided_slice %21 {offsets = [0, 0], sizes = [8, 32], strides = [1, 1]} : vector<8x96xf32> to vector<8x32xf32>
    %24 = arith.addf %22, %23 : vector<8x32xf32>
    %25 = arith.negf %24 : vector<8x32xf32>
    %26 = math.exp %25 : vector<8x32xf32>
    %cst_16 = arith.constant 1.000000e+00 : f32
    %27 = vector.broadcast %cst_16 : f32 to vector<8x32xf32>
    %28 = arith.addf %27, %26 : vector<8x32xf32>
    %29 = arith.divf %27, %28 : vector<8x32xf32>
    %30 = vector.extract_strided_slice %19 {offsets = [0, 32], sizes = [8, 32], strides = [1, 1]} : vector<8x96xf32> to vector<8x32xf32>
    %31 = vector.extract_strided_slice %21 {offsets = [0, 32], sizes = [8, 32], strides = [1, 1]} : vector<8x96xf32> to vector<8x32xf32>
    %32 = arith.addf %30, %31 : vector<8x32xf32>
    %33 = arith.negf %32 : vector<8x32xf32>
    %34 = math.exp %33 : vector<8x32xf32>
    %cst_17 = arith.constant 1.000000e+00 : f32
    %35 = vector.broadcast %cst_17 : f32 to vector<8x32xf32>
    %36 = arith.addf %35, %34 : vector<8x32xf32>
    %37 = arith.divf %35, %36 : vector<8x32xf32>
    %38 = vector.extract_strided_slice %19 {offsets = [0, 64], sizes = [8, 32], strides = [1, 1]} : vector<8x96xf32> to vector<8x32xf32>
    %39 = vector.extract_strided_slice %21 {offsets = [0, 64], sizes = [8, 32], strides = [1, 1]} : vector<8x96xf32> to vector<8x32xf32>
    %40 = vector.broadcast %13 : vector<1x32xf32> to vector<8x32xf32>
    %41 = arith.addf %39, %40 : vector<8x32xf32>
    %42 = arith.mulf %29, %41 : vector<8x32xf32>
    %43 = arith.addf %38, %42 : vector<8x32xf32>
    %44 = math.tanh %43 : vector<8x32xf32>
    %cst_18 = arith.constant 1.000000e+00 : f32
    %45 = vector.broadcast %cst_18 : f32 to vector<8x32xf32>
    %46 = arith.subf %45, %37 : vector<8x32xf32>
    %47 = arith.mulf %46, %44 : vector<8x32xf32>
    %48 = arith.mulf %37, %18 : vector<8x32xf32>
    %49 = arith.addf %47, %48 : vector<8x32xf32>
    %50 = vector.extract_strided_slice %17 {offsets = [8, 0], sizes = [8, 96], strides = [1, 1]} : vector<64x96xf32> to vector<8x96xf32>
    %51 = arith.truncf %49 : vector<8x32xf32> to vector<8x32xbf16>
    %cst_19 = arith.constant dense<0.000000e+00> : vector<8x96xf32>
    %52 = tpu.matmul %51, %11, %cst_19 {dimension_numbers = #tpu.dot_dimension_numbers<[1], [0], [0], [1], [0, 0, 1, 1], [], []>} : vector<8x32xbf16>, vector<32x96xbf16>, vector<8x96xf32> -> vector<8x96xf32>
    %53 = vector.extract_strided_slice %50 {offsets = [0, 0], sizes = [8, 32], strides = [1, 1]} : vector<8x96xf32> to vector<8x32xf32>
    %54 = vector.extract_strided_slice %52 {offsets = [0, 0], sizes = [8, 32], strides = [1, 1]} : vector<8x96xf32> to vector<8x32xf32>
    %55 = arith.addf %53, %54 : vector<8x32xf32>
    %56 = arith.negf %55 : vector<8x32xf32>
    %57 = math.exp %56 : vector<8x32xf32>
    %cst_20 = arith.constant 1.000000e+00 : f32
    %58 = vector.broadcast %cst_20 : f32 to vector<8x32xf32>
    %59 = arith.addf %58, %57 : vector<8x32xf32>
    %60 = arith.divf %58, %59 : vector<8x32xf32>
    %61 = vector.extract_strided_slice %50 {offsets = [0, 32], sizes = [8, 32], strides = [1, 1]} : vector<8x96xf32> to vector<8x32xf32>
    %62 = vector.extract_strided_slice %52 {offsets = [0, 32], sizes = [8, 32], strides = [1, 1]} : vector<8x96xf32> to vector<8x32xf32>
    %63 = arith.addf %61, %62 : vector<8x32xf32>
    %64 = arith.negf %63 : vector<8x32xf32>
    %65 = math.exp %64 : vector<8x32xf32>
    %cst_21 = arith.constant 1.000000e+00 : f32
    %66 = vector.broadcast %cst_21 : f32 to vector<8x32xf32>
    %67 = arith.addf %66, %65 : vector<8x32xf32>
    %68 = arith.divf %66, %67 : vector<8x32xf32>
    %69 = vector.extract_strided_slice %50 {offsets = [0, 64], sizes = [8, 32], strides = [1, 1]} : vector<8x96xf32> to vector<8x32xf32>
    %70 = vector.extract_strided_slice %52 {offsets = [0, 64], sizes = [8, 32], strides = [1, 1]} : vector<8x96xf32> to vector<8x32xf32>
    %71 = vector.broadcast %13 : vector<1x32xf32> to vector<8x32xf32>
    %72 = arith.addf %70, %71 : vector<8x32xf32>
    %73 = arith.mulf %60, %72 : vector<8x32xf32>
    %74 = arith.addf %69, %73 : vector<8x32xf32>
    %75 = math.tanh %74 : vector<8x32xf32>
    %cst_22 = arith.constant 1.000000e+00 : f32
    %76 = vector.broadcast %cst_22 : f32 to vector<8x32xf32>
    %77 = arith.subf %76, %68 : vector<8x32xf32>
    %78 = arith.mulf %77, %75 : vector<8x32xf32>
    %79 = arith.mulf %68, %49 : vector<8x32xf32>
    %80 = arith.addf %78, %79 : vector<8x32xf32>
    %81 = vector.extract_strided_slice %17 {offsets = [16, 0], sizes = [8, 96], strides = [1, 1]} : vector<64x96xf32> to vector<8x96xf32>
    %82 = arith.truncf %80 : vector<8x32xf32> to vector<8x32xbf16>
    %cst_23 = arith.constant dense<0.000000e+00> : vector<8x96xf32>
    %83 = tpu.matmul %82, %11, %cst_23 {dimension_numbers = #tpu.dot_dimension_numbers<[1], [0], [0], [1], [0, 0, 1, 1], [], []>} : vector<8x32xbf16>, vector<32x96xbf16>, vector<8x96xf32> -> vector<8x96xf32>
    %84 = vector.extract_strided_slice %81 {offsets = [0, 0], sizes = [8, 32], strides = [1, 1]} : vector<8x96xf32> to vector<8x32xf32>
    %85 = vector.extract_strided_slice %83 {offsets = [0, 0], sizes = [8, 32], strides = [1, 1]} : vector<8x96xf32> to vector<8x32xf32>
    %86 = arith.addf %84, %85 : vector<8x32xf32>
    %87 = arith.negf %86 : vector<8x32xf32>
    %88 = math.exp %87 : vector<8x32xf32>
    %cst_24 = arith.constant 1.000000e+00 : f32
    %89 = vector.broadcast %cst_24 : f32 to vector<8x32xf32>
    %90 = arith.addf %89, %88 : vector<8x32xf32>
    %91 = arith.divf %89, %90 : vector<8x32xf32>
    %92 = vector.extract_strided_slice %81 {offsets = [0, 32], sizes = [8, 32], strides = [1, 1]} : vector<8x96xf32> to vector<8x32xf32>
    %93 = vector.extract_strided_slice %83 {offsets = [0, 32], sizes = [8, 32], strides = [1, 1]} : vector<8x96xf32> to vector<8x32xf32>
    %94 = arith.addf %92, %93 : vector<8x32xf32>
    %95 = arith.negf %94 : vector<8x32xf32>
    %96 = math.exp %95 : vector<8x32xf32>
    %cst_25 = arith.constant 1.000000e+00 : f32
    %97 = vector.broadcast %cst_25 : f32 to vector<8x32xf32>
    %98 = arith.addf %97, %96 : vector<8x32xf32>
    %99 = arith.divf %97, %98 : vector<8x32xf32>
    %100 = vector.extract_strided_slice %81 {offsets = [0, 64], sizes = [8, 32], strides = [1, 1]} : vector<8x96xf32> to vector<8x32xf32>
    %101 = vector.extract_strided_slice %83 {offsets = [0, 64], sizes = [8, 32], strides = [1, 1]} : vector<8x96xf32> to vector<8x32xf32>
    %102 = vector.broadcast %13 : vector<1x32xf32> to vector<8x32xf32>
    %103 = arith.addf %101, %102 : vector<8x32xf32>
    %104 = arith.mulf %91, %103 : vector<8x32xf32>
    %105 = arith.addf %100, %104 : vector<8x32xf32>
    %106 = math.tanh %105 : vector<8x32xf32>
    %cst_26 = arith.constant 1.000000e+00 : f32
    %107 = vector.broadcast %cst_26 : f32 to vector<8x32xf32>
    %108 = arith.subf %107, %99 : vector<8x32xf32>
    %109 = arith.mulf %108, %106 : vector<8x32xf32>
    %110 = arith.mulf %99, %80 : vector<8x32xf32>
    %111 = arith.addf %109, %110 : vector<8x32xf32>
    %112 = vector.extract_strided_slice %17 {offsets = [24, 0], sizes = [8, 96], strides = [1, 1]} : vector<64x96xf32> to vector<8x96xf32>
    %113 = arith.truncf %111 : vector<8x32xf32> to vector<8x32xbf16>
    %cst_27 = arith.constant dense<0.000000e+00> : vector<8x96xf32>
    %114 = tpu.matmul %113, %11, %cst_27 {dimension_numbers = #tpu.dot_dimension_numbers<[1], [0], [0], [1], [0, 0, 1, 1], [], []>} : vector<8x32xbf16>, vector<32x96xbf16>, vector<8x96xf32> -> vector<8x96xf32>
    %115 = vector.extract_strided_slice %112 {offsets = [0, 0], sizes = [8, 32], strides = [1, 1]} : vector<8x96xf32> to vector<8x32xf32>
    %116 = vector.extract_strided_slice %114 {offsets = [0, 0], sizes = [8, 32], strides = [1, 1]} : vector<8x96xf32> to vector<8x32xf32>
    %117 = arith.addf %115, %116 : vector<8x32xf32>
    %118 = arith.negf %117 : vector<8x32xf32>
    %119 = math.exp %118 : vector<8x32xf32>
    %cst_28 = arith.constant 1.000000e+00 : f32
    %120 = vector.broadcast %cst_28 : f32 to vector<8x32xf32>
    %121 = arith.addf %120, %119 : vector<8x32xf32>
    %122 = arith.divf %120, %121 : vector<8x32xf32>
    %123 = vector.extract_strided_slice %112 {offsets = [0, 32], sizes = [8, 32], strides = [1, 1]} : vector<8x96xf32> to vector<8x32xf32>
    %124 = vector.extract_strided_slice %114 {offsets = [0, 32], sizes = [8, 32], strides = [1, 1]} : vector<8x96xf32> to vector<8x32xf32>
    %125 = arith.addf %123, %124 : vector<8x32xf32>
    %126 = arith.negf %125 : vector<8x32xf32>
    %127 = math.exp %126 : vector<8x32xf32>
    %cst_29 = arith.constant 1.000000e+00 : f32
    %128 = vector.broadcast %cst_29 : f32 to vector<8x32xf32>
    %129 = arith.addf %128, %127 : vector<8x32xf32>
    %130 = arith.divf %128, %129 : vector<8x32xf32>
    %131 = vector.extract_strided_slice %112 {offsets = [0, 64], sizes = [8, 32], strides = [1, 1]} : vector<8x96xf32> to vector<8x32xf32>
    %132 = vector.extract_strided_slice %114 {offsets = [0, 64], sizes = [8, 32], strides = [1, 1]} : vector<8x96xf32> to vector<8x32xf32>
    %133 = vector.broadcast %13 : vector<1x32xf32> to vector<8x32xf32>
    %134 = arith.addf %132, %133 : vector<8x32xf32>
    %135 = arith.mulf %122, %134 : vector<8x32xf32>
    %136 = arith.addf %131, %135 : vector<8x32xf32>
    %137 = math.tanh %136 : vector<8x32xf32>
    %cst_30 = arith.constant 1.000000e+00 : f32
    %138 = vector.broadcast %cst_30 : f32 to vector<8x32xf32>
    %139 = arith.subf %138, %130 : vector<8x32xf32>
    %140 = arith.mulf %139, %137 : vector<8x32xf32>
    %141 = arith.mulf %130, %111 : vector<8x32xf32>
    %142 = arith.addf %140, %141 : vector<8x32xf32>
    %143 = vector.extract_strided_slice %17 {offsets = [32, 0], sizes = [8, 96], strides = [1, 1]} : vector<64x96xf32> to vector<8x96xf32>
    %144 = arith.truncf %142 : vector<8x32xf32> to vector<8x32xbf16>
    %cst_31 = arith.constant dense<0.000000e+00> : vector<8x96xf32>
    %145 = tpu.matmul %144, %11, %cst_31 {dimension_numbers = #tpu.dot_dimension_numbers<[1], [0], [0], [1], [0, 0, 1, 1], [], []>} : vector<8x32xbf16>, vector<32x96xbf16>, vector<8x96xf32> -> vector<8x96xf32>
    %146 = vector.extract_strided_slice %143 {offsets = [0, 0], sizes = [8, 32], strides = [1, 1]} : vector<8x96xf32> to vector<8x32xf32>
    %147 = vector.extract_strided_slice %145 {offsets = [0, 0], sizes = [8, 32], strides = [1, 1]} : vector<8x96xf32> to vector<8x32xf32>
    %148 = arith.addf %146, %147 : vector<8x32xf32>
    %149 = arith.negf %148 : vector<8x32xf32>
    %150 = math.exp %149 : vector<8x32xf32>
    %cst_32 = arith.constant 1.000000e+00 : f32
    %151 = vector.broadcast %cst_32 : f32 to vector<8x32xf32>
    %152 = arith.addf %151, %150 : vector<8x32xf32>
    %153 = arith.divf %151, %152 : vector<8x32xf32>
    %154 = vector.extract_strided_slice %143 {offsets = [0, 32], sizes = [8, 32], strides = [1, 1]} : vector<8x96xf32> to vector<8x32xf32>
    %155 = vector.extract_strided_slice %145 {offsets = [0, 32], sizes = [8, 32], strides = [1, 1]} : vector<8x96xf32> to vector<8x32xf32>
    %156 = arith.addf %154, %155 : vector<8x32xf32>
    %157 = arith.negf %156 : vector<8x32xf32>
    %158 = math.exp %157 : vector<8x32xf32>
    %cst_33 = arith.constant 1.000000e+00 : f32
    %159 = vector.broadcast %cst_33 : f32 to vector<8x32xf32>
    %160 = arith.addf %159, %158 : vector<8x32xf32>
    %161 = arith.divf %159, %160 : vector<8x32xf32>
    %162 = vector.extract_strided_slice %143 {offsets = [0, 64], sizes = [8, 32], strides = [1, 1]} : vector<8x96xf32> to vector<8x32xf32>
    %163 = vector.extract_strided_slice %145 {offsets = [0, 64], sizes = [8, 32], strides = [1, 1]} : vector<8x96xf32> to vector<8x32xf32>
    %164 = vector.broadcast %13 : vector<1x32xf32> to vector<8x32xf32>
    %165 = arith.addf %163, %164 : vector<8x32xf32>
    %166 = arith.mulf %153, %165 : vector<8x32xf32>
    %167 = arith.addf %162, %166 : vector<8x32xf32>
    %168 = math.tanh %167 : vector<8x32xf32>
    %cst_34 = arith.constant 1.000000e+00 : f32
    %169 = vector.broadcast %cst_34 : f32 to vector<8x32xf32>
    %170 = arith.subf %169, %161 : vector<8x32xf32>
    %171 = arith.mulf %170, %168 : vector<8x32xf32>
    %172 = arith.mulf %161, %142 : vector<8x32xf32>
    %173 = arith.addf %171, %172 : vector<8x32xf32>
    %174 = vector.extract_strided_slice %17 {offsets = [40, 0], sizes = [8, 96], strides = [1, 1]} : vector<64x96xf32> to vector<8x96xf32>
    %175 = arith.truncf %173 : vector<8x32xf32> to vector<8x32xbf16>
    %cst_35 = arith.constant dense<0.000000e+00> : vector<8x96xf32>
    %176 = tpu.matmul %175, %11, %cst_35 {dimension_numbers = #tpu.dot_dimension_numbers<[1], [0], [0], [1], [0, 0, 1, 1], [], []>} : vector<8x32xbf16>, vector<32x96xbf16>, vector<8x96xf32> -> vector<8x96xf32>
    %177 = vector.extract_strided_slice %174 {offsets = [0, 0], sizes = [8, 32], strides = [1, 1]} : vector<8x96xf32> to vector<8x32xf32>
    %178 = vector.extract_strided_slice %176 {offsets = [0, 0], sizes = [8, 32], strides = [1, 1]} : vector<8x96xf32> to vector<8x32xf32>
    %179 = arith.addf %177, %178 : vector<8x32xf32>
    %180 = arith.negf %179 : vector<8x32xf32>
    %181 = math.exp %180 : vector<8x32xf32>
    %cst_36 = arith.constant 1.000000e+00 : f32
    %182 = vector.broadcast %cst_36 : f32 to vector<8x32xf32>
    %183 = arith.addf %182, %181 : vector<8x32xf32>
    %184 = arith.divf %182, %183 : vector<8x32xf32>
    %185 = vector.extract_strided_slice %174 {offsets = [0, 32], sizes = [8, 32], strides = [1, 1]} : vector<8x96xf32> to vector<8x32xf32>
    %186 = vector.extract_strided_slice %176 {offsets = [0, 32], sizes = [8, 32], strides = [1, 1]} : vector<8x96xf32> to vector<8x32xf32>
    %187 = arith.addf %185, %186 : vector<8x32xf32>
    %188 = arith.negf %187 : vector<8x32xf32>
    %189 = math.exp %188 : vector<8x32xf32>
    %cst_37 = arith.constant 1.000000e+00 : f32
    %190 = vector.broadcast %cst_37 : f32 to vector<8x32xf32>
    %191 = arith.addf %190, %189 : vector<8x32xf32>
    %192 = arith.divf %190, %191 : vector<8x32xf32>
    %193 = vector.extract_strided_slice %174 {offsets = [0, 64], sizes = [8, 32], strides = [1, 1]} : vector<8x96xf32> to vector<8x32xf32>
    %194 = vector.extract_strided_slice %176 {offsets = [0, 64], sizes = [8, 32], strides = [1, 1]} : vector<8x96xf32> to vector<8x32xf32>
    %195 = vector.broadcast %13 : vector<1x32xf32> to vector<8x32xf32>
    %196 = arith.addf %194, %195 : vector<8x32xf32>
    %197 = arith.mulf %184, %196 : vector<8x32xf32>
    %198 = arith.addf %193, %197 : vector<8x32xf32>
    %199 = math.tanh %198 : vector<8x32xf32>
    %cst_38 = arith.constant 1.000000e+00 : f32
    %200 = vector.broadcast %cst_38 : f32 to vector<8x32xf32>
    %201 = arith.subf %200, %192 : vector<8x32xf32>
    %202 = arith.mulf %201, %199 : vector<8x32xf32>
    %203 = arith.mulf %192, %173 : vector<8x32xf32>
    %204 = arith.addf %202, %203 : vector<8x32xf32>
    %205 = vector.extract_strided_slice %17 {offsets = [48, 0], sizes = [8, 96], strides = [1, 1]} : vector<64x96xf32> to vector<8x96xf32>
    %206 = arith.truncf %204 : vector<8x32xf32> to vector<8x32xbf16>
    %cst_39 = arith.constant dense<0.000000e+00> : vector<8x96xf32>
    %207 = tpu.matmul %206, %11, %cst_39 {dimension_numbers = #tpu.dot_dimension_numbers<[1], [0], [0], [1], [0, 0, 1, 1], [], []>} : vector<8x32xbf16>, vector<32x96xbf16>, vector<8x96xf32> -> vector<8x96xf32>
    %208 = vector.extract_strided_slice %205 {offsets = [0, 0], sizes = [8, 32], strides = [1, 1]} : vector<8x96xf32> to vector<8x32xf32>
    %209 = vector.extract_strided_slice %207 {offsets = [0, 0], sizes = [8, 32], strides = [1, 1]} : vector<8x96xf32> to vector<8x32xf32>
    %210 = arith.addf %208, %209 : vector<8x32xf32>
    %211 = arith.negf %210 : vector<8x32xf32>
    %212 = math.exp %211 : vector<8x32xf32>
    %cst_40 = arith.constant 1.000000e+00 : f32
    %213 = vector.broadcast %cst_40 : f32 to vector<8x32xf32>
    %214 = arith.addf %213, %212 : vector<8x32xf32>
    %215 = arith.divf %213, %214 : vector<8x32xf32>
    %216 = vector.extract_strided_slice %205 {offsets = [0, 32], sizes = [8, 32], strides = [1, 1]} : vector<8x96xf32> to vector<8x32xf32>
    %217 = vector.extract_strided_slice %207 {offsets = [0, 32], sizes = [8, 32], strides = [1, 1]} : vector<8x96xf32> to vector<8x32xf32>
    %218 = arith.addf %216, %217 : vector<8x32xf32>
    %219 = arith.negf %218 : vector<8x32xf32>
    %220 = math.exp %219 : vector<8x32xf32>
    %cst_41 = arith.constant 1.000000e+00 : f32
    %221 = vector.broadcast %cst_41 : f32 to vector<8x32xf32>
    %222 = arith.addf %221, %220 : vector<8x32xf32>
    %223 = arith.divf %221, %222 : vector<8x32xf32>
    %224 = vector.extract_strided_slice %205 {offsets = [0, 64], sizes = [8, 32], strides = [1, 1]} : vector<8x96xf32> to vector<8x32xf32>
    %225 = vector.extract_strided_slice %207 {offsets = [0, 64], sizes = [8, 32], strides = [1, 1]} : vector<8x96xf32> to vector<8x32xf32>
    %226 = vector.broadcast %13 : vector<1x32xf32> to vector<8x32xf32>
    %227 = arith.addf %225, %226 : vector<8x32xf32>
    %228 = arith.mulf %215, %227 : vector<8x32xf32>
    %229 = arith.addf %224, %228 : vector<8x32xf32>
    %230 = math.tanh %229 : vector<8x32xf32>
    %cst_42 = arith.constant 1.000000e+00 : f32
    %231 = vector.broadcast %cst_42 : f32 to vector<8x32xf32>
    %232 = arith.subf %231, %223 : vector<8x32xf32>
    %233 = arith.mulf %232, %230 : vector<8x32xf32>
    %234 = arith.mulf %223, %204 : vector<8x32xf32>
    %235 = arith.addf %233, %234 : vector<8x32xf32>
    %236 = vector.extract_strided_slice %17 {offsets = [56, 0], sizes = [8, 96], strides = [1, 1]} : vector<64x96xf32> to vector<8x96xf32>
    %237 = arith.truncf %235 : vector<8x32xf32> to vector<8x32xbf16>
    %cst_43 = arith.constant dense<0.000000e+00> : vector<8x96xf32>
    %238 = tpu.matmul %237, %11, %cst_43 {dimension_numbers = #tpu.dot_dimension_numbers<[1], [0], [0], [1], [0, 0, 1, 1], [], []>} : vector<8x32xbf16>, vector<32x96xbf16>, vector<8x96xf32> -> vector<8x96xf32>
    %239 = vector.extract_strided_slice %236 {offsets = [0, 0], sizes = [8, 32], strides = [1, 1]} : vector<8x96xf32> to vector<8x32xf32>
    %240 = vector.extract_strided_slice %238 {offsets = [0, 0], sizes = [8, 32], strides = [1, 1]} : vector<8x96xf32> to vector<8x32xf32>
    %241 = arith.addf %239, %240 : vector<8x32xf32>
    %242 = arith.negf %241 : vector<8x32xf32>
    %243 = math.exp %242 : vector<8x32xf32>
    %cst_44 = arith.constant 1.000000e+00 : f32
    %244 = vector.broadcast %cst_44 : f32 to vector<8x32xf32>
    %245 = arith.addf %244, %243 : vector<8x32xf32>
    %246 = arith.divf %244, %245 : vector<8x32xf32>
    %247 = vector.extract_strided_slice %236 {offsets = [0, 32], sizes = [8, 32], strides = [1, 1]} : vector<8x96xf32> to vector<8x32xf32>
    %248 = vector.extract_strided_slice %238 {offsets = [0, 32], sizes = [8, 32], strides = [1, 1]} : vector<8x96xf32> to vector<8x32xf32>
    %249 = arith.addf %247, %248 : vector<8x32xf32>
    %250 = arith.negf %249 : vector<8x32xf32>
    %251 = math.exp %250 : vector<8x32xf32>
    %cst_45 = arith.constant 1.000000e+00 : f32
    %252 = vector.broadcast %cst_45 : f32 to vector<8x32xf32>
    %253 = arith.addf %252, %251 : vector<8x32xf32>
    %254 = arith.divf %252, %253 : vector<8x32xf32>
    %255 = vector.extract_strided_slice %236 {offsets = [0, 64], sizes = [8, 32], strides = [1, 1]} : vector<8x96xf32> to vector<8x32xf32>
    %256 = vector.extract_strided_slice %238 {offsets = [0, 64], sizes = [8, 32], strides = [1, 1]} : vector<8x96xf32> to vector<8x32xf32>
    %257 = vector.broadcast %13 : vector<1x32xf32> to vector<8x32xf32>
    %258 = arith.addf %256, %257 : vector<8x32xf32>
    %259 = arith.mulf %246, %258 : vector<8x32xf32>
    %260 = arith.addf %255, %259 : vector<8x32xf32>
    %261 = math.tanh %260 : vector<8x32xf32>
    %cst_46 = arith.constant 1.000000e+00 : f32
    %262 = vector.broadcast %cst_46 : f32 to vector<8x32xf32>
    %263 = arith.subf %262, %254 : vector<8x32xf32>
    %264 = arith.mulf %263, %261 : vector<8x32xf32>
    %265 = arith.mulf %254, %235 : vector<8x32xf32>
    %266 = arith.addf %264, %265 : vector<8x32xf32>
    %267 = tpu.concatenate %49, %80, %111, %142, %173, %204, %235, %266 in 0 : vector<8x32xf32>, vector<8x32xf32>, vector<8x32xf32>, vector<8x32xf32>, vector<8x32xf32>, vector<8x32xf32>, vector<8x32xf32>, vector<8x32xf32> -> vector<64x32xf32>
    %c0_47 = arith.constant 0 : index
    %c0_48 = arith.constant 0 : index
    %268 = vector.load %arg7[%c0_47, %c0_48] : memref<32x96xbf16, #tpu.memory_space<vmem>>, vector<32x96xbf16>
    %c0_49 = arith.constant 0 : index
    %c0_50 = arith.constant 0 : index
    %269 = vector.load %arg8[%c0_49, %c0_50] : memref<32x96xbf16, #tpu.memory_space<vmem>>, vector<32x96xbf16>
    %c0_51 = arith.constant 0 : index
    %c0_52 = arith.constant 0 : index
    %270 = vector.load %arg9[%c0_51, %c0_52] : memref<1x96xf32, #tpu.memory_space<vmem>>, vector<1x96xf32>
    %c0_53 = arith.constant 0 : index
    %c0_54 = arith.constant 0 : index
    %271 = vector.load %arg10[%c0_53, %c0_54] : memref<1x32xf32, #tpu.memory_space<vmem>>, vector<1x32xf32>
    %272 = arith.truncf %267 : vector<64x32xf32> to vector<64x32xbf16>
    %cst_55 = arith.constant dense<0.000000e+00> : vector<64x96xf32>
    %273 = tpu.matmul %272, %268, %cst_55 {dimension_numbers = #tpu.dot_dimension_numbers<[1], [0], [0], [1], [0, 0, 1, 1], [], []>} : vector<64x32xbf16>, vector<32x96xbf16>, vector<64x96xf32> -> vector<64x96xf32>
    %274 = vector.broadcast %270 : vector<1x96xf32> to vector<64x96xf32>
    %275 = arith.addf %273, %274 : vector<64x96xf32>
    %cst_56 = arith.constant 0.000000e+00 : f32
    %276 = vector.broadcast %cst_56 : f32 to vector<8x32xf32>
    %277 = vector.extract_strided_slice %275 {offsets = [0, 0], sizes = [8, 96], strides = [1, 1]} : vector<64x96xf32> to vector<8x96xf32>
    %278 = arith.truncf %276 : vector<8x32xf32> to vector<8x32xbf16>
    %cst_57 = arith.constant dense<0.000000e+00> : vector<8x96xf32>
    %279 = tpu.matmul %278, %269, %cst_57 {dimension_numbers = #tpu.dot_dimension_numbers<[1], [0], [0], [1], [0, 0, 1, 1], [], []>} : vector<8x32xbf16>, vector<32x96xbf16>, vector<8x96xf32> -> vector<8x96xf32>
    %280 = vector.extract_strided_slice %277 {offsets = [0, 0], sizes = [8, 32], strides = [1, 1]} : vector<8x96xf32> to vector<8x32xf32>
    %281 = vector.extract_strided_slice %279 {offsets = [0, 0], sizes = [8, 32], strides = [1, 1]} : vector<8x96xf32> to vector<8x32xf32>
    %282 = arith.addf %280, %281 : vector<8x32xf32>
    %283 = arith.negf %282 : vector<8x32xf32>
    %284 = math.exp %283 : vector<8x32xf32>
    %cst_58 = arith.constant 1.000000e+00 : f32
    %285 = vector.broadcast %cst_58 : f32 to vector<8x32xf32>
    %286 = arith.addf %285, %284 : vector<8x32xf32>
    %287 = arith.divf %285, %286 : vector<8x32xf32>
    %288 = vector.extract_strided_slice %277 {offsets = [0, 32], sizes = [8, 32], strides = [1, 1]} : vector<8x96xf32> to vector<8x32xf32>
    %289 = vector.extract_strided_slice %279 {offsets = [0, 32], sizes = [8, 32], strides = [1, 1]} : vector<8x96xf32> to vector<8x32xf32>
    %290 = arith.addf %288, %289 : vector<8x32xf32>
    %291 = arith.negf %290 : vector<8x32xf32>
    %292 = math.exp %291 : vector<8x32xf32>
    %cst_59 = arith.constant 1.000000e+00 : f32
    %293 = vector.broadcast %cst_59 : f32 to vector<8x32xf32>
    %294 = arith.addf %293, %292 : vector<8x32xf32>
    %295 = arith.divf %293, %294 : vector<8x32xf32>
    %296 = vector.extract_strided_slice %277 {offsets = [0, 64], sizes = [8, 32], strides = [1, 1]} : vector<8x96xf32> to vector<8x32xf32>
    %297 = vector.extract_strided_slice %279 {offsets = [0, 64], sizes = [8, 32], strides = [1, 1]} : vector<8x96xf32> to vector<8x32xf32>
    %298 = vector.broadcast %271 : vector<1x32xf32> to vector<8x32xf32>
    %299 = arith.addf %297, %298 : vector<8x32xf32>
    %300 = arith.mulf %287, %299 : vector<8x32xf32>
    %301 = arith.addf %296, %300 : vector<8x32xf32>
    %302 = math.tanh %301 : vector<8x32xf32>
    %cst_60 = arith.constant 1.000000e+00 : f32
    %303 = vector.broadcast %cst_60 : f32 to vector<8x32xf32>
    %304 = arith.subf %303, %295 : vector<8x32xf32>
    %305 = arith.mulf %304, %302 : vector<8x32xf32>
    %306 = arith.mulf %295, %276 : vector<8x32xf32>
    %307 = arith.addf %305, %306 : vector<8x32xf32>
    %308 = vector.extract_strided_slice %275 {offsets = [8, 0], sizes = [8, 96], strides = [1, 1]} : vector<64x96xf32> to vector<8x96xf32>
    %309 = arith.truncf %307 : vector<8x32xf32> to vector<8x32xbf16>
    %cst_61 = arith.constant dense<0.000000e+00> : vector<8x96xf32>
    %310 = tpu.matmul %309, %269, %cst_61 {dimension_numbers = #tpu.dot_dimension_numbers<[1], [0], [0], [1], [0, 0, 1, 1], [], []>} : vector<8x32xbf16>, vector<32x96xbf16>, vector<8x96xf32> -> vector<8x96xf32>
    %311 = vector.extract_strided_slice %308 {offsets = [0, 0], sizes = [8, 32], strides = [1, 1]} : vector<8x96xf32> to vector<8x32xf32>
    %312 = vector.extract_strided_slice %310 {offsets = [0, 0], sizes = [8, 32], strides = [1, 1]} : vector<8x96xf32> to vector<8x32xf32>
    %313 = arith.addf %311, %312 : vector<8x32xf32>
    %314 = arith.negf %313 : vector<8x32xf32>
    %315 = math.exp %314 : vector<8x32xf32>
    %cst_62 = arith.constant 1.000000e+00 : f32
    %316 = vector.broadcast %cst_62 : f32 to vector<8x32xf32>
    %317 = arith.addf %316, %315 : vector<8x32xf32>
    %318 = arith.divf %316, %317 : vector<8x32xf32>
    %319 = vector.extract_strided_slice %308 {offsets = [0, 32], sizes = [8, 32], strides = [1, 1]} : vector<8x96xf32> to vector<8x32xf32>
    %320 = vector.extract_strided_slice %310 {offsets = [0, 32], sizes = [8, 32], strides = [1, 1]} : vector<8x96xf32> to vector<8x32xf32>
    %321 = arith.addf %319, %320 : vector<8x32xf32>
    %322 = arith.negf %321 : vector<8x32xf32>
    %323 = math.exp %322 : vector<8x32xf32>
    %cst_63 = arith.constant 1.000000e+00 : f32
    %324 = vector.broadcast %cst_63 : f32 to vector<8x32xf32>
    %325 = arith.addf %324, %323 : vector<8x32xf32>
    %326 = arith.divf %324, %325 : vector<8x32xf32>
    %327 = vector.extract_strided_slice %308 {offsets = [0, 64], sizes = [8, 32], strides = [1, 1]} : vector<8x96xf32> to vector<8x32xf32>
    %328 = vector.extract_strided_slice %310 {offsets = [0, 64], sizes = [8, 32], strides = [1, 1]} : vector<8x96xf32> to vector<8x32xf32>
    %329 = vector.broadcast %271 : vector<1x32xf32> to vector<8x32xf32>
    %330 = arith.addf %328, %329 : vector<8x32xf32>
    %331 = arith.mulf %318, %330 : vector<8x32xf32>
    %332 = arith.addf %327, %331 : vector<8x32xf32>
    %333 = math.tanh %332 : vector<8x32xf32>
    %cst_64 = arith.constant 1.000000e+00 : f32
    %334 = vector.broadcast %cst_64 : f32 to vector<8x32xf32>
    %335 = arith.subf %334, %326 : vector<8x32xf32>
    %336 = arith.mulf %335, %333 : vector<8x32xf32>
    %337 = arith.mulf %326, %307 : vector<8x32xf32>
    %338 = arith.addf %336, %337 : vector<8x32xf32>
    %339 = vector.extract_strided_slice %275 {offsets = [16, 0], sizes = [8, 96], strides = [1, 1]} : vector<64x96xf32> to vector<8x96xf32>
    %340 = arith.truncf %338 : vector<8x32xf32> to vector<8x32xbf16>
    %cst_65 = arith.constant dense<0.000000e+00> : vector<8x96xf32>
    %341 = tpu.matmul %340, %269, %cst_65 {dimension_numbers = #tpu.dot_dimension_numbers<[1], [0], [0], [1], [0, 0, 1, 1], [], []>} : vector<8x32xbf16>, vector<32x96xbf16>, vector<8x96xf32> -> vector<8x96xf32>
    %342 = vector.extract_strided_slice %339 {offsets = [0, 0], sizes = [8, 32], strides = [1, 1]} : vector<8x96xf32> to vector<8x32xf32>
    %343 = vector.extract_strided_slice %341 {offsets = [0, 0], sizes = [8, 32], strides = [1, 1]} : vector<8x96xf32> to vector<8x32xf32>
    %344 = arith.addf %342, %343 : vector<8x32xf32>
    %345 = arith.negf %344 : vector<8x32xf32>
    %346 = math.exp %345 : vector<8x32xf32>
    %cst_66 = arith.constant 1.000000e+00 : f32
    %347 = vector.broadcast %cst_66 : f32 to vector<8x32xf32>
    %348 = arith.addf %347, %346 : vector<8x32xf32>
    %349 = arith.divf %347, %348 : vector<8x32xf32>
    %350 = vector.extract_strided_slice %339 {offsets = [0, 32], sizes = [8, 32], strides = [1, 1]} : vector<8x96xf32> to vector<8x32xf32>
    %351 = vector.extract_strided_slice %341 {offsets = [0, 32], sizes = [8, 32], strides = [1, 1]} : vector<8x96xf32> to vector<8x32xf32>
    %352 = arith.addf %350, %351 : vector<8x32xf32>
    %353 = arith.negf %352 : vector<8x32xf32>
    %354 = math.exp %353 : vector<8x32xf32>
    %cst_67 = arith.constant 1.000000e+00 : f32
    %355 = vector.broadcast %cst_67 : f32 to vector<8x32xf32>
    %356 = arith.addf %355, %354 : vector<8x32xf32>
    %357 = arith.divf %355, %356 : vector<8x32xf32>
    %358 = vector.extract_strided_slice %339 {offsets = [0, 64], sizes = [8, 32], strides = [1, 1]} : vector<8x96xf32> to vector<8x32xf32>
    %359 = vector.extract_strided_slice %341 {offsets = [0, 64], sizes = [8, 32], strides = [1, 1]} : vector<8x96xf32> to vector<8x32xf32>
    %360 = vector.broadcast %271 : vector<1x32xf32> to vector<8x32xf32>
    %361 = arith.addf %359, %360 : vector<8x32xf32>
    %362 = arith.mulf %349, %361 : vector<8x32xf32>
    %363 = arith.addf %358, %362 : vector<8x32xf32>
    %364 = math.tanh %363 : vector<8x32xf32>
    %cst_68 = arith.constant 1.000000e+00 : f32
    %365 = vector.broadcast %cst_68 : f32 to vector<8x32xf32>
    %366 = arith.subf %365, %357 : vector<8x32xf32>
    %367 = arith.mulf %366, %364 : vector<8x32xf32>
    %368 = arith.mulf %357, %338 : vector<8x32xf32>
    %369 = arith.addf %367, %368 : vector<8x32xf32>
    %370 = vector.extract_strided_slice %275 {offsets = [24, 0], sizes = [8, 96], strides = [1, 1]} : vector<64x96xf32> to vector<8x96xf32>
    %371 = arith.truncf %369 : vector<8x32xf32> to vector<8x32xbf16>
    %cst_69 = arith.constant dense<0.000000e+00> : vector<8x96xf32>
    %372 = tpu.matmul %371, %269, %cst_69 {dimension_numbers = #tpu.dot_dimension_numbers<[1], [0], [0], [1], [0, 0, 1, 1], [], []>} : vector<8x32xbf16>, vector<32x96xbf16>, vector<8x96xf32> -> vector<8x96xf32>
    %373 = vector.extract_strided_slice %370 {offsets = [0, 0], sizes = [8, 32], strides = [1, 1]} : vector<8x96xf32> to vector<8x32xf32>
    %374 = vector.extract_strided_slice %372 {offsets = [0, 0], sizes = [8, 32], strides = [1, 1]} : vector<8x96xf32> to vector<8x32xf32>
    %375 = arith.addf %373, %374 : vector<8x32xf32>
    %376 = arith.negf %375 : vector<8x32xf32>
    %377 = math.exp %376 : vector<8x32xf32>
    %cst_70 = arith.constant 1.000000e+00 : f32
    %378 = vector.broadcast %cst_70 : f32 to vector<8x32xf32>
    %379 = arith.addf %378, %377 : vector<8x32xf32>
    %380 = arith.divf %378, %379 : vector<8x32xf32>
    %381 = vector.extract_strided_slice %370 {offsets = [0, 32], sizes = [8, 32], strides = [1, 1]} : vector<8x96xf32> to vector<8x32xf32>
    %382 = vector.extract_strided_slice %372 {offsets = [0, 32], sizes = [8, 32], strides = [1, 1]} : vector<8x96xf32> to vector<8x32xf32>
    %383 = arith.addf %381, %382 : vector<8x32xf32>
    %384 = arith.negf %383 : vector<8x32xf32>
    %385 = math.exp %384 : vector<8x32xf32>
    %cst_71 = arith.constant 1.000000e+00 : f32
    %386 = vector.broadcast %cst_71 : f32 to vector<8x32xf32>
    %387 = arith.addf %386, %385 : vector<8x32xf32>
    %388 = arith.divf %386, %387 : vector<8x32xf32>
    %389 = vector.extract_strided_slice %370 {offsets = [0, 64], sizes = [8, 32], strides = [1, 1]} : vector<8x96xf32> to vector<8x32xf32>
    %390 = vector.extract_strided_slice %372 {offsets = [0, 64], sizes = [8, 32], strides = [1, 1]} : vector<8x96xf32> to vector<8x32xf32>
    %391 = vector.broadcast %271 : vector<1x32xf32> to vector<8x32xf32>
    %392 = arith.addf %390, %391 : vector<8x32xf32>
    %393 = arith.mulf %380, %392 : vector<8x32xf32>
    %394 = arith.addf %389, %393 : vector<8x32xf32>
    %395 = math.tanh %394 : vector<8x32xf32>
    %cst_72 = arith.constant 1.000000e+00 : f32
    %396 = vector.broadcast %cst_72 : f32 to vector<8x32xf32>
    %397 = arith.subf %396, %388 : vector<8x32xf32>
    %398 = arith.mulf %397, %395 : vector<8x32xf32>
    %399 = arith.mulf %388, %369 : vector<8x32xf32>
    %400 = arith.addf %398, %399 : vector<8x32xf32>
    %401 = vector.extract_strided_slice %275 {offsets = [32, 0], sizes = [8, 96], strides = [1, 1]} : vector<64x96xf32> to vector<8x96xf32>
    %402 = arith.truncf %400 : vector<8x32xf32> to vector<8x32xbf16>
    %cst_73 = arith.constant dense<0.000000e+00> : vector<8x96xf32>
    %403 = tpu.matmul %402, %269, %cst_73 {dimension_numbers = #tpu.dot_dimension_numbers<[1], [0], [0], [1], [0, 0, 1, 1], [], []>} : vector<8x32xbf16>, vector<32x96xbf16>, vector<8x96xf32> -> vector<8x96xf32>
    %404 = vector.extract_strided_slice %401 {offsets = [0, 0], sizes = [8, 32], strides = [1, 1]} : vector<8x96xf32> to vector<8x32xf32>
    %405 = vector.extract_strided_slice %403 {offsets = [0, 0], sizes = [8, 32], strides = [1, 1]} : vector<8x96xf32> to vector<8x32xf32>
    %406 = arith.addf %404, %405 : vector<8x32xf32>
    %407 = arith.negf %406 : vector<8x32xf32>
    %408 = math.exp %407 : vector<8x32xf32>
    %cst_74 = arith.constant 1.000000e+00 : f32
    %409 = vector.broadcast %cst_74 : f32 to vector<8x32xf32>
    %410 = arith.addf %409, %408 : vector<8x32xf32>
    %411 = arith.divf %409, %410 : vector<8x32xf32>
    %412 = vector.extract_strided_slice %401 {offsets = [0, 32], sizes = [8, 32], strides = [1, 1]} : vector<8x96xf32> to vector<8x32xf32>
    %413 = vector.extract_strided_slice %403 {offsets = [0, 32], sizes = [8, 32], strides = [1, 1]} : vector<8x96xf32> to vector<8x32xf32>
    %414 = arith.addf %412, %413 : vector<8x32xf32>
    %415 = arith.negf %414 : vector<8x32xf32>
    %416 = math.exp %415 : vector<8x32xf32>
    %cst_75 = arith.constant 1.000000e+00 : f32
    %417 = vector.broadcast %cst_75 : f32 to vector<8x32xf32>
    %418 = arith.addf %417, %416 : vector<8x32xf32>
    %419 = arith.divf %417, %418 : vector<8x32xf32>
    %420 = vector.extract_strided_slice %401 {offsets = [0, 64], sizes = [8, 32], strides = [1, 1]} : vector<8x96xf32> to vector<8x32xf32>
    %421 = vector.extract_strided_slice %403 {offsets = [0, 64], sizes = [8, 32], strides = [1, 1]} : vector<8x96xf32> to vector<8x32xf32>
    %422 = vector.broadcast %271 : vector<1x32xf32> to vector<8x32xf32>
    %423 = arith.addf %421, %422 : vector<8x32xf32>
    %424 = arith.mulf %411, %423 : vector<8x32xf32>
    %425 = arith.addf %420, %424 : vector<8x32xf32>
    %426 = math.tanh %425 : vector<8x32xf32>
    %cst_76 = arith.constant 1.000000e+00 : f32
    %427 = vector.broadcast %cst_76 : f32 to vector<8x32xf32>
    %428 = arith.subf %427, %419 : vector<8x32xf32>
    %429 = arith.mulf %428, %426 : vector<8x32xf32>
    %430 = arith.mulf %419, %400 : vector<8x32xf32>
    %431 = arith.addf %429, %430 : vector<8x32xf32>
    %432 = vector.extract_strided_slice %275 {offsets = [40, 0], sizes = [8, 96], strides = [1, 1]} : vector<64x96xf32> to vector<8x96xf32>
    %433 = arith.truncf %431 : vector<8x32xf32> to vector<8x32xbf16>
    %cst_77 = arith.constant dense<0.000000e+00> : vector<8x96xf32>
    %434 = tpu.matmul %433, %269, %cst_77 {dimension_numbers = #tpu.dot_dimension_numbers<[1], [0], [0], [1], [0, 0, 1, 1], [], []>} : vector<8x32xbf16>, vector<32x96xbf16>, vector<8x96xf32> -> vector<8x96xf32>
    %435 = vector.extract_strided_slice %432 {offsets = [0, 0], sizes = [8, 32], strides = [1, 1]} : vector<8x96xf32> to vector<8x32xf32>
    %436 = vector.extract_strided_slice %434 {offsets = [0, 0], sizes = [8, 32], strides = [1, 1]} : vector<8x96xf32> to vector<8x32xf32>
    %437 = arith.addf %435, %436 : vector<8x32xf32>
    %438 = arith.negf %437 : vector<8x32xf32>
    %439 = math.exp %438 : vector<8x32xf32>
    %cst_78 = arith.constant 1.000000e+00 : f32
    %440 = vector.broadcast %cst_78 : f32 to vector<8x32xf32>
    %441 = arith.addf %440, %439 : vector<8x32xf32>
    %442 = arith.divf %440, %441 : vector<8x32xf32>
    %443 = vector.extract_strided_slice %432 {offsets = [0, 32], sizes = [8, 32], strides = [1, 1]} : vector<8x96xf32> to vector<8x32xf32>
    %444 = vector.extract_strided_slice %434 {offsets = [0, 32], sizes = [8, 32], strides = [1, 1]} : vector<8x96xf32> to vector<8x32xf32>
    %445 = arith.addf %443, %444 : vector<8x32xf32>
    %446 = arith.negf %445 : vector<8x32xf32>
    %447 = math.exp %446 : vector<8x32xf32>
    %cst_79 = arith.constant 1.000000e+00 : f32
    %448 = vector.broadcast %cst_79 : f32 to vector<8x32xf32>
    %449 = arith.addf %448, %447 : vector<8x32xf32>
    %450 = arith.divf %448, %449 : vector<8x32xf32>
    %451 = vector.extract_strided_slice %432 {offsets = [0, 64], sizes = [8, 32], strides = [1, 1]} : vector<8x96xf32> to vector<8x32xf32>
    %452 = vector.extract_strided_slice %434 {offsets = [0, 64], sizes = [8, 32], strides = [1, 1]} : vector<8x96xf32> to vector<8x32xf32>
    %453 = vector.broadcast %271 : vector<1x32xf32> to vector<8x32xf32>
    %454 = arith.addf %452, %453 : vector<8x32xf32>
    %455 = arith.mulf %442, %454 : vector<8x32xf32>
    %456 = arith.addf %451, %455 : vector<8x32xf32>
    %457 = math.tanh %456 : vector<8x32xf32>
    %cst_80 = arith.constant 1.000000e+00 : f32
    %458 = vector.broadcast %cst_80 : f32 to vector<8x32xf32>
    %459 = arith.subf %458, %450 : vector<8x32xf32>
    %460 = arith.mulf %459, %457 : vector<8x32xf32>
    %461 = arith.mulf %450, %431 : vector<8x32xf32>
    %462 = arith.addf %460, %461 : vector<8x32xf32>
    %463 = vector.extract_strided_slice %275 {offsets = [48, 0], sizes = [8, 96], strides = [1, 1]} : vector<64x96xf32> to vector<8x96xf32>
    %464 = arith.truncf %462 : vector<8x32xf32> to vector<8x32xbf16>
    %cst_81 = arith.constant dense<0.000000e+00> : vector<8x96xf32>
    %465 = tpu.matmul %464, %269, %cst_81 {dimension_numbers = #tpu.dot_dimension_numbers<[1], [0], [0], [1], [0, 0, 1, 1], [], []>} : vector<8x32xbf16>, vector<32x96xbf16>, vector<8x96xf32> -> vector<8x96xf32>
    %466 = vector.extract_strided_slice %463 {offsets = [0, 0], sizes = [8, 32], strides = [1, 1]} : vector<8x96xf32> to vector<8x32xf32>
    %467 = vector.extract_strided_slice %465 {offsets = [0, 0], sizes = [8, 32], strides = [1, 1]} : vector<8x96xf32> to vector<8x32xf32>
    %468 = arith.addf %466, %467 : vector<8x32xf32>
    %469 = arith.negf %468 : vector<8x32xf32>
    %470 = math.exp %469 : vector<8x32xf32>
    %cst_82 = arith.constant 1.000000e+00 : f32
    %471 = vector.broadcast %cst_82 : f32 to vector<8x32xf32>
    %472 = arith.addf %471, %470 : vector<8x32xf32>
    %473 = arith.divf %471, %472 : vector<8x32xf32>
    %474 = vector.extract_strided_slice %463 {offsets = [0, 32], sizes = [8, 32], strides = [1, 1]} : vector<8x96xf32> to vector<8x32xf32>
    %475 = vector.extract_strided_slice %465 {offsets = [0, 32], sizes = [8, 32], strides = [1, 1]} : vector<8x96xf32> to vector<8x32xf32>
    %476 = arith.addf %474, %475 : vector<8x32xf32>
    %477 = arith.negf %476 : vector<8x32xf32>
    %478 = math.exp %477 : vector<8x32xf32>
    %cst_83 = arith.constant 1.000000e+00 : f32
    %479 = vector.broadcast %cst_83 : f32 to vector<8x32xf32>
    %480 = arith.addf %479, %478 : vector<8x32xf32>
    %481 = arith.divf %479, %480 : vector<8x32xf32>
    %482 = vector.extract_strided_slice %463 {offsets = [0, 64], sizes = [8, 32], strides = [1, 1]} : vector<8x96xf32> to vector<8x32xf32>
    %483 = vector.extract_strided_slice %465 {offsets = [0, 64], sizes = [8, 32], strides = [1, 1]} : vector<8x96xf32> to vector<8x32xf32>
    %484 = vector.broadcast %271 : vector<1x32xf32> to vector<8x32xf32>
    %485 = arith.addf %483, %484 : vector<8x32xf32>
    %486 = arith.mulf %473, %485 : vector<8x32xf32>
    %487 = arith.addf %482, %486 : vector<8x32xf32>
    %488 = math.tanh %487 : vector<8x32xf32>
    %cst_84 = arith.constant 1.000000e+00 : f32
    %489 = vector.broadcast %cst_84 : f32 to vector<8x32xf32>
    %490 = arith.subf %489, %481 : vector<8x32xf32>
    %491 = arith.mulf %490, %488 : vector<8x32xf32>
    %492 = arith.mulf %481, %462 : vector<8x32xf32>
    %493 = arith.addf %491, %492 : vector<8x32xf32>
    %494 = vector.extract_strided_slice %275 {offsets = [56, 0], sizes = [8, 96], strides = [1, 1]} : vector<64x96xf32> to vector<8x96xf32>
    %495 = arith.truncf %493 : vector<8x32xf32> to vector<8x32xbf16>
    %cst_85 = arith.constant dense<0.000000e+00> : vector<8x96xf32>
    %496 = tpu.matmul %495, %269, %cst_85 {dimension_numbers = #tpu.dot_dimension_numbers<[1], [0], [0], [1], [0, 0, 1, 1], [], []>} : vector<8x32xbf16>, vector<32x96xbf16>, vector<8x96xf32> -> vector<8x96xf32>
    %497 = vector.extract_strided_slice %494 {offsets = [0, 0], sizes = [8, 32], strides = [1, 1]} : vector<8x96xf32> to vector<8x32xf32>
    %498 = vector.extract_strided_slice %496 {offsets = [0, 0], sizes = [8, 32], strides = [1, 1]} : vector<8x96xf32> to vector<8x32xf32>
    %499 = arith.addf %497, %498 : vector<8x32xf32>
    %500 = arith.negf %499 : vector<8x32xf32>
    %501 = math.exp %500 : vector<8x32xf32>
    %cst_86 = arith.constant 1.000000e+00 : f32
    %502 = vector.broadcast %cst_86 : f32 to vector<8x32xf32>
    %503 = arith.addf %502, %501 : vector<8x32xf32>
    %504 = arith.divf %502, %503 : vector<8x32xf32>
    %505 = vector.extract_strided_slice %494 {offsets = [0, 32], sizes = [8, 32], strides = [1, 1]} : vector<8x96xf32> to vector<8x32xf32>
    %506 = vector.extract_strided_slice %496 {offsets = [0, 32], sizes = [8, 32], strides = [1, 1]} : vector<8x96xf32> to vector<8x32xf32>
    %507 = arith.addf %505, %506 : vector<8x32xf32>
    %508 = arith.negf %507 : vector<8x32xf32>
    %509 = math.exp %508 : vector<8x32xf32>
    %cst_87 = arith.constant 1.000000e+00 : f32
    %510 = vector.broadcast %cst_87 : f32 to vector<8x32xf32>
    %511 = arith.addf %510, %509 : vector<8x32xf32>
    %512 = arith.divf %510, %511 : vector<8x32xf32>
    %513 = vector.extract_strided_slice %494 {offsets = [0, 64], sizes = [8, 32], strides = [1, 1]} : vector<8x96xf32> to vector<8x32xf32>
    %514 = vector.extract_strided_slice %496 {offsets = [0, 64], sizes = [8, 32], strides = [1, 1]} : vector<8x96xf32> to vector<8x32xf32>
    %515 = vector.broadcast %271 : vector<1x32xf32> to vector<8x32xf32>
    %516 = arith.addf %514, %515 : vector<8x32xf32>
    %517 = arith.mulf %504, %516 : vector<8x32xf32>
    %518 = arith.addf %513, %517 : vector<8x32xf32>
    %519 = math.tanh %518 : vector<8x32xf32>
    %cst_88 = arith.constant 1.000000e+00 : f32
    %520 = vector.broadcast %cst_88 : f32 to vector<8x32xf32>
    %521 = arith.subf %520, %512 : vector<8x32xf32>
    %522 = arith.mulf %521, %519 : vector<8x32xf32>
    %523 = arith.mulf %512, %493 : vector<8x32xf32>
    %524 = arith.addf %522, %523 : vector<8x32xf32>
    %c0_89 = arith.constant 0 : index
    %c0_90 = arith.constant 0 : index
    %525 = vector.load %arg1[%c0_89, %c0_90] : memref<40x4xbf16, #tpu.memory_space<vmem>>, vector<40x4xbf16>
    %c0_91 = arith.constant 0 : index
    %c0_92 = arith.constant 0 : index
    %526 = vector.load %arg11[%c0_91, %c0_92] : memref<4x128xbf16, #tpu.memory_space<vmem>>, vector<4x128xbf16>
    %cst_93 = arith.constant dense<0.000000e+00> : vector<40x128xf32>
    %527 = tpu.matmul %525, %526, %cst_93 {dimension_numbers = #tpu.dot_dimension_numbers<[1], [0], [0], [1], [0, 0, 1, 1], [], []>} : vector<40x4xbf16>, vector<4x128xbf16>, vector<40x128xf32> -> vector<40x128xf32>
    %c0_94 = arith.constant 0 : index
    %c0_95 = arith.constant 0 : index
    %528 = vector.load %arg14[%c0_94, %c0_95] : memref<1x128xf32, #tpu.memory_space<vmem>>, vector<1x128xf32>
    %529 = vector.broadcast %528 : vector<1x128xf32> to vector<40x128xf32>
    %530 = arith.addf %527, %529 : vector<40x128xf32>
    %c0_96 = arith.constant 0 : index
    %c0_97 = arith.constant 0 : index
    %531 = vector.load %arg12[%c0_96, %c0_97] : memref<4x128xbf16, #tpu.memory_space<vmem>>, vector<4x128xbf16>
    %cst_98 = arith.constant dense<0.000000e+00> : vector<40x128xf32>
    %532 = tpu.matmul %525, %531, %cst_98 {dimension_numbers = #tpu.dot_dimension_numbers<[1], [0], [0], [1], [0, 0, 1, 1], [], []>} : vector<40x4xbf16>, vector<4x128xbf16>, vector<40x128xf32> -> vector<40x128xf32>
    %c0_99 = arith.constant 0 : index
    %c0_100 = arith.constant 0 : index
    %533 = vector.load %arg15[%c0_99, %c0_100] : memref<1x128xf32, #tpu.memory_space<vmem>>, vector<1x128xf32>
    %534 = vector.broadcast %533 : vector<1x128xf32> to vector<40x128xf32>
    %535 = arith.addf %532, %534 : vector<40x128xf32>
    %c0_101 = arith.constant 0 : index
    %c0_102 = arith.constant 0 : index
    %536 = vector.load %arg13[%c0_101, %c0_102] : memref<64x256xbf16, #tpu.memory_space<vmem>>, vector<64x256xbf16>
    %cst_103 = arith.constant 0.000000e+00 : f32
    %537 = vector.broadcast %cst_103 : f32 to vector<8x32xf32>
    %cst_104 = arith.constant 0.000000e+00 : f32
    %538 = vector.broadcast %cst_104 : f32 to vector<8x64xf32>
    %539 = arith.truncf %538 : vector<8x64xf32> to vector<8x64xbf16>
    %cst_105 = arith.constant dense<0.000000e+00> : vector<8x256xf32>
    %540 = tpu.matmul %539, %536, %cst_105 {dimension_numbers = #tpu.dot_dimension_numbers<[1], [0], [0], [1], [0, 0, 1, 1], [], []>} : vector<8x64xbf16>, vector<64x256xbf16>, vector<8x256xf32> -> vector<8x256xf32>
    %541 = vector.extract_strided_slice %530 {offsets = [0, 0], sizes = [8, 128], strides = [1, 1]} : vector<40x128xf32> to vector<8x128xf32>
    %542 = vector.extract_strided_slice %540 {offsets = [0, 0], sizes = [8, 128], strides = [1, 1]} : vector<8x256xf32> to vector<8x128xf32>
    %543 = vector.extract_strided_slice %541 {offsets = [0, 0], sizes = [8, 32], strides = [1, 1]} : vector<8x128xf32> to vector<8x32xf32>
    %544 = vector.extract_strided_slice %542 {offsets = [0, 0], sizes = [8, 32], strides = [1, 1]} : vector<8x128xf32> to vector<8x32xf32>
    %545 = arith.addf %543, %544 : vector<8x32xf32>
    %546 = arith.negf %545 : vector<8x32xf32>
    %547 = math.exp %546 : vector<8x32xf32>
    %cst_106 = arith.constant 1.000000e+00 : f32
    %548 = vector.broadcast %cst_106 : f32 to vector<8x32xf32>
    %549 = arith.addf %548, %547 : vector<8x32xf32>
    %550 = arith.divf %548, %549 : vector<8x32xf32>
    %551 = vector.extract_strided_slice %541 {offsets = [0, 32], sizes = [8, 32], strides = [1, 1]} : vector<8x128xf32> to vector<8x32xf32>
    %552 = vector.extract_strided_slice %542 {offsets = [0, 32], sizes = [8, 32], strides = [1, 1]} : vector<8x128xf32> to vector<8x32xf32>
    %553 = arith.addf %551, %552 : vector<8x32xf32>
    %554 = arith.negf %553 : vector<8x32xf32>
    %555 = math.exp %554 : vector<8x32xf32>
    %cst_107 = arith.constant 1.000000e+00 : f32
    %556 = vector.broadcast %cst_107 : f32 to vector<8x32xf32>
    %557 = arith.addf %556, %555 : vector<8x32xf32>
    %558 = arith.divf %556, %557 : vector<8x32xf32>
    %559 = vector.extract_strided_slice %541 {offsets = [0, 64], sizes = [8, 32], strides = [1, 1]} : vector<8x128xf32> to vector<8x32xf32>
    %560 = vector.extract_strided_slice %542 {offsets = [0, 64], sizes = [8, 32], strides = [1, 1]} : vector<8x128xf32> to vector<8x32xf32>
    %561 = arith.addf %559, %560 : vector<8x32xf32>
    %562 = math.tanh %561 : vector<8x32xf32>
    %563 = vector.extract_strided_slice %541 {offsets = [0, 96], sizes = [8, 32], strides = [1, 1]} : vector<8x128xf32> to vector<8x32xf32>
    %564 = vector.extract_strided_slice %542 {offsets = [0, 96], sizes = [8, 32], strides = [1, 1]} : vector<8x128xf32> to vector<8x32xf32>
    %565 = arith.addf %563, %564 : vector<8x32xf32>
    %566 = arith.negf %565 : vector<8x32xf32>
    %567 = math.exp %566 : vector<8x32xf32>
    %cst_108 = arith.constant 1.000000e+00 : f32
    %568 = vector.broadcast %cst_108 : f32 to vector<8x32xf32>
    %569 = arith.addf %568, %567 : vector<8x32xf32>
    %570 = arith.divf %568, %569 : vector<8x32xf32>
    %571 = arith.mulf %558, %537 : vector<8x32xf32>
    %572 = arith.mulf %550, %562 : vector<8x32xf32>
    %573 = arith.addf %571, %572 : vector<8x32xf32>
    %574 = math.tanh %573 : vector<8x32xf32>
    %575 = arith.mulf %570, %574 : vector<8x32xf32>
    %576 = vector.extract_strided_slice %535 {offsets = [32, 0], sizes = [8, 128], strides = [1, 1]} : vector<40x128xf32> to vector<8x128xf32>
    %577 = vector.extract_strided_slice %540 {offsets = [0, 128], sizes = [8, 128], strides = [1, 1]} : vector<8x256xf32> to vector<8x128xf32>
    %578 = vector.extract_strided_slice %576 {offsets = [0, 0], sizes = [8, 32], strides = [1, 1]} : vector<8x128xf32> to vector<8x32xf32>
    %579 = vector.extract_strided_slice %577 {offsets = [0, 0], sizes = [8, 32], strides = [1, 1]} : vector<8x128xf32> to vector<8x32xf32>
    %580 = arith.addf %578, %579 : vector<8x32xf32>
    %581 = arith.negf %580 : vector<8x32xf32>
    %582 = math.exp %581 : vector<8x32xf32>
    %cst_109 = arith.constant 1.000000e+00 : f32
    %583 = vector.broadcast %cst_109 : f32 to vector<8x32xf32>
    %584 = arith.addf %583, %582 : vector<8x32xf32>
    %585 = arith.divf %583, %584 : vector<8x32xf32>
    %586 = vector.extract_strided_slice %576 {offsets = [0, 32], sizes = [8, 32], strides = [1, 1]} : vector<8x128xf32> to vector<8x32xf32>
    %587 = vector.extract_strided_slice %577 {offsets = [0, 32], sizes = [8, 32], strides = [1, 1]} : vector<8x128xf32> to vector<8x32xf32>
    %588 = arith.addf %586, %587 : vector<8x32xf32>
    %589 = arith.negf %588 : vector<8x32xf32>
    %590 = math.exp %589 : vector<8x32xf32>
    %cst_110 = arith.constant 1.000000e+00 : f32
    %591 = vector.broadcast %cst_110 : f32 to vector<8x32xf32>
    %592 = arith.addf %591, %590 : vector<8x32xf32>
    %593 = arith.divf %591, %592 : vector<8x32xf32>
    %594 = vector.extract_strided_slice %576 {offsets = [0, 64], sizes = [8, 32], strides = [1, 1]} : vector<8x128xf32> to vector<8x32xf32>
    %595 = vector.extract_strided_slice %577 {offsets = [0, 64], sizes = [8, 32], strides = [1, 1]} : vector<8x128xf32> to vector<8x32xf32>
    %596 = arith.addf %594, %595 : vector<8x32xf32>
    %597 = math.tanh %596 : vector<8x32xf32>
    %598 = vector.extract_strided_slice %576 {offsets = [0, 96], sizes = [8, 32], strides = [1, 1]} : vector<8x128xf32> to vector<8x32xf32>
    %599 = vector.extract_strided_slice %577 {offsets = [0, 96], sizes = [8, 32], strides = [1, 1]} : vector<8x128xf32> to vector<8x32xf32>
    %600 = arith.addf %598, %599 : vector<8x32xf32>
    %601 = arith.negf %600 : vector<8x32xf32>
    %602 = math.exp %601 : vector<8x32xf32>
    %cst_111 = arith.constant 1.000000e+00 : f32
    %603 = vector.broadcast %cst_111 : f32 to vector<8x32xf32>
    %604 = arith.addf %603, %602 : vector<8x32xf32>
    %605 = arith.divf %603, %604 : vector<8x32xf32>
    %606 = arith.mulf %593, %537 : vector<8x32xf32>
    %607 = arith.mulf %585, %597 : vector<8x32xf32>
    %608 = arith.addf %606, %607 : vector<8x32xf32>
    %609 = math.tanh %608 : vector<8x32xf32>
    %610 = arith.mulf %605, %609 : vector<8x32xf32>
    %611 = tpu.concatenate %575, %610 in 1 : vector<8x32xf32>, vector<8x32xf32> -> vector<8x64xf32>
    %612 = arith.truncf %611 : vector<8x64xf32> to vector<8x64xbf16>
    %cst_112 = arith.constant dense<0.000000e+00> : vector<8x256xf32>
    %613 = tpu.matmul %612, %536, %cst_112 {dimension_numbers = #tpu.dot_dimension_numbers<[1], [0], [0], [1], [0, 0, 1, 1], [], []>} : vector<8x64xbf16>, vector<64x256xbf16>, vector<8x256xf32> -> vector<8x256xf32>
    %614 = vector.extract_strided_slice %530 {offsets = [8, 0], sizes = [8, 128], strides = [1, 1]} : vector<40x128xf32> to vector<8x128xf32>
    %615 = vector.extract_strided_slice %613 {offsets = [0, 0], sizes = [8, 128], strides = [1, 1]} : vector<8x256xf32> to vector<8x128xf32>
    %616 = vector.extract_strided_slice %614 {offsets = [0, 0], sizes = [8, 32], strides = [1, 1]} : vector<8x128xf32> to vector<8x32xf32>
    %617 = vector.extract_strided_slice %615 {offsets = [0, 0], sizes = [8, 32], strides = [1, 1]} : vector<8x128xf32> to vector<8x32xf32>
    %618 = arith.addf %616, %617 : vector<8x32xf32>
    %619 = arith.negf %618 : vector<8x32xf32>
    %620 = math.exp %619 : vector<8x32xf32>
    %cst_113 = arith.constant 1.000000e+00 : f32
    %621 = vector.broadcast %cst_113 : f32 to vector<8x32xf32>
    %622 = arith.addf %621, %620 : vector<8x32xf32>
    %623 = arith.divf %621, %622 : vector<8x32xf32>
    %624 = vector.extract_strided_slice %614 {offsets = [0, 32], sizes = [8, 32], strides = [1, 1]} : vector<8x128xf32> to vector<8x32xf32>
    %625 = vector.extract_strided_slice %615 {offsets = [0, 32], sizes = [8, 32], strides = [1, 1]} : vector<8x128xf32> to vector<8x32xf32>
    %626 = arith.addf %624, %625 : vector<8x32xf32>
    %627 = arith.negf %626 : vector<8x32xf32>
    %628 = math.exp %627 : vector<8x32xf32>
    %cst_114 = arith.constant 1.000000e+00 : f32
    %629 = vector.broadcast %cst_114 : f32 to vector<8x32xf32>
    %630 = arith.addf %629, %628 : vector<8x32xf32>
    %631 = arith.divf %629, %630 : vector<8x32xf32>
    %632 = vector.extract_strided_slice %614 {offsets = [0, 64], sizes = [8, 32], strides = [1, 1]} : vector<8x128xf32> to vector<8x32xf32>
    %633 = vector.extract_strided_slice %615 {offsets = [0, 64], sizes = [8, 32], strides = [1, 1]} : vector<8x128xf32> to vector<8x32xf32>
    %634 = arith.addf %632, %633 : vector<8x32xf32>
    %635 = math.tanh %634 : vector<8x32xf32>
    %636 = vector.extract_strided_slice %614 {offsets = [0, 96], sizes = [8, 32], strides = [1, 1]} : vector<8x128xf32> to vector<8x32xf32>
    %637 = vector.extract_strided_slice %615 {offsets = [0, 96], sizes = [8, 32], strides = [1, 1]} : vector<8x128xf32> to vector<8x32xf32>
    %638 = arith.addf %636, %637 : vector<8x32xf32>
    %639 = arith.negf %638 : vector<8x32xf32>
    %640 = math.exp %639 : vector<8x32xf32>
    %cst_115 = arith.constant 1.000000e+00 : f32
    %641 = vector.broadcast %cst_115 : f32 to vector<8x32xf32>
    %642 = arith.addf %641, %640 : vector<8x32xf32>
    %643 = arith.divf %641, %642 : vector<8x32xf32>
    %644 = arith.mulf %631, %573 : vector<8x32xf32>
    %645 = arith.mulf %623, %635 : vector<8x32xf32>
    %646 = arith.addf %644, %645 : vector<8x32xf32>
    %647 = math.tanh %646 : vector<8x32xf32>
    %648 = arith.mulf %643, %647 : vector<8x32xf32>
    %649 = vector.extract_strided_slice %535 {offsets = [24, 0], sizes = [8, 128], strides = [1, 1]} : vector<40x128xf32> to vector<8x128xf32>
    %650 = vector.extract_strided_slice %613 {offsets = [0, 128], sizes = [8, 128], strides = [1, 1]} : vector<8x256xf32> to vector<8x128xf32>
    %651 = vector.extract_strided_slice %649 {offsets = [0, 0], sizes = [8, 32], strides = [1, 1]} : vector<8x128xf32> to vector<8x32xf32>
    %652 = vector.extract_strided_slice %650 {offsets = [0, 0], sizes = [8, 32], strides = [1, 1]} : vector<8x128xf32> to vector<8x32xf32>
    %653 = arith.addf %651, %652 : vector<8x32xf32>
    %654 = arith.negf %653 : vector<8x32xf32>
    %655 = math.exp %654 : vector<8x32xf32>
    %cst_116 = arith.constant 1.000000e+00 : f32
    %656 = vector.broadcast %cst_116 : f32 to vector<8x32xf32>
    %657 = arith.addf %656, %655 : vector<8x32xf32>
    %658 = arith.divf %656, %657 : vector<8x32xf32>
    %659 = vector.extract_strided_slice %649 {offsets = [0, 32], sizes = [8, 32], strides = [1, 1]} : vector<8x128xf32> to vector<8x32xf32>
    %660 = vector.extract_strided_slice %650 {offsets = [0, 32], sizes = [8, 32], strides = [1, 1]} : vector<8x128xf32> to vector<8x32xf32>
    %661 = arith.addf %659, %660 : vector<8x32xf32>
    %662 = arith.negf %661 : vector<8x32xf32>
    %663 = math.exp %662 : vector<8x32xf32>
    %cst_117 = arith.constant 1.000000e+00 : f32
    %664 = vector.broadcast %cst_117 : f32 to vector<8x32xf32>
    %665 = arith.addf %664, %663 : vector<8x32xf32>
    %666 = arith.divf %664, %665 : vector<8x32xf32>
    %667 = vector.extract_strided_slice %649 {offsets = [0, 64], sizes = [8, 32], strides = [1, 1]} : vector<8x128xf32> to vector<8x32xf32>
    %668 = vector.extract_strided_slice %650 {offsets = [0, 64], sizes = [8, 32], strides = [1, 1]} : vector<8x128xf32> to vector<8x32xf32>
    %669 = arith.addf %667, %668 : vector<8x32xf32>
    %670 = math.tanh %669 : vector<8x32xf32>
    %671 = vector.extract_strided_slice %649 {offsets = [0, 96], sizes = [8, 32], strides = [1, 1]} : vector<8x128xf32> to vector<8x32xf32>
    %672 = vector.extract_strided_slice %650 {offsets = [0, 96], sizes = [8, 32], strides = [1, 1]} : vector<8x128xf32> to vector<8x32xf32>
    %673 = arith.addf %671, %672 : vector<8x32xf32>
    %674 = arith.negf %673 : vector<8x32xf32>
    %675 = math.exp %674 : vector<8x32xf32>
    %cst_118 = arith.constant 1.000000e+00 : f32
    %676 = vector.broadcast %cst_118 : f32 to vector<8x32xf32>
    %677 = arith.addf %676, %675 : vector<8x32xf32>
    %678 = arith.divf %676, %677 : vector<8x32xf32>
    %679 = arith.mulf %666, %608 : vector<8x32xf32>
    %680 = arith.mulf %658, %670 : vector<8x32xf32>
    %681 = arith.addf %679, %680 : vector<8x32xf32>
    %682 = math.tanh %681 : vector<8x32xf32>
    %683 = arith.mulf %678, %682 : vector<8x32xf32>
    %684 = tpu.concatenate %648, %683 in 1 : vector<8x32xf32>, vector<8x32xf32> -> vector<8x64xf32>
    %685 = arith.truncf %684 : vector<8x64xf32> to vector<8x64xbf16>
    %cst_119 = arith.constant dense<0.000000e+00> : vector<8x256xf32>
    %686 = tpu.matmul %685, %536, %cst_119 {dimension_numbers = #tpu.dot_dimension_numbers<[1], [0], [0], [1], [0, 0, 1, 1], [], []>} : vector<8x64xbf16>, vector<64x256xbf16>, vector<8x256xf32> -> vector<8x256xf32>
    %687 = vector.extract_strided_slice %530 {offsets = [16, 0], sizes = [8, 128], strides = [1, 1]} : vector<40x128xf32> to vector<8x128xf32>
    %688 = vector.extract_strided_slice %686 {offsets = [0, 0], sizes = [8, 128], strides = [1, 1]} : vector<8x256xf32> to vector<8x128xf32>
    %689 = vector.extract_strided_slice %687 {offsets = [0, 0], sizes = [8, 32], strides = [1, 1]} : vector<8x128xf32> to vector<8x32xf32>
    %690 = vector.extract_strided_slice %688 {offsets = [0, 0], sizes = [8, 32], strides = [1, 1]} : vector<8x128xf32> to vector<8x32xf32>
    %691 = arith.addf %689, %690 : vector<8x32xf32>
    %692 = arith.negf %691 : vector<8x32xf32>
    %693 = math.exp %692 : vector<8x32xf32>
    %cst_120 = arith.constant 1.000000e+00 : f32
    %694 = vector.broadcast %cst_120 : f32 to vector<8x32xf32>
    %695 = arith.addf %694, %693 : vector<8x32xf32>
    %696 = arith.divf %694, %695 : vector<8x32xf32>
    %697 = vector.extract_strided_slice %687 {offsets = [0, 32], sizes = [8, 32], strides = [1, 1]} : vector<8x128xf32> to vector<8x32xf32>
    %698 = vector.extract_strided_slice %688 {offsets = [0, 32], sizes = [8, 32], strides = [1, 1]} : vector<8x128xf32> to vector<8x32xf32>
    %699 = arith.addf %697, %698 : vector<8x32xf32>
    %700 = arith.negf %699 : vector<8x32xf32>
    %701 = math.exp %700 : vector<8x32xf32>
    %cst_121 = arith.constant 1.000000e+00 : f32
    %702 = vector.broadcast %cst_121 : f32 to vector<8x32xf32>
    %703 = arith.addf %702, %701 : vector<8x32xf32>
    %704 = arith.divf %702, %703 : vector<8x32xf32>
    %705 = vector.extract_strided_slice %687 {offsets = [0, 64], sizes = [8, 32], strides = [1, 1]} : vector<8x128xf32> to vector<8x32xf32>
    %706 = vector.extract_strided_slice %688 {offsets = [0, 64], sizes = [8, 32], strides = [1, 1]} : vector<8x128xf32> to vector<8x32xf32>
    %707 = arith.addf %705, %706 : vector<8x32xf32>
    %708 = math.tanh %707 : vector<8x32xf32>
    %709 = vector.extract_strided_slice %687 {offsets = [0, 96], sizes = [8, 32], strides = [1, 1]} : vector<8x128xf32> to vector<8x32xf32>
    %710 = vector.extract_strided_slice %688 {offsets = [0, 96], sizes = [8, 32], strides = [1, 1]} : vector<8x128xf32> to vector<8x32xf32>
    %711 = arith.addf %709, %710 : vector<8x32xf32>
    %712 = arith.negf %711 : vector<8x32xf32>
    %713 = math.exp %712 : vector<8x32xf32>
    %cst_122 = arith.constant 1.000000e+00 : f32
    %714 = vector.broadcast %cst_122 : f32 to vector<8x32xf32>
    %715 = arith.addf %714, %713 : vector<8x32xf32>
    %716 = arith.divf %714, %715 : vector<8x32xf32>
    %717 = arith.mulf %704, %646 : vector<8x32xf32>
    %718 = arith.mulf %696, %708 : vector<8x32xf32>
    %719 = arith.addf %717, %718 : vector<8x32xf32>
    %720 = math.tanh %719 : vector<8x32xf32>
    %721 = arith.mulf %716, %720 : vector<8x32xf32>
    %722 = vector.extract_strided_slice %535 {offsets = [16, 0], sizes = [8, 128], strides = [1, 1]} : vector<40x128xf32> to vector<8x128xf32>
    %723 = vector.extract_strided_slice %686 {offsets = [0, 128], sizes = [8, 128], strides = [1, 1]} : vector<8x256xf32> to vector<8x128xf32>
    %724 = vector.extract_strided_slice %722 {offsets = [0, 0], sizes = [8, 32], strides = [1, 1]} : vector<8x128xf32> to vector<8x32xf32>
    %725 = vector.extract_strided_slice %723 {offsets = [0, 0], sizes = [8, 32], strides = [1, 1]} : vector<8x128xf32> to vector<8x32xf32>
    %726 = arith.addf %724, %725 : vector<8x32xf32>
    %727 = arith.negf %726 : vector<8x32xf32>
    %728 = math.exp %727 : vector<8x32xf32>
    %cst_123 = arith.constant 1.000000e+00 : f32
    %729 = vector.broadcast %cst_123 : f32 to vector<8x32xf32>
    %730 = arith.addf %729, %728 : vector<8x32xf32>
    %731 = arith.divf %729, %730 : vector<8x32xf32>
    %732 = vector.extract_strided_slice %722 {offsets = [0, 32], sizes = [8, 32], strides = [1, 1]} : vector<8x128xf32> to vector<8x32xf32>
    %733 = vector.extract_strided_slice %723 {offsets = [0, 32], sizes = [8, 32], strides = [1, 1]} : vector<8x128xf32> to vector<8x32xf32>
    %734 = arith.addf %732, %733 : vector<8x32xf32>
    %735 = arith.negf %734 : vector<8x32xf32>
    %736 = math.exp %735 : vector<8x32xf32>
    %cst_124 = arith.constant 1.000000e+00 : f32
    %737 = vector.broadcast %cst_124 : f32 to vector<8x32xf32>
    %738 = arith.addf %737, %736 : vector<8x32xf32>
    %739 = arith.divf %737, %738 : vector<8x32xf32>
    %740 = vector.extract_strided_slice %722 {offsets = [0, 64], sizes = [8, 32], strides = [1, 1]} : vector<8x128xf32> to vector<8x32xf32>
    %741 = vector.extract_strided_slice %723 {offsets = [0, 64], sizes = [8, 32], strides = [1, 1]} : vector<8x128xf32> to vector<8x32xf32>
    %742 = arith.addf %740, %741 : vector<8x32xf32>
    %743 = math.tanh %742 : vector<8x32xf32>
    %744 = vector.extract_strided_slice %722 {offsets = [0, 96], sizes = [8, 32], strides = [1, 1]} : vector<8x128xf32> to vector<8x32xf32>
    %745 = vector.extract_strided_slice %723 {offsets = [0, 96], sizes = [8, 32], strides = [1, 1]} : vector<8x128xf32> to vector<8x32xf32>
    %746 = arith.addf %744, %745 : vector<8x32xf32>
    %747 = arith.negf %746 : vector<8x32xf32>
    %748 = math.exp %747 : vector<8x32xf32>
    %cst_125 = arith.constant 1.000000e+00 : f32
    %749 = vector.broadcast %cst_125 : f32 to vector<8x32xf32>
    %750 = arith.addf %749, %748 : vector<8x32xf32>
    %751 = arith.divf %749, %750 : vector<8x32xf32>
    %752 = arith.mulf %739, %681 : vector<8x32xf32>
    %753 = arith.mulf %731, %743 : vector<8x32xf32>
    %754 = arith.addf %752, %753 : vector<8x32xf32>
    %755 = math.tanh %754 : vector<8x32xf32>
    %756 = arith.mulf %751, %755 : vector<8x32xf32>
    %757 = tpu.concatenate %721, %756 in 1 : vector<8x32xf32>, vector<8x32xf32> -> vector<8x64xf32>
    %758 = arith.truncf %757 : vector<8x64xf32> to vector<8x64xbf16>
    %cst_126 = arith.constant dense<0.000000e+00> : vector<8x256xf32>
    %759 = tpu.matmul %758, %536, %cst_126 {dimension_numbers = #tpu.dot_dimension_numbers<[1], [0], [0], [1], [0, 0, 1, 1], [], []>} : vector<8x64xbf16>, vector<64x256xbf16>, vector<8x256xf32> -> vector<8x256xf32>
    %760 = vector.extract_strided_slice %530 {offsets = [24, 0], sizes = [8, 128], strides = [1, 1]} : vector<40x128xf32> to vector<8x128xf32>
    %761 = vector.extract_strided_slice %759 {offsets = [0, 0], sizes = [8, 128], strides = [1, 1]} : vector<8x256xf32> to vector<8x128xf32>
    %762 = vector.extract_strided_slice %760 {offsets = [0, 0], sizes = [8, 32], strides = [1, 1]} : vector<8x128xf32> to vector<8x32xf32>
    %763 = vector.extract_strided_slice %761 {offsets = [0, 0], sizes = [8, 32], strides = [1, 1]} : vector<8x128xf32> to vector<8x32xf32>
    %764 = arith.addf %762, %763 : vector<8x32xf32>
    %765 = arith.negf %764 : vector<8x32xf32>
    %766 = math.exp %765 : vector<8x32xf32>
    %cst_127 = arith.constant 1.000000e+00 : f32
    %767 = vector.broadcast %cst_127 : f32 to vector<8x32xf32>
    %768 = arith.addf %767, %766 : vector<8x32xf32>
    %769 = arith.divf %767, %768 : vector<8x32xf32>
    %770 = vector.extract_strided_slice %760 {offsets = [0, 32], sizes = [8, 32], strides = [1, 1]} : vector<8x128xf32> to vector<8x32xf32>
    %771 = vector.extract_strided_slice %761 {offsets = [0, 32], sizes = [8, 32], strides = [1, 1]} : vector<8x128xf32> to vector<8x32xf32>
    %772 = arith.addf %770, %771 : vector<8x32xf32>
    %773 = arith.negf %772 : vector<8x32xf32>
    %774 = math.exp %773 : vector<8x32xf32>
    %cst_128 = arith.constant 1.000000e+00 : f32
    %775 = vector.broadcast %cst_128 : f32 to vector<8x32xf32>
    %776 = arith.addf %775, %774 : vector<8x32xf32>
    %777 = arith.divf %775, %776 : vector<8x32xf32>
    %778 = vector.extract_strided_slice %760 {offsets = [0, 64], sizes = [8, 32], strides = [1, 1]} : vector<8x128xf32> to vector<8x32xf32>
    %779 = vector.extract_strided_slice %761 {offsets = [0, 64], sizes = [8, 32], strides = [1, 1]} : vector<8x128xf32> to vector<8x32xf32>
    %780 = arith.addf %778, %779 : vector<8x32xf32>
    %781 = math.tanh %780 : vector<8x32xf32>
    %782 = vector.extract_strided_slice %760 {offsets = [0, 96], sizes = [8, 32], strides = [1, 1]} : vector<8x128xf32> to vector<8x32xf32>
    %783 = vector.extract_strided_slice %761 {offsets = [0, 96], sizes = [8, 32], strides = [1, 1]} : vector<8x128xf32> to vector<8x32xf32>
    %784 = arith.addf %782, %783 : vector<8x32xf32>
    %785 = arith.negf %784 : vector<8x32xf32>
    %786 = math.exp %785 : vector<8x32xf32>
    %cst_129 = arith.constant 1.000000e+00 : f32
    %787 = vector.broadcast %cst_129 : f32 to vector<8x32xf32>
    %788 = arith.addf %787, %786 : vector<8x32xf32>
    %789 = arith.divf %787, %788 : vector<8x32xf32>
    %790 = arith.mulf %777, %719 : vector<8x32xf32>
    %791 = arith.mulf %769, %781 : vector<8x32xf32>
    %792 = arith.addf %790, %791 : vector<8x32xf32>
    %793 = math.tanh %792 : vector<8x32xf32>
    %794 = arith.mulf %789, %793 : vector<8x32xf32>
    %795 = vector.extract_strided_slice %535 {offsets = [8, 0], sizes = [8, 128], strides = [1, 1]} : vector<40x128xf32> to vector<8x128xf32>
    %796 = vector.extract_strided_slice %759 {offsets = [0, 128], sizes = [8, 128], strides = [1, 1]} : vector<8x256xf32> to vector<8x128xf32>
    %797 = vector.extract_strided_slice %795 {offsets = [0, 0], sizes = [8, 32], strides = [1, 1]} : vector<8x128xf32> to vector<8x32xf32>
    %798 = vector.extract_strided_slice %796 {offsets = [0, 0], sizes = [8, 32], strides = [1, 1]} : vector<8x128xf32> to vector<8x32xf32>
    %799 = arith.addf %797, %798 : vector<8x32xf32>
    %800 = arith.negf %799 : vector<8x32xf32>
    %801 = math.exp %800 : vector<8x32xf32>
    %cst_130 = arith.constant 1.000000e+00 : f32
    %802 = vector.broadcast %cst_130 : f32 to vector<8x32xf32>
    %803 = arith.addf %802, %801 : vector<8x32xf32>
    %804 = arith.divf %802, %803 : vector<8x32xf32>
    %805 = vector.extract_strided_slice %795 {offsets = [0, 32], sizes = [8, 32], strides = [1, 1]} : vector<8x128xf32> to vector<8x32xf32>
    %806 = vector.extract_strided_slice %796 {offsets = [0, 32], sizes = [8, 32], strides = [1, 1]} : vector<8x128xf32> to vector<8x32xf32>
    %807 = arith.addf %805, %806 : vector<8x32xf32>
    %808 = arith.negf %807 : vector<8x32xf32>
    %809 = math.exp %808 : vector<8x32xf32>
    %cst_131 = arith.constant 1.000000e+00 : f32
    %810 = vector.broadcast %cst_131 : f32 to vector<8x32xf32>
    %811 = arith.addf %810, %809 : vector<8x32xf32>
    %812 = arith.divf %810, %811 : vector<8x32xf32>
    %813 = vector.extract_strided_slice %795 {offsets = [0, 64], sizes = [8, 32], strides = [1, 1]} : vector<8x128xf32> to vector<8x32xf32>
    %814 = vector.extract_strided_slice %796 {offsets = [0, 64], sizes = [8, 32], strides = [1, 1]} : vector<8x128xf32> to vector<8x32xf32>
    %815 = arith.addf %813, %814 : vector<8x32xf32>
    %816 = math.tanh %815 : vector<8x32xf32>
    %817 = vector.extract_strided_slice %795 {offsets = [0, 96], sizes = [8, 32], strides = [1, 1]} : vector<8x128xf32> to vector<8x32xf32>
    %818 = vector.extract_strided_slice %796 {offsets = [0, 96], sizes = [8, 32], strides = [1, 1]} : vector<8x128xf32> to vector<8x32xf32>
    %819 = arith.addf %817, %818 : vector<8x32xf32>
    %820 = arith.negf %819 : vector<8x32xf32>
    %821 = math.exp %820 : vector<8x32xf32>
    %cst_132 = arith.constant 1.000000e+00 : f32
    %822 = vector.broadcast %cst_132 : f32 to vector<8x32xf32>
    %823 = arith.addf %822, %821 : vector<8x32xf32>
    %824 = arith.divf %822, %823 : vector<8x32xf32>
    %825 = arith.mulf %812, %754 : vector<8x32xf32>
    %826 = arith.mulf %804, %816 : vector<8x32xf32>
    %827 = arith.addf %825, %826 : vector<8x32xf32>
    %828 = math.tanh %827 : vector<8x32xf32>
    %829 = arith.mulf %824, %828 : vector<8x32xf32>
    %830 = tpu.concatenate %794, %829 in 1 : vector<8x32xf32>, vector<8x32xf32> -> vector<8x64xf32>
    %831 = arith.truncf %830 : vector<8x64xf32> to vector<8x64xbf16>
    %cst_133 = arith.constant dense<0.000000e+00> : vector<8x256xf32>
    %832 = tpu.matmul %831, %536, %cst_133 {dimension_numbers = #tpu.dot_dimension_numbers<[1], [0], [0], [1], [0, 0, 1, 1], [], []>} : vector<8x64xbf16>, vector<64x256xbf16>, vector<8x256xf32> -> vector<8x256xf32>
    %833 = vector.extract_strided_slice %530 {offsets = [32, 0], sizes = [8, 128], strides = [1, 1]} : vector<40x128xf32> to vector<8x128xf32>
    %834 = vector.extract_strided_slice %832 {offsets = [0, 0], sizes = [8, 128], strides = [1, 1]} : vector<8x256xf32> to vector<8x128xf32>
    %835 = vector.extract_strided_slice %833 {offsets = [0, 0], sizes = [8, 32], strides = [1, 1]} : vector<8x128xf32> to vector<8x32xf32>
    %836 = vector.extract_strided_slice %834 {offsets = [0, 0], sizes = [8, 32], strides = [1, 1]} : vector<8x128xf32> to vector<8x32xf32>
    %837 = arith.addf %835, %836 : vector<8x32xf32>
    %838 = arith.negf %837 : vector<8x32xf32>
    %839 = math.exp %838 : vector<8x32xf32>
    %cst_134 = arith.constant 1.000000e+00 : f32
    %840 = vector.broadcast %cst_134 : f32 to vector<8x32xf32>
    %841 = arith.addf %840, %839 : vector<8x32xf32>
    %842 = arith.divf %840, %841 : vector<8x32xf32>
    %843 = vector.extract_strided_slice %833 {offsets = [0, 32], sizes = [8, 32], strides = [1, 1]} : vector<8x128xf32> to vector<8x32xf32>
    %844 = vector.extract_strided_slice %834 {offsets = [0, 32], sizes = [8, 32], strides = [1, 1]} : vector<8x128xf32> to vector<8x32xf32>
    %845 = arith.addf %843, %844 : vector<8x32xf32>
    %846 = arith.negf %845 : vector<8x32xf32>
    %847 = math.exp %846 : vector<8x32xf32>
    %cst_135 = arith.constant 1.000000e+00 : f32
    %848 = vector.broadcast %cst_135 : f32 to vector<8x32xf32>
    %849 = arith.addf %848, %847 : vector<8x32xf32>
    %850 = arith.divf %848, %849 : vector<8x32xf32>
    %851 = vector.extract_strided_slice %833 {offsets = [0, 64], sizes = [8, 32], strides = [1, 1]} : vector<8x128xf32> to vector<8x32xf32>
    %852 = vector.extract_strided_slice %834 {offsets = [0, 64], sizes = [8, 32], strides = [1, 1]} : vector<8x128xf32> to vector<8x32xf32>
    %853 = arith.addf %851, %852 : vector<8x32xf32>
    %854 = math.tanh %853 : vector<8x32xf32>
    %855 = vector.extract_strided_slice %833 {offsets = [0, 96], sizes = [8, 32], strides = [1, 1]} : vector<8x128xf32> to vector<8x32xf32>
    %856 = vector.extract_strided_slice %834 {offsets = [0, 96], sizes = [8, 32], strides = [1, 1]} : vector<8x128xf32> to vector<8x32xf32>
    %857 = arith.addf %855, %856 : vector<8x32xf32>
    %858 = arith.negf %857 : vector<8x32xf32>
    %859 = math.exp %858 : vector<8x32xf32>
    %cst_136 = arith.constant 1.000000e+00 : f32
    %860 = vector.broadcast %cst_136 : f32 to vector<8x32xf32>
    %861 = arith.addf %860, %859 : vector<8x32xf32>
    %862 = arith.divf %860, %861 : vector<8x32xf32>
    %863 = arith.mulf %850, %792 : vector<8x32xf32>
    %864 = arith.mulf %842, %854 : vector<8x32xf32>
    %865 = arith.addf %863, %864 : vector<8x32xf32>
    %866 = math.tanh %865 : vector<8x32xf32>
    %867 = arith.mulf %862, %866 : vector<8x32xf32>
    %868 = vector.extract_strided_slice %535 {offsets = [0, 0], sizes = [8, 128], strides = [1, 1]} : vector<40x128xf32> to vector<8x128xf32>
    %869 = vector.extract_strided_slice %832 {offsets = [0, 128], sizes = [8, 128], strides = [1, 1]} : vector<8x256xf32> to vector<8x128xf32>
    %870 = vector.extract_strided_slice %868 {offsets = [0, 0], sizes = [8, 32], strides = [1, 1]} : vector<8x128xf32> to vector<8x32xf32>
    %871 = vector.extract_strided_slice %869 {offsets = [0, 0], sizes = [8, 32], strides = [1, 1]} : vector<8x128xf32> to vector<8x32xf32>
    %872 = arith.addf %870, %871 : vector<8x32xf32>
    %873 = arith.negf %872 : vector<8x32xf32>
    %874 = math.exp %873 : vector<8x32xf32>
    %cst_137 = arith.constant 1.000000e+00 : f32
    %875 = vector.broadcast %cst_137 : f32 to vector<8x32xf32>
    %876 = arith.addf %875, %874 : vector<8x32xf32>
    %877 = arith.divf %875, %876 : vector<8x32xf32>
    %878 = vector.extract_strided_slice %868 {offsets = [0, 32], sizes = [8, 32], strides = [1, 1]} : vector<8x128xf32> to vector<8x32xf32>
    %879 = vector.extract_strided_slice %869 {offsets = [0, 32], sizes = [8, 32], strides = [1, 1]} : vector<8x128xf32> to vector<8x32xf32>
    %880 = arith.addf %878, %879 : vector<8x32xf32>
    %881 = arith.negf %880 : vector<8x32xf32>
    %882 = math.exp %881 : vector<8x32xf32>
    %cst_138 = arith.constant 1.000000e+00 : f32
    %883 = vector.broadcast %cst_138 : f32 to vector<8x32xf32>
    %884 = arith.addf %883, %882 : vector<8x32xf32>
    %885 = arith.divf %883, %884 : vector<8x32xf32>
    %886 = vector.extract_strided_slice %868 {offsets = [0, 64], sizes = [8, 32], strides = [1, 1]} : vector<8x128xf32> to vector<8x32xf32>
    %887 = vector.extract_strided_slice %869 {offsets = [0, 64], sizes = [8, 32], strides = [1, 1]} : vector<8x128xf32> to vector<8x32xf32>
    %888 = arith.addf %886, %887 : vector<8x32xf32>
    %889 = math.tanh %888 : vector<8x32xf32>
    %890 = vector.extract_strided_slice %868 {offsets = [0, 96], sizes = [8, 32], strides = [1, 1]} : vector<8x128xf32> to vector<8x32xf32>
    %891 = vector.extract_strided_slice %869 {offsets = [0, 96], sizes = [8, 32], strides = [1, 1]} : vector<8x128xf32> to vector<8x32xf32>
    %892 = arith.addf %890, %891 : vector<8x32xf32>
    %893 = arith.negf %892 : vector<8x32xf32>
    %894 = math.exp %893 : vector<8x32xf32>
    %cst_139 = arith.constant 1.000000e+00 : f32
    %895 = vector.broadcast %cst_139 : f32 to vector<8x32xf32>
    %896 = arith.addf %895, %894 : vector<8x32xf32>
    %897 = arith.divf %895, %896 : vector<8x32xf32>
    %898 = arith.mulf %885, %827 : vector<8x32xf32>
    %899 = arith.mulf %877, %889 : vector<8x32xf32>
    %900 = arith.addf %898, %899 : vector<8x32xf32>
    %901 = math.tanh %900 : vector<8x32xf32>
    %902 = arith.mulf %897, %901 : vector<8x32xf32>
    %903 = tpu.concatenate %575, %902 in 1 : vector<8x32xf32>, vector<8x32xf32> -> vector<8x64xf32>
    %904 = tpu.concatenate %648, %829 in 1 : vector<8x32xf32>, vector<8x32xf32> -> vector<8x64xf32>
    %905 = tpu.concatenate %721, %756 in 1 : vector<8x32xf32>, vector<8x32xf32> -> vector<8x64xf32>
    %906 = tpu.concatenate %794, %683 in 1 : vector<8x32xf32>, vector<8x32xf32> -> vector<8x64xf32>
    %907 = tpu.concatenate %867, %610 in 1 : vector<8x32xf32>, vector<8x32xf32> -> vector<8x64xf32>
    %908 = tpu.concatenate %903, %904, %905, %906, %907 in 0 : vector<8x64xf32>, vector<8x64xf32>, vector<8x64xf32>, vector<8x64xf32>, vector<8x64xf32> -> vector<40x64xf32>
    %c0_140 = arith.constant 0 : index
    %c0_141 = arith.constant 0 : index
    %909 = vector.load %arg16[%c0_140, %c0_141] : memref<64x128xbf16, #tpu.memory_space<vmem>>, vector<64x128xbf16>
    %910 = arith.truncf %908 : vector<40x64xf32> to vector<40x64xbf16>
    %cst_142 = arith.constant dense<0.000000e+00> : vector<40x128xf32>
    %911 = tpu.matmul %910, %909, %cst_142 {dimension_numbers = #tpu.dot_dimension_numbers<[1], [0], [0], [1], [0, 0, 1, 1], [], []>} : vector<40x64xbf16>, vector<64x128xbf16>, vector<40x128xf32> -> vector<40x128xf32>
    %c0_143 = arith.constant 0 : index
    %c0_144 = arith.constant 0 : index
    %912 = vector.load %arg19[%c0_143, %c0_144] : memref<1x128xf32, #tpu.memory_space<vmem>>, vector<1x128xf32>
    %913 = vector.broadcast %912 : vector<1x128xf32> to vector<40x128xf32>
    %914 = arith.addf %911, %913 : vector<40x128xf32>
    %c0_145 = arith.constant 0 : index
    %c0_146 = arith.constant 0 : index
    %915 = vector.load %arg17[%c0_145, %c0_146] : memref<64x128xbf16, #tpu.memory_space<vmem>>, vector<64x128xbf16>
    %916 = arith.truncf %908 : vector<40x64xf32> to vector<40x64xbf16>
    %cst_147 = arith.constant dense<0.000000e+00> : vector<40x128xf32>
    %917 = tpu.matmul %916, %915, %cst_147 {dimension_numbers = #tpu.dot_dimension_numbers<[1], [0], [0], [1], [0, 0, 1, 1], [], []>} : vector<40x64xbf16>, vector<64x128xbf16>, vector<40x128xf32> -> vector<40x128xf32>
    %c0_148 = arith.constant 0 : index
    %c0_149 = arith.constant 0 : index
    %918 = vector.load %arg20[%c0_148, %c0_149] : memref<1x128xf32, #tpu.memory_space<vmem>>, vector<1x128xf32>
    %919 = vector.broadcast %918 : vector<1x128xf32> to vector<40x128xf32>
    %920 = arith.addf %917, %919 : vector<40x128xf32>
    %c0_150 = arith.constant 0 : index
    %c0_151 = arith.constant 0 : index
    %921 = vector.load %arg18[%c0_150, %c0_151] : memref<64x256xbf16, #tpu.memory_space<vmem>>, vector<64x256xbf16>
    %c0_152 = arith.constant 0 : index
    %c0_153 = arith.constant 0 : index
    %922 = vector.load %arg21[%c0_152, %c0_153] : memref<320x32xbf16, #tpu.memory_space<vmem>>, vector<320x32xbf16>
    %cst_154 = arith.constant 0.000000e+00 : f32
    %923 = vector.broadcast %cst_154 : f32 to vector<8x64xf32>
    %cst_155 = arith.constant 0.000000e+00 : f32
    %924 = vector.broadcast %cst_155 : f32 to vector<8x32xf32>
    %925 = arith.truncf %923 : vector<8x64xf32> to vector<8x64xbf16>
    %cst_156 = arith.constant dense<0.000000e+00> : vector<8x256xf32>
    %926 = tpu.matmul %925, %921, %cst_156 {dimension_numbers = #tpu.dot_dimension_numbers<[1], [0], [0], [1], [0, 0, 1, 1], [], []>} : vector<8x64xbf16>, vector<64x256xbf16>, vector<8x256xf32> -> vector<8x256xf32>
    %927 = vector.extract_strided_slice %914 {offsets = [0, 0], sizes = [8, 128], strides = [1, 1]} : vector<40x128xf32> to vector<8x128xf32>
    %928 = vector.extract_strided_slice %926 {offsets = [0, 0], sizes = [8, 128], strides = [1, 1]} : vector<8x256xf32> to vector<8x128xf32>
    %929 = vector.extract_strided_slice %927 {offsets = [0, 0], sizes = [8, 32], strides = [1, 1]} : vector<8x128xf32> to vector<8x32xf32>
    %930 = vector.extract_strided_slice %928 {offsets = [0, 0], sizes = [8, 32], strides = [1, 1]} : vector<8x128xf32> to vector<8x32xf32>
    %931 = arith.addf %929, %930 : vector<8x32xf32>
    %932 = arith.negf %931 : vector<8x32xf32>
    %933 = math.exp %932 : vector<8x32xf32>
    %cst_157 = arith.constant 1.000000e+00 : f32
    %934 = vector.broadcast %cst_157 : f32 to vector<8x32xf32>
    %935 = arith.addf %934, %933 : vector<8x32xf32>
    %936 = arith.divf %934, %935 : vector<8x32xf32>
    %937 = vector.extract_strided_slice %927 {offsets = [0, 32], sizes = [8, 32], strides = [1, 1]} : vector<8x128xf32> to vector<8x32xf32>
    %938 = vector.extract_strided_slice %928 {offsets = [0, 32], sizes = [8, 32], strides = [1, 1]} : vector<8x128xf32> to vector<8x32xf32>
    %939 = arith.addf %937, %938 : vector<8x32xf32>
    %940 = arith.negf %939 : vector<8x32xf32>
    %941 = math.exp %940 : vector<8x32xf32>
    %cst_158 = arith.constant 1.000000e+00 : f32
    %942 = vector.broadcast %cst_158 : f32 to vector<8x32xf32>
    %943 = arith.addf %942, %941 : vector<8x32xf32>
    %944 = arith.divf %942, %943 : vector<8x32xf32>
    %945 = vector.extract_strided_slice %927 {offsets = [0, 64], sizes = [8, 32], strides = [1, 1]} : vector<8x128xf32> to vector<8x32xf32>
    %946 = vector.extract_strided_slice %928 {offsets = [0, 64], sizes = [8, 32], strides = [1, 1]} : vector<8x128xf32> to vector<8x32xf32>
    %947 = arith.addf %945, %946 : vector<8x32xf32>
    %948 = math.tanh %947 : vector<8x32xf32>
    %949 = vector.extract_strided_slice %927 {offsets = [0, 96], sizes = [8, 32], strides = [1, 1]} : vector<8x128xf32> to vector<8x32xf32>
    %950 = vector.extract_strided_slice %928 {offsets = [0, 96], sizes = [8, 32], strides = [1, 1]} : vector<8x128xf32> to vector<8x32xf32>
    %951 = arith.addf %949, %950 : vector<8x32xf32>
    %952 = arith.negf %951 : vector<8x32xf32>
    %953 = math.exp %952 : vector<8x32xf32>
    %cst_159 = arith.constant 1.000000e+00 : f32
    %954 = vector.broadcast %cst_159 : f32 to vector<8x32xf32>
    %955 = arith.addf %954, %953 : vector<8x32xf32>
    %956 = arith.divf %954, %955 : vector<8x32xf32>
    %957 = arith.mulf %944, %537 : vector<8x32xf32>
    %958 = arith.mulf %936, %948 : vector<8x32xf32>
    %959 = arith.addf %957, %958 : vector<8x32xf32>
    %960 = math.tanh %959 : vector<8x32xf32>
    %961 = arith.mulf %956, %960 : vector<8x32xf32>
    %962 = vector.extract_strided_slice %920 {offsets = [32, 0], sizes = [8, 128], strides = [1, 1]} : vector<40x128xf32> to vector<8x128xf32>
    %963 = vector.extract_strided_slice %926 {offsets = [0, 128], sizes = [8, 128], strides = [1, 1]} : vector<8x256xf32> to vector<8x128xf32>
    %964 = vector.extract_strided_slice %962 {offsets = [0, 0], sizes = [8, 32], strides = [1, 1]} : vector<8x128xf32> to vector<8x32xf32>
    %965 = vector.extract_strided_slice %963 {offsets = [0, 0], sizes = [8, 32], strides = [1, 1]} : vector<8x128xf32> to vector<8x32xf32>
    %966 = arith.addf %964, %965 : vector<8x32xf32>
    %967 = arith.negf %966 : vector<8x32xf32>
    %968 = math.exp %967 : vector<8x32xf32>
    %cst_160 = arith.constant 1.000000e+00 : f32
    %969 = vector.broadcast %cst_160 : f32 to vector<8x32xf32>
    %970 = arith.addf %969, %968 : vector<8x32xf32>
    %971 = arith.divf %969, %970 : vector<8x32xf32>
    %972 = vector.extract_strided_slice %962 {offsets = [0, 32], sizes = [8, 32], strides = [1, 1]} : vector<8x128xf32> to vector<8x32xf32>
    %973 = vector.extract_strided_slice %963 {offsets = [0, 32], sizes = [8, 32], strides = [1, 1]} : vector<8x128xf32> to vector<8x32xf32>
    %974 = arith.addf %972, %973 : vector<8x32xf32>
    %975 = arith.negf %974 : vector<8x32xf32>
    %976 = math.exp %975 : vector<8x32xf32>
    %cst_161 = arith.constant 1.000000e+00 : f32
    %977 = vector.broadcast %cst_161 : f32 to vector<8x32xf32>
    %978 = arith.addf %977, %976 : vector<8x32xf32>
    %979 = arith.divf %977, %978 : vector<8x32xf32>
    %980 = vector.extract_strided_slice %962 {offsets = [0, 64], sizes = [8, 32], strides = [1, 1]} : vector<8x128xf32> to vector<8x32xf32>
    %981 = vector.extract_strided_slice %963 {offsets = [0, 64], sizes = [8, 32], strides = [1, 1]} : vector<8x128xf32> to vector<8x32xf32>
    %982 = arith.addf %980, %981 : vector<8x32xf32>
    %983 = math.tanh %982 : vector<8x32xf32>
    %984 = vector.extract_strided_slice %962 {offsets = [0, 96], sizes = [8, 32], strides = [1, 1]} : vector<8x128xf32> to vector<8x32xf32>
    %985 = vector.extract_strided_slice %963 {offsets = [0, 96], sizes = [8, 32], strides = [1, 1]} : vector<8x128xf32> to vector<8x32xf32>
    %986 = arith.addf %984, %985 : vector<8x32xf32>
    %987 = arith.negf %986 : vector<8x32xf32>
    %988 = math.exp %987 : vector<8x32xf32>
    %cst_162 = arith.constant 1.000000e+00 : f32
    %989 = vector.broadcast %cst_162 : f32 to vector<8x32xf32>
    %990 = arith.addf %989, %988 : vector<8x32xf32>
    %991 = arith.divf %989, %990 : vector<8x32xf32>
    %992 = arith.mulf %979, %537 : vector<8x32xf32>
    %993 = arith.mulf %971, %983 : vector<8x32xf32>
    %994 = arith.addf %992, %993 : vector<8x32xf32>
    %995 = math.tanh %994 : vector<8x32xf32>
    %996 = arith.mulf %991, %995 : vector<8x32xf32>
    %997 = tpu.concatenate %961, %996 in 1 : vector<8x32xf32>, vector<8x32xf32> -> vector<8x64xf32>
    %998 = vector.extract_strided_slice %922 {offsets = [0, 0], sizes = [64, 32], strides = [1, 1]} : vector<320x32xbf16> to vector<64x32xbf16>
    %999 = arith.truncf %997 : vector<8x64xf32> to vector<8x64xbf16>
    %cst_163 = arith.constant dense<0.000000e+00> : vector<8x32xf32>
    %1000 = tpu.matmul %999, %998, %cst_163 {dimension_numbers = #tpu.dot_dimension_numbers<[1], [0], [0], [1], [0, 0, 1, 1], [], []>} : vector<8x64xbf16>, vector<64x32xbf16>, vector<8x32xf32> -> vector<8x32xf32>
    %1001 = arith.addf %924, %1000 : vector<8x32xf32>
    %1002 = arith.truncf %997 : vector<8x64xf32> to vector<8x64xbf16>
    %cst_164 = arith.constant dense<0.000000e+00> : vector<8x256xf32>
    %1003 = tpu.matmul %1002, %921, %cst_164 {dimension_numbers = #tpu.dot_dimension_numbers<[1], [0], [0], [1], [0, 0, 1, 1], [], []>} : vector<8x64xbf16>, vector<64x256xbf16>, vector<8x256xf32> -> vector<8x256xf32>
    %1004 = vector.extract_strided_slice %914 {offsets = [8, 0], sizes = [8, 128], strides = [1, 1]} : vector<40x128xf32> to vector<8x128xf32>
    %1005 = vector.extract_strided_slice %1003 {offsets = [0, 0], sizes = [8, 128], strides = [1, 1]} : vector<8x256xf32> to vector<8x128xf32>
    %1006 = vector.extract_strided_slice %1004 {offsets = [0, 0], sizes = [8, 32], strides = [1, 1]} : vector<8x128xf32> to vector<8x32xf32>
    %1007 = vector.extract_strided_slice %1005 {offsets = [0, 0], sizes = [8, 32], strides = [1, 1]} : vector<8x128xf32> to vector<8x32xf32>
    %1008 = arith.addf %1006, %1007 : vector<8x32xf32>
    %1009 = arith.negf %1008 : vector<8x32xf32>
    %1010 = math.exp %1009 : vector<8x32xf32>
    %cst_165 = arith.constant 1.000000e+00 : f32
    %1011 = vector.broadcast %cst_165 : f32 to vector<8x32xf32>
    %1012 = arith.addf %1011, %1010 : vector<8x32xf32>
    %1013 = arith.divf %1011, %1012 : vector<8x32xf32>
    %1014 = vector.extract_strided_slice %1004 {offsets = [0, 32], sizes = [8, 32], strides = [1, 1]} : vector<8x128xf32> to vector<8x32xf32>
    %1015 = vector.extract_strided_slice %1005 {offsets = [0, 32], sizes = [8, 32], strides = [1, 1]} : vector<8x128xf32> to vector<8x32xf32>
    %1016 = arith.addf %1014, %1015 : vector<8x32xf32>
    %1017 = arith.negf %1016 : vector<8x32xf32>
    %1018 = math.exp %1017 : vector<8x32xf32>
    %cst_166 = arith.constant 1.000000e+00 : f32
    %1019 = vector.broadcast %cst_166 : f32 to vector<8x32xf32>
    %1020 = arith.addf %1019, %1018 : vector<8x32xf32>
    %1021 = arith.divf %1019, %1020 : vector<8x32xf32>
    %1022 = vector.extract_strided_slice %1004 {offsets = [0, 64], sizes = [8, 32], strides = [1, 1]} : vector<8x128xf32> to vector<8x32xf32>
    %1023 = vector.extract_strided_slice %1005 {offsets = [0, 64], sizes = [8, 32], strides = [1, 1]} : vector<8x128xf32> to vector<8x32xf32>
    %1024 = arith.addf %1022, %1023 : vector<8x32xf32>
    %1025 = math.tanh %1024 : vector<8x32xf32>
    %1026 = vector.extract_strided_slice %1004 {offsets = [0, 96], sizes = [8, 32], strides = [1, 1]} : vector<8x128xf32> to vector<8x32xf32>
    %1027 = vector.extract_strided_slice %1005 {offsets = [0, 96], sizes = [8, 32], strides = [1, 1]} : vector<8x128xf32> to vector<8x32xf32>
    %1028 = arith.addf %1026, %1027 : vector<8x32xf32>
    %1029 = arith.negf %1028 : vector<8x32xf32>
    %1030 = math.exp %1029 : vector<8x32xf32>
    %cst_167 = arith.constant 1.000000e+00 : f32
    %1031 = vector.broadcast %cst_167 : f32 to vector<8x32xf32>
    %1032 = arith.addf %1031, %1030 : vector<8x32xf32>
    %1033 = arith.divf %1031, %1032 : vector<8x32xf32>
    %1034 = arith.mulf %1021, %959 : vector<8x32xf32>
    %1035 = arith.mulf %1013, %1025 : vector<8x32xf32>
    %1036 = arith.addf %1034, %1035 : vector<8x32xf32>
    %1037 = math.tanh %1036 : vector<8x32xf32>
    %1038 = arith.mulf %1033, %1037 : vector<8x32xf32>
    %1039 = vector.extract_strided_slice %920 {offsets = [24, 0], sizes = [8, 128], strides = [1, 1]} : vector<40x128xf32> to vector<8x128xf32>
    %1040 = vector.extract_strided_slice %1003 {offsets = [0, 128], sizes = [8, 128], strides = [1, 1]} : vector<8x256xf32> to vector<8x128xf32>
    %1041 = vector.extract_strided_slice %1039 {offsets = [0, 0], sizes = [8, 32], strides = [1, 1]} : vector<8x128xf32> to vector<8x32xf32>
    %1042 = vector.extract_strided_slice %1040 {offsets = [0, 0], sizes = [8, 32], strides = [1, 1]} : vector<8x128xf32> to vector<8x32xf32>
    %1043 = arith.addf %1041, %1042 : vector<8x32xf32>
    %1044 = arith.negf %1043 : vector<8x32xf32>
    %1045 = math.exp %1044 : vector<8x32xf32>
    %cst_168 = arith.constant 1.000000e+00 : f32
    %1046 = vector.broadcast %cst_168 : f32 to vector<8x32xf32>
    %1047 = arith.addf %1046, %1045 : vector<8x32xf32>
    %1048 = arith.divf %1046, %1047 : vector<8x32xf32>
    %1049 = vector.extract_strided_slice %1039 {offsets = [0, 32], sizes = [8, 32], strides = [1, 1]} : vector<8x128xf32> to vector<8x32xf32>
    %1050 = vector.extract_strided_slice %1040 {offsets = [0, 32], sizes = [8, 32], strides = [1, 1]} : vector<8x128xf32> to vector<8x32xf32>
    %1051 = arith.addf %1049, %1050 : vector<8x32xf32>
    %1052 = arith.negf %1051 : vector<8x32xf32>
    %1053 = math.exp %1052 : vector<8x32xf32>
    %cst_169 = arith.constant 1.000000e+00 : f32
    %1054 = vector.broadcast %cst_169 : f32 to vector<8x32xf32>
    %1055 = arith.addf %1054, %1053 : vector<8x32xf32>
    %1056 = arith.divf %1054, %1055 : vector<8x32xf32>
    %1057 = vector.extract_strided_slice %1039 {offsets = [0, 64], sizes = [8, 32], strides = [1, 1]} : vector<8x128xf32> to vector<8x32xf32>
    %1058 = vector.extract_strided_slice %1040 {offsets = [0, 64], sizes = [8, 32], strides = [1, 1]} : vector<8x128xf32> to vector<8x32xf32>
    %1059 = arith.addf %1057, %1058 : vector<8x32xf32>
    %1060 = math.tanh %1059 : vector<8x32xf32>
    %1061 = vector.extract_strided_slice %1039 {offsets = [0, 96], sizes = [8, 32], strides = [1, 1]} : vector<8x128xf32> to vector<8x32xf32>
    %1062 = vector.extract_strided_slice %1040 {offsets = [0, 96], sizes = [8, 32], strides = [1, 1]} : vector<8x128xf32> to vector<8x32xf32>
    %1063 = arith.addf %1061, %1062 : vector<8x32xf32>
    %1064 = arith.negf %1063 : vector<8x32xf32>
    %1065 = math.exp %1064 : vector<8x32xf32>
    %cst_170 = arith.constant 1.000000e+00 : f32
    %1066 = vector.broadcast %cst_170 : f32 to vector<8x32xf32>
    %1067 = arith.addf %1066, %1065 : vector<8x32xf32>
    %1068 = arith.divf %1066, %1067 : vector<8x32xf32>
    %1069 = arith.mulf %1056, %994 : vector<8x32xf32>
    %1070 = arith.mulf %1048, %1060 : vector<8x32xf32>
    %1071 = arith.addf %1069, %1070 : vector<8x32xf32>
    %1072 = math.tanh %1071 : vector<8x32xf32>
    %1073 = arith.mulf %1068, %1072 : vector<8x32xf32>
    %1074 = tpu.concatenate %1038, %1073 in 1 : vector<8x32xf32>, vector<8x32xf32> -> vector<8x64xf32>
    %1075 = vector.extract_strided_slice %922 {offsets = [64, 0], sizes = [64, 32], strides = [1, 1]} : vector<320x32xbf16> to vector<64x32xbf16>
    %1076 = arith.truncf %1074 : vector<8x64xf32> to vector<8x64xbf16>
    %cst_171 = arith.constant dense<0.000000e+00> : vector<8x32xf32>
    %1077 = tpu.matmul %1076, %1075, %cst_171 {dimension_numbers = #tpu.dot_dimension_numbers<[1], [0], [0], [1], [0, 0, 1, 1], [], []>} : vector<8x64xbf16>, vector<64x32xbf16>, vector<8x32xf32> -> vector<8x32xf32>
    %1078 = arith.addf %1001, %1077 : vector<8x32xf32>
    %1079 = arith.truncf %1074 : vector<8x64xf32> to vector<8x64xbf16>
    %cst_172 = arith.constant dense<0.000000e+00> : vector<8x256xf32>
    %1080 = tpu.matmul %1079, %921, %cst_172 {dimension_numbers = #tpu.dot_dimension_numbers<[1], [0], [0], [1], [0, 0, 1, 1], [], []>} : vector<8x64xbf16>, vector<64x256xbf16>, vector<8x256xf32> -> vector<8x256xf32>
    %1081 = vector.extract_strided_slice %914 {offsets = [16, 0], sizes = [8, 128], strides = [1, 1]} : vector<40x128xf32> to vector<8x128xf32>
    %1082 = vector.extract_strided_slice %1080 {offsets = [0, 0], sizes = [8, 128], strides = [1, 1]} : vector<8x256xf32> to vector<8x128xf32>
    %1083 = vector.extract_strided_slice %1081 {offsets = [0, 0], sizes = [8, 32], strides = [1, 1]} : vector<8x128xf32> to vector<8x32xf32>
    %1084 = vector.extract_strided_slice %1082 {offsets = [0, 0], sizes = [8, 32], strides = [1, 1]} : vector<8x128xf32> to vector<8x32xf32>
    %1085 = arith.addf %1083, %1084 : vector<8x32xf32>
    %1086 = arith.negf %1085 : vector<8x32xf32>
    %1087 = math.exp %1086 : vector<8x32xf32>
    %cst_173 = arith.constant 1.000000e+00 : f32
    %1088 = vector.broadcast %cst_173 : f32 to vector<8x32xf32>
    %1089 = arith.addf %1088, %1087 : vector<8x32xf32>
    %1090 = arith.divf %1088, %1089 : vector<8x32xf32>
    %1091 = vector.extract_strided_slice %1081 {offsets = [0, 32], sizes = [8, 32], strides = [1, 1]} : vector<8x128xf32> to vector<8x32xf32>
    %1092 = vector.extract_strided_slice %1082 {offsets = [0, 32], sizes = [8, 32], strides = [1, 1]} : vector<8x128xf32> to vector<8x32xf32>
    %1093 = arith.addf %1091, %1092 : vector<8x32xf32>
    %1094 = arith.negf %1093 : vector<8x32xf32>
    %1095 = math.exp %1094 : vector<8x32xf32>
    %cst_174 = arith.constant 1.000000e+00 : f32
    %1096 = vector.broadcast %cst_174 : f32 to vector<8x32xf32>
    %1097 = arith.addf %1096, %1095 : vector<8x32xf32>
    %1098 = arith.divf %1096, %1097 : vector<8x32xf32>
    %1099 = vector.extract_strided_slice %1081 {offsets = [0, 64], sizes = [8, 32], strides = [1, 1]} : vector<8x128xf32> to vector<8x32xf32>
    %1100 = vector.extract_strided_slice %1082 {offsets = [0, 64], sizes = [8, 32], strides = [1, 1]} : vector<8x128xf32> to vector<8x32xf32>
    %1101 = arith.addf %1099, %1100 : vector<8x32xf32>
    %1102 = math.tanh %1101 : vector<8x32xf32>
    %1103 = vector.extract_strided_slice %1081 {offsets = [0, 96], sizes = [8, 32], strides = [1, 1]} : vector<8x128xf32> to vector<8x32xf32>
    %1104 = vector.extract_strided_slice %1082 {offsets = [0, 96], sizes = [8, 32], strides = [1, 1]} : vector<8x128xf32> to vector<8x32xf32>
    %1105 = arith.addf %1103, %1104 : vector<8x32xf32>
    %1106 = arith.negf %1105 : vector<8x32xf32>
    %1107 = math.exp %1106 : vector<8x32xf32>
    %cst_175 = arith.constant 1.000000e+00 : f32
    %1108 = vector.broadcast %cst_175 : f32 to vector<8x32xf32>
    %1109 = arith.addf %1108, %1107 : vector<8x32xf32>
    %1110 = arith.divf %1108, %1109 : vector<8x32xf32>
    %1111 = arith.mulf %1098, %1036 : vector<8x32xf32>
    %1112 = arith.mulf %1090, %1102 : vector<8x32xf32>
    %1113 = arith.addf %1111, %1112 : vector<8x32xf32>
    %1114 = math.tanh %1113 : vector<8x32xf32>
    %1115 = arith.mulf %1110, %1114 : vector<8x32xf32>
    %1116 = vector.extract_strided_slice %920 {offsets = [16, 0], sizes = [8, 128], strides = [1, 1]} : vector<40x128xf32> to vector<8x128xf32>
    %1117 = vector.extract_strided_slice %1080 {offsets = [0, 128], sizes = [8, 128], strides = [1, 1]} : vector<8x256xf32> to vector<8x128xf32>
    %1118 = vector.extract_strided_slice %1116 {offsets = [0, 0], sizes = [8, 32], strides = [1, 1]} : vector<8x128xf32> to vector<8x32xf32>
    %1119 = vector.extract_strided_slice %1117 {offsets = [0, 0], sizes = [8, 32], strides = [1, 1]} : vector<8x128xf32> to vector<8x32xf32>
    %1120 = arith.addf %1118, %1119 : vector<8x32xf32>
    %1121 = arith.negf %1120 : vector<8x32xf32>
    %1122 = math.exp %1121 : vector<8x32xf32>
    %cst_176 = arith.constant 1.000000e+00 : f32
    %1123 = vector.broadcast %cst_176 : f32 to vector<8x32xf32>
    %1124 = arith.addf %1123, %1122 : vector<8x32xf32>
    %1125 = arith.divf %1123, %1124 : vector<8x32xf32>
    %1126 = vector.extract_strided_slice %1116 {offsets = [0, 32], sizes = [8, 32], strides = [1, 1]} : vector<8x128xf32> to vector<8x32xf32>
    %1127 = vector.extract_strided_slice %1117 {offsets = [0, 32], sizes = [8, 32], strides = [1, 1]} : vector<8x128xf32> to vector<8x32xf32>
    %1128 = arith.addf %1126, %1127 : vector<8x32xf32>
    %1129 = arith.negf %1128 : vector<8x32xf32>
    %1130 = math.exp %1129 : vector<8x32xf32>
    %cst_177 = arith.constant 1.000000e+00 : f32
    %1131 = vector.broadcast %cst_177 : f32 to vector<8x32xf32>
    %1132 = arith.addf %1131, %1130 : vector<8x32xf32>
    %1133 = arith.divf %1131, %1132 : vector<8x32xf32>
    %1134 = vector.extract_strided_slice %1116 {offsets = [0, 64], sizes = [8, 32], strides = [1, 1]} : vector<8x128xf32> to vector<8x32xf32>
    %1135 = vector.extract_strided_slice %1117 {offsets = [0, 64], sizes = [8, 32], strides = [1, 1]} : vector<8x128xf32> to vector<8x32xf32>
    %1136 = arith.addf %1134, %1135 : vector<8x32xf32>
    %1137 = math.tanh %1136 : vector<8x32xf32>
    %1138 = vector.extract_strided_slice %1116 {offsets = [0, 96], sizes = [8, 32], strides = [1, 1]} : vector<8x128xf32> to vector<8x32xf32>
    %1139 = vector.extract_strided_slice %1117 {offsets = [0, 96], sizes = [8, 32], strides = [1, 1]} : vector<8x128xf32> to vector<8x32xf32>
    %1140 = arith.addf %1138, %1139 : vector<8x32xf32>
    %1141 = arith.negf %1140 : vector<8x32xf32>
    %1142 = math.exp %1141 : vector<8x32xf32>
    %cst_178 = arith.constant 1.000000e+00 : f32
    %1143 = vector.broadcast %cst_178 : f32 to vector<8x32xf32>
    %1144 = arith.addf %1143, %1142 : vector<8x32xf32>
    %1145 = arith.divf %1143, %1144 : vector<8x32xf32>
    %1146 = arith.mulf %1133, %1071 : vector<8x32xf32>
    %1147 = arith.mulf %1125, %1137 : vector<8x32xf32>
    %1148 = arith.addf %1146, %1147 : vector<8x32xf32>
    %1149 = math.tanh %1148 : vector<8x32xf32>
    %1150 = arith.mulf %1145, %1149 : vector<8x32xf32>
    %1151 = tpu.concatenate %1115, %1150 in 1 : vector<8x32xf32>, vector<8x32xf32> -> vector<8x64xf32>
    %1152 = vector.extract_strided_slice %922 {offsets = [128, 0], sizes = [64, 32], strides = [1, 1]} : vector<320x32xbf16> to vector<64x32xbf16>
    %1153 = arith.truncf %1151 : vector<8x64xf32> to vector<8x64xbf16>
    %cst_179 = arith.constant dense<0.000000e+00> : vector<8x32xf32>
    %1154 = tpu.matmul %1153, %1152, %cst_179 {dimension_numbers = #tpu.dot_dimension_numbers<[1], [0], [0], [1], [0, 0, 1, 1], [], []>} : vector<8x64xbf16>, vector<64x32xbf16>, vector<8x32xf32> -> vector<8x32xf32>
    %1155 = arith.addf %1078, %1154 : vector<8x32xf32>
    %1156 = arith.truncf %1151 : vector<8x64xf32> to vector<8x64xbf16>
    %cst_180 = arith.constant dense<0.000000e+00> : vector<8x256xf32>
    %1157 = tpu.matmul %1156, %921, %cst_180 {dimension_numbers = #tpu.dot_dimension_numbers<[1], [0], [0], [1], [0, 0, 1, 1], [], []>} : vector<8x64xbf16>, vector<64x256xbf16>, vector<8x256xf32> -> vector<8x256xf32>
    %1158 = vector.extract_strided_slice %914 {offsets = [24, 0], sizes = [8, 128], strides = [1, 1]} : vector<40x128xf32> to vector<8x128xf32>
    %1159 = vector.extract_strided_slice %1157 {offsets = [0, 0], sizes = [8, 128], strides = [1, 1]} : vector<8x256xf32> to vector<8x128xf32>
    %1160 = vector.extract_strided_slice %1158 {offsets = [0, 0], sizes = [8, 32], strides = [1, 1]} : vector<8x128xf32> to vector<8x32xf32>
    %1161 = vector.extract_strided_slice %1159 {offsets = [0, 0], sizes = [8, 32], strides = [1, 1]} : vector<8x128xf32> to vector<8x32xf32>
    %1162 = arith.addf %1160, %1161 : vector<8x32xf32>
    %1163 = arith.negf %1162 : vector<8x32xf32>
    %1164 = math.exp %1163 : vector<8x32xf32>
    %cst_181 = arith.constant 1.000000e+00 : f32
    %1165 = vector.broadcast %cst_181 : f32 to vector<8x32xf32>
    %1166 = arith.addf %1165, %1164 : vector<8x32xf32>
    %1167 = arith.divf %1165, %1166 : vector<8x32xf32>
    %1168 = vector.extract_strided_slice %1158 {offsets = [0, 32], sizes = [8, 32], strides = [1, 1]} : vector<8x128xf32> to vector<8x32xf32>
    %1169 = vector.extract_strided_slice %1159 {offsets = [0, 32], sizes = [8, 32], strides = [1, 1]} : vector<8x128xf32> to vector<8x32xf32>
    %1170 = arith.addf %1168, %1169 : vector<8x32xf32>
    %1171 = arith.negf %1170 : vector<8x32xf32>
    %1172 = math.exp %1171 : vector<8x32xf32>
    %cst_182 = arith.constant 1.000000e+00 : f32
    %1173 = vector.broadcast %cst_182 : f32 to vector<8x32xf32>
    %1174 = arith.addf %1173, %1172 : vector<8x32xf32>
    %1175 = arith.divf %1173, %1174 : vector<8x32xf32>
    %1176 = vector.extract_strided_slice %1158 {offsets = [0, 64], sizes = [8, 32], strides = [1, 1]} : vector<8x128xf32> to vector<8x32xf32>
    %1177 = vector.extract_strided_slice %1159 {offsets = [0, 64], sizes = [8, 32], strides = [1, 1]} : vector<8x128xf32> to vector<8x32xf32>
    %1178 = arith.addf %1176, %1177 : vector<8x32xf32>
    %1179 = math.tanh %1178 : vector<8x32xf32>
    %1180 = vector.extract_strided_slice %1158 {offsets = [0, 96], sizes = [8, 32], strides = [1, 1]} : vector<8x128xf32> to vector<8x32xf32>
    %1181 = vector.extract_strided_slice %1159 {offsets = [0, 96], sizes = [8, 32], strides = [1, 1]} : vector<8x128xf32> to vector<8x32xf32>
    %1182 = arith.addf %1180, %1181 : vector<8x32xf32>
    %1183 = arith.negf %1182 : vector<8x32xf32>
    %1184 = math.exp %1183 : vector<8x32xf32>
    %cst_183 = arith.constant 1.000000e+00 : f32
    %1185 = vector.broadcast %cst_183 : f32 to vector<8x32xf32>
    %1186 = arith.addf %1185, %1184 : vector<8x32xf32>
    %1187 = arith.divf %1185, %1186 : vector<8x32xf32>
    %1188 = arith.mulf %1175, %1113 : vector<8x32xf32>
    %1189 = arith.mulf %1167, %1179 : vector<8x32xf32>
    %1190 = arith.addf %1188, %1189 : vector<8x32xf32>
    %1191 = math.tanh %1190 : vector<8x32xf32>
    %1192 = arith.mulf %1187, %1191 : vector<8x32xf32>
    %1193 = vector.extract_strided_slice %920 {offsets = [8, 0], sizes = [8, 128], strides = [1, 1]} : vector<40x128xf32> to vector<8x128xf32>
    %1194 = vector.extract_strided_slice %1157 {offsets = [0, 128], sizes = [8, 128], strides = [1, 1]} : vector<8x256xf32> to vector<8x128xf32>
    %1195 = vector.extract_strided_slice %1193 {offsets = [0, 0], sizes = [8, 32], strides = [1, 1]} : vector<8x128xf32> to vector<8x32xf32>
    %1196 = vector.extract_strided_slice %1194 {offsets = [0, 0], sizes = [8, 32], strides = [1, 1]} : vector<8x128xf32> to vector<8x32xf32>
    %1197 = arith.addf %1195, %1196 : vector<8x32xf32>
    %1198 = arith.negf %1197 : vector<8x32xf32>
    %1199 = math.exp %1198 : vector<8x32xf32>
    %cst_184 = arith.constant 1.000000e+00 : f32
    %1200 = vector.broadcast %cst_184 : f32 to vector<8x32xf32>
    %1201 = arith.addf %1200, %1199 : vector<8x32xf32>
    %1202 = arith.divf %1200, %1201 : vector<8x32xf32>
    %1203 = vector.extract_strided_slice %1193 {offsets = [0, 32], sizes = [8, 32], strides = [1, 1]} : vector<8x128xf32> to vector<8x32xf32>
    %1204 = vector.extract_strided_slice %1194 {offsets = [0, 32], sizes = [8, 32], strides = [1, 1]} : vector<8x128xf32> to vector<8x32xf32>
    %1205 = arith.addf %1203, %1204 : vector<8x32xf32>
    %1206 = arith.negf %1205 : vector<8x32xf32>
    %1207 = math.exp %1206 : vector<8x32xf32>
    %cst_185 = arith.constant 1.000000e+00 : f32
    %1208 = vector.broadcast %cst_185 : f32 to vector<8x32xf32>
    %1209 = arith.addf %1208, %1207 : vector<8x32xf32>
    %1210 = arith.divf %1208, %1209 : vector<8x32xf32>
    %1211 = vector.extract_strided_slice %1193 {offsets = [0, 64], sizes = [8, 32], strides = [1, 1]} : vector<8x128xf32> to vector<8x32xf32>
    %1212 = vector.extract_strided_slice %1194 {offsets = [0, 64], sizes = [8, 32], strides = [1, 1]} : vector<8x128xf32> to vector<8x32xf32>
    %1213 = arith.addf %1211, %1212 : vector<8x32xf32>
    %1214 = math.tanh %1213 : vector<8x32xf32>
    %1215 = vector.extract_strided_slice %1193 {offsets = [0, 96], sizes = [8, 32], strides = [1, 1]} : vector<8x128xf32> to vector<8x32xf32>
    %1216 = vector.extract_strided_slice %1194 {offsets = [0, 96], sizes = [8, 32], strides = [1, 1]} : vector<8x128xf32> to vector<8x32xf32>
    %1217 = arith.addf %1215, %1216 : vector<8x32xf32>
    %1218 = arith.negf %1217 : vector<8x32xf32>
    %1219 = math.exp %1218 : vector<8x32xf32>
    %cst_186 = arith.constant 1.000000e+00 : f32
    %1220 = vector.broadcast %cst_186 : f32 to vector<8x32xf32>
    %1221 = arith.addf %1220, %1219 : vector<8x32xf32>
    %1222 = arith.divf %1220, %1221 : vector<8x32xf32>
    %1223 = arith.mulf %1210, %1148 : vector<8x32xf32>
    %1224 = arith.mulf %1202, %1214 : vector<8x32xf32>
    %1225 = arith.addf %1223, %1224 : vector<8x32xf32>
    %1226 = math.tanh %1225 : vector<8x32xf32>
    %1227 = arith.mulf %1222, %1226 : vector<8x32xf32>
    %1228 = tpu.concatenate %1192, %1227 in 1 : vector<8x32xf32>, vector<8x32xf32> -> vector<8x64xf32>
    %1229 = vector.extract_strided_slice %922 {offsets = [192, 0], sizes = [64, 32], strides = [1, 1]} : vector<320x32xbf16> to vector<64x32xbf16>
    %1230 = arith.truncf %1228 : vector<8x64xf32> to vector<8x64xbf16>
    %cst_187 = arith.constant dense<0.000000e+00> : vector<8x32xf32>
    %1231 = tpu.matmul %1230, %1229, %cst_187 {dimension_numbers = #tpu.dot_dimension_numbers<[1], [0], [0], [1], [0, 0, 1, 1], [], []>} : vector<8x64xbf16>, vector<64x32xbf16>, vector<8x32xf32> -> vector<8x32xf32>
    %1232 = arith.addf %1155, %1231 : vector<8x32xf32>
    %1233 = arith.truncf %1228 : vector<8x64xf32> to vector<8x64xbf16>
    %cst_188 = arith.constant dense<0.000000e+00> : vector<8x256xf32>
    %1234 = tpu.matmul %1233, %921, %cst_188 {dimension_numbers = #tpu.dot_dimension_numbers<[1], [0], [0], [1], [0, 0, 1, 1], [], []>} : vector<8x64xbf16>, vector<64x256xbf16>, vector<8x256xf32> -> vector<8x256xf32>
    %1235 = vector.extract_strided_slice %914 {offsets = [32, 0], sizes = [8, 128], strides = [1, 1]} : vector<40x128xf32> to vector<8x128xf32>
    %1236 = vector.extract_strided_slice %1234 {offsets = [0, 0], sizes = [8, 128], strides = [1, 1]} : vector<8x256xf32> to vector<8x128xf32>
    %1237 = vector.extract_strided_slice %1235 {offsets = [0, 0], sizes = [8, 32], strides = [1, 1]} : vector<8x128xf32> to vector<8x32xf32>
    %1238 = vector.extract_strided_slice %1236 {offsets = [0, 0], sizes = [8, 32], strides = [1, 1]} : vector<8x128xf32> to vector<8x32xf32>
    %1239 = arith.addf %1237, %1238 : vector<8x32xf32>
    %1240 = arith.negf %1239 : vector<8x32xf32>
    %1241 = math.exp %1240 : vector<8x32xf32>
    %cst_189 = arith.constant 1.000000e+00 : f32
    %1242 = vector.broadcast %cst_189 : f32 to vector<8x32xf32>
    %1243 = arith.addf %1242, %1241 : vector<8x32xf32>
    %1244 = arith.divf %1242, %1243 : vector<8x32xf32>
    %1245 = vector.extract_strided_slice %1235 {offsets = [0, 32], sizes = [8, 32], strides = [1, 1]} : vector<8x128xf32> to vector<8x32xf32>
    %1246 = vector.extract_strided_slice %1236 {offsets = [0, 32], sizes = [8, 32], strides = [1, 1]} : vector<8x128xf32> to vector<8x32xf32>
    %1247 = arith.addf %1245, %1246 : vector<8x32xf32>
    %1248 = arith.negf %1247 : vector<8x32xf32>
    %1249 = math.exp %1248 : vector<8x32xf32>
    %cst_190 = arith.constant 1.000000e+00 : f32
    %1250 = vector.broadcast %cst_190 : f32 to vector<8x32xf32>
    %1251 = arith.addf %1250, %1249 : vector<8x32xf32>
    %1252 = arith.divf %1250, %1251 : vector<8x32xf32>
    %1253 = vector.extract_strided_slice %1235 {offsets = [0, 64], sizes = [8, 32], strides = [1, 1]} : vector<8x128xf32> to vector<8x32xf32>
    %1254 = vector.extract_strided_slice %1236 {offsets = [0, 64], sizes = [8, 32], strides = [1, 1]} : vector<8x128xf32> to vector<8x32xf32>
    %1255 = arith.addf %1253, %1254 : vector<8x32xf32>
    %1256 = math.tanh %1255 : vector<8x32xf32>
    %1257 = vector.extract_strided_slice %1235 {offsets = [0, 96], sizes = [8, 32], strides = [1, 1]} : vector<8x128xf32> to vector<8x32xf32>
    %1258 = vector.extract_strided_slice %1236 {offsets = [0, 96], sizes = [8, 32], strides = [1, 1]} : vector<8x128xf32> to vector<8x32xf32>
    %1259 = arith.addf %1257, %1258 : vector<8x32xf32>
    %1260 = arith.negf %1259 : vector<8x32xf32>
    %1261 = math.exp %1260 : vector<8x32xf32>
    %cst_191 = arith.constant 1.000000e+00 : f32
    %1262 = vector.broadcast %cst_191 : f32 to vector<8x32xf32>
    %1263 = arith.addf %1262, %1261 : vector<8x32xf32>
    %1264 = arith.divf %1262, %1263 : vector<8x32xf32>
    %1265 = arith.mulf %1252, %1190 : vector<8x32xf32>
    %1266 = arith.mulf %1244, %1256 : vector<8x32xf32>
    %1267 = arith.addf %1265, %1266 : vector<8x32xf32>
    %1268 = math.tanh %1267 : vector<8x32xf32>
    %1269 = arith.mulf %1264, %1268 : vector<8x32xf32>
    %1270 = vector.extract_strided_slice %920 {offsets = [0, 0], sizes = [8, 128], strides = [1, 1]} : vector<40x128xf32> to vector<8x128xf32>
    %1271 = vector.extract_strided_slice %1234 {offsets = [0, 128], sizes = [8, 128], strides = [1, 1]} : vector<8x256xf32> to vector<8x128xf32>
    %1272 = vector.extract_strided_slice %1270 {offsets = [0, 0], sizes = [8, 32], strides = [1, 1]} : vector<8x128xf32> to vector<8x32xf32>
    %1273 = vector.extract_strided_slice %1271 {offsets = [0, 0], sizes = [8, 32], strides = [1, 1]} : vector<8x128xf32> to vector<8x32xf32>
    %1274 = arith.addf %1272, %1273 : vector<8x32xf32>
    %1275 = arith.negf %1274 : vector<8x32xf32>
    %1276 = math.exp %1275 : vector<8x32xf32>
    %cst_192 = arith.constant 1.000000e+00 : f32
    %1277 = vector.broadcast %cst_192 : f32 to vector<8x32xf32>
    %1278 = arith.addf %1277, %1276 : vector<8x32xf32>
    %1279 = arith.divf %1277, %1278 : vector<8x32xf32>
    %1280 = vector.extract_strided_slice %1270 {offsets = [0, 32], sizes = [8, 32], strides = [1, 1]} : vector<8x128xf32> to vector<8x32xf32>
    %1281 = vector.extract_strided_slice %1271 {offsets = [0, 32], sizes = [8, 32], strides = [1, 1]} : vector<8x128xf32> to vector<8x32xf32>
    %1282 = arith.addf %1280, %1281 : vector<8x32xf32>
    %1283 = arith.negf %1282 : vector<8x32xf32>
    %1284 = math.exp %1283 : vector<8x32xf32>
    %cst_193 = arith.constant 1.000000e+00 : f32
    %1285 = vector.broadcast %cst_193 : f32 to vector<8x32xf32>
    %1286 = arith.addf %1285, %1284 : vector<8x32xf32>
    %1287 = arith.divf %1285, %1286 : vector<8x32xf32>
    %1288 = vector.extract_strided_slice %1270 {offsets = [0, 64], sizes = [8, 32], strides = [1, 1]} : vector<8x128xf32> to vector<8x32xf32>
    %1289 = vector.extract_strided_slice %1271 {offsets = [0, 64], sizes = [8, 32], strides = [1, 1]} : vector<8x128xf32> to vector<8x32xf32>
    %1290 = arith.addf %1288, %1289 : vector<8x32xf32>
    %1291 = math.tanh %1290 : vector<8x32xf32>
    %1292 = vector.extract_strided_slice %1270 {offsets = [0, 96], sizes = [8, 32], strides = [1, 1]} : vector<8x128xf32> to vector<8x32xf32>
    %1293 = vector.extract_strided_slice %1271 {offsets = [0, 96], sizes = [8, 32], strides = [1, 1]} : vector<8x128xf32> to vector<8x32xf32>
    %1294 = arith.addf %1292, %1293 : vector<8x32xf32>
    %1295 = arith.negf %1294 : vector<8x32xf32>
    %1296 = math.exp %1295 : vector<8x32xf32>
    %cst_194 = arith.constant 1.000000e+00 : f32
    %1297 = vector.broadcast %cst_194 : f32 to vector<8x32xf32>
    %1298 = arith.addf %1297, %1296 : vector<8x32xf32>
    %1299 = arith.divf %1297, %1298 : vector<8x32xf32>
    %1300 = arith.mulf %1287, %1225 : vector<8x32xf32>
    %1301 = arith.mulf %1279, %1291 : vector<8x32xf32>
    %1302 = arith.addf %1300, %1301 : vector<8x32xf32>
    %1303 = math.tanh %1302 : vector<8x32xf32>
    %1304 = arith.mulf %1299, %1303 : vector<8x32xf32>
    %1305 = tpu.concatenate %1269, %1304 in 1 : vector<8x32xf32>, vector<8x32xf32> -> vector<8x64xf32>
    %1306 = vector.extract_strided_slice %922 {offsets = [256, 0], sizes = [64, 32], strides = [1, 1]} : vector<320x32xbf16> to vector<64x32xbf16>
    %1307 = arith.truncf %1305 : vector<8x64xf32> to vector<8x64xbf16>
    %cst_195 = arith.constant dense<0.000000e+00> : vector<8x32xf32>
    %1308 = tpu.matmul %1307, %1306, %cst_195 {dimension_numbers = #tpu.dot_dimension_numbers<[1], [0], [0], [1], [0, 0, 1, 1], [], []>} : vector<8x64xbf16>, vector<64x32xbf16>, vector<8x32xf32> -> vector<8x32xf32>
    %1309 = arith.addf %1232, %1308 : vector<8x32xf32>
    %c0_196 = arith.constant 0 : index
    %c0_197 = arith.constant 0 : index
    %1310 = vector.load %arg22[%c0_196, %c0_197] : memref<1x32xf32, #tpu.memory_space<vmem>>, vector<1x32xf32>
    %1311 = vector.broadcast %1310 : vector<1x32xf32> to vector<8x32xf32>
    %1312 = arith.addf %1309, %1311 : vector<8x32xf32>
    %c0_198 = arith.constant 0 : index
    %c0_199 = arith.constant 0 : index
    %1313 = vector.load %arg23[%c0_198, %c0_199] : memref<32x64xbf16, #tpu.memory_space<vmem>>, vector<32x64xbf16>
    %1314 = arith.truncf %524 : vector<8x32xf32> to vector<8x32xbf16>
    %cst_200 = arith.constant dense<0.000000e+00> : vector<8x64xf32>
    %1315 = tpu.matmul %1314, %1313, %cst_200 {dimension_numbers = #tpu.dot_dimension_numbers<[1], [0], [0], [1], [0, 0, 1, 1], [], []>} : vector<8x32xbf16>, vector<32x64xbf16>, vector<8x64xf32> -> vector<8x64xf32>
    %c0_201 = arith.constant 0 : index
    %c0_202 = arith.constant 0 : index
    %1316 = vector.load %arg24[%c0_201, %c0_202] : memref<32x64xbf16, #tpu.memory_space<vmem>>, vector<32x64xbf16>
    %1317 = arith.truncf %1312 : vector<8x32xf32> to vector<8x32xbf16>
    %cst_203 = arith.constant dense<0.000000e+00> : vector<8x64xf32>
    %1318 = tpu.matmul %1317, %1316, %cst_203 {dimension_numbers = #tpu.dot_dimension_numbers<[1], [0], [0], [1], [0, 0, 1, 1], [], []>} : vector<8x32xbf16>, vector<32x64xbf16>, vector<8x64xf32> -> vector<8x64xf32>
    %1319 = arith.addf %1315, %1318 : vector<8x64xf32>
    %c0_204 = arith.constant 0 : index
    %c0_205 = arith.constant 0 : index
    %1320 = vector.load %arg25[%c0_204, %c0_205] : memref<1x64xf32, #tpu.memory_space<vmem>>, vector<1x64xf32>
    %1321 = vector.broadcast %1320 : vector<1x64xf32> to vector<8x64xf32>
    %1322 = arith.addf %1319, %1321 : vector<8x64xf32>
    %1323 = math.tanh %1322 : vector<8x64xf32>
    %c0_206 = arith.constant 0 : index
    %c0_207 = arith.constant 0 : index
    %1324 = vector.load %arg26[%c0_206, %c0_207] : memref<64x32xbf16, #tpu.memory_space<vmem>>, vector<64x32xbf16>
    %1325 = arith.truncf %1323 : vector<8x64xf32> to vector<8x64xbf16>
    %cst_208 = arith.constant dense<0.000000e+00> : vector<8x32xf32>
    %1326 = tpu.matmul %1325, %1324, %cst_208 {dimension_numbers = #tpu.dot_dimension_numbers<[1], [0], [0], [1], [0, 0, 1, 1], [], []>} : vector<8x64xbf16>, vector<64x32xbf16>, vector<8x32xf32> -> vector<8x32xf32>
    %c0_209 = arith.constant 0 : index
    %c0_210 = arith.constant 0 : index
    %1327 = vector.load %arg27[%c0_209, %c0_210] : memref<1x32xf32, #tpu.memory_space<vmem>>, vector<1x32xf32>
    %1328 = vector.broadcast %1327 : vector<1x32xf32> to vector<8x32xf32>
    %1329 = arith.addf %1326, %1328 : vector<8x32xf32>
    %1330 = math.tanh %1329 : vector<8x32xf32>
    %c0_211 = arith.constant 0 : index
    %c0_212 = arith.constant 0 : index
    %1331 = vector.load %arg28[%c0_211, %c0_212] : memref<32x1xbf16, #tpu.memory_space<vmem>>, vector<32x1xbf16>
    %1332 = arith.truncf %1330 : vector<8x32xf32> to vector<8x32xbf16>
    %cst_213 = arith.constant dense<0.000000e+00> : vector<8x1xf32>
    %1333 = tpu.matmul %1332, %1331, %cst_213 {dimension_numbers = #tpu.dot_dimension_numbers<[1], [0], [0], [1], [0, 0, 1, 1], [], []>} : vector<8x32xbf16>, vector<32x1xbf16>, vector<8x1xf32> -> vector<8x1xf32>
    %c0_214 = arith.constant 0 : index
    %c0_215 = arith.constant 0 : index
    %1334 = vector.load %arg29[%c0_214, %c0_215] : memref<1x1xf32, #tpu.memory_space<vmem>>, vector<1x1xf32>
    %1335 = vector.broadcast %1334 : vector<1x1xf32> to vector<8x1xf32>
    %1336 = arith.addf %1333, %1335 : vector<8x1xf32>
    %c0_216 = arith.constant 0 : index
    %c0_217 = arith.constant 0 : index
    %1337 = vector.load %arg30[%c0_216, %c0_217] : memref<8x1xf32, #tpu.memory_space<vmem>>, vector<8x1xf32>
    tpu.vector_store %arg30[%c0_216, %c0_217], %1336 {strides = array<i32>} : memref<8x1xf32, #tpu.memory_space<vmem>>, vector<8x1xf32>,
    return
  }
}

</mosaic_0001>

<bundles_post_ra>
// kernel: text_and_numeric_forward.1
= control target key start
LH: loop header
LB: loop body
LE: loop exit
PB: predicated region body
PF: predicated region fallthrough
CT: control target
= control target key end

     0   :  { %v4043_v0 = vmov 0   ;;  %s4044_s6 = smov 2   ;;  %s4045_s10 = smov 6   ;;  %vm224_vm0 = vcmask 1040384   ;;  %v137_v13 = vlaneseq  ;;  %v4048_v17 = vmov 0.0   ;;  %s4942_s0 = inlined_call_operand.smem [shape: u32[31], index: -1, kind: input, shape index: {}] }
   0x1   :  { %3766 = vset.pattern.permute.xlu0 %v4043_v0  ;;  %s4087_s5 = sld [smem:[%s4942_s0]]   ;;  %3767 = vset.pattern.permute.xlu2 %v4043_v0  ;;  %s4046_s14 = smov 4   ;;  %vm211_vm3 = vcmask 408576   ;;  %vm286_vm4 = vcmask 261120  }
   0x2   :  { %s3268_s9 = sld [smem:[%s4942_s0 + %s4044_s6]]   ;;  %3768 = vset.pattern.permute.xlu1 %v4043_v0  ;;  %s4047_s18 = smov 64   ;;  %v4118_v15 = vand.u32 127, %v137_v13 }
   0x3   :  { %s3272_s13 = sld [smem:[%s4942_s0 + %s4045_s10]]   ;;  %s4049_s19 = smov 5  }
   0x4   :  { %s3270_s17 = sld [smem:[%s4942_s0 + %s4046_s14]]   ;;  %s4050_s23 = smov 3  }
   0x5   :  { %s4128_s22 = sld [smem:[%s4942_s0 + %s4049_s19]]   ;;  %s4051_s27 = smov 96  }
   0x6   :  { %s3269_s26 = sld [smem:[%s4942_s0 + %s4050_s23]]   ;;  %s4052_s28 = smov 7  }
   0x7   :  { %v129_v1 = vld [vmem:[%s4087_s5] sm:$0xff]  ;;  %v130_v5 = vld [vmem:[%s4087_s5 + $0x8] sm:$0xff]  ;;  %v131_v52 = vld [vmem:[%s4087_s5 + $0x10] sm:$0xff]  ;;  %s3273_s1 = sld [smem:[%s4942_s0 + %s4052_s28]]   ;;  %s4053_s2 = smov 9  }
   0x8   :  { %140 = vperm.xlu0 %3766, %v129_v1   ;;  %v189_v2 = vld [vmem:[%s3268_s9 + $0x18] sm:$0x1]  ;;  %v3666_v7 = vld [vmem:[%s3268_s9 + $0x10] sm:$0xff]  ;;  %v3665_v8 = vld [vmem:[%s3268_s9 + $0x8] sm:$0xff]  ;;  %s4054_s6 = smov 10   ;;  %s4055_s10 = smov 8  }
   0x9   :  { %v203_v3 = vunpack.c.l.b16 %v189_v2  ;;  %v3664_v9 = vld [vmem:[%s3268_s9] sm:$0xff]  ;;  %v132_v59 = vld [vmem:[%s4087_s5 + $0x18] sm:$0xff]  ;;  %s3276_s9 = sld [smem:[%s4942_s0 + %s4054_s6]]   ;;  %s4056_s14 = smov 12  }
   0xa   :  { %v4102_v10 = vld [vmem:[%s3270_s17 + $0x8] sm:$0xff]  ;;  %v3769_v11 = vld [vmem:[%s3272_s13] ss:$0 sm:$0xff]  ;;  %s3274_s13 = sld [smem:[%s4942_s0 + %s4055_s10]]   ;;  %s4057_s19 = smov 1  }
   0xb   :  { %v207_v4 = vpack.c.b16 %v203_v3, %v203_v3  ;;  %349 = vmatpush.bf16.msra.mxu2 %v4102_v10  ;;  %v4105_v12 = vld [vmem:[%s3270_s17] sm:$0xff]  ;;  %378 = vrot.lane.b32.xlu1 %v3769_v11, %s4047_s18  ;;  %s3278_s17 = sld [smem:[%s4942_s0 + %s4056_s14]]   ;;  %s4058_s23 = smov 13  }
   0xc   :  { %414 = vmatpush.bf16.msra.mxu3 %v4102_v10  ;;  %v3668_v21 = vld [vmem:[%s3269_s26 + $0x8] sm:$0xff]  ;;  %v3667_v22 = vld [vmem:[%s3269_s26] sm:$0xff]  ;;  %s4388_s26 = sld [smem:[%s4942_s0 + %s4058_s23]]   ;;  %s4059_s28 = smov 15  }
   0xd   :  { %v226_v6 = vsel %vm224_vm0, %v207_v4, 0  ;;  %305 = vmatpush.bf16.msra.mxu1 %v3668_v21  ;;  %v4139_v30 = vld [vmem:[%s4128_s22] ss:$0 sm:$0xff]  ;;  %s4061_s7 = smov 14   ;;  %s4062_s11 = smov 32  }
   0xe   :  { %232 = vmatpush.bf16.msra.mxu0 %v226_v6  ;;  %s3280_s10 = sld [smem:[%s4942_s0 + %s4061_s7]]   ;;  %s4063_s12 = smov 18  }
   0xf   :  { %350 = vmatpush.bf16.msra.mxu2 %v4105_v12  ;;  %s4627_s15 = sld [smem:[%s4942_s0 + %s4063_s12]]   ;;  %s4064_s16 = smov 17  }
  0x10   :  { %143 = vperm.xlu0 %3766, %v130_v5   ;;  %415 = vmatpush.bf16.msra.mxu3 %v4105_v12  ;;  %s3283_s20 = sld [smem:[%s4942_s0 + %s4064_s16]]   ;;  %s4065_s21 = smov 16  }
  0x11   :  { %306 = vmatpush.bf16.msra.mxu1 %v3667_v22  ;;  %s4635_s24 = sld [smem:[%s4942_s0 + %s4065_s21]]   ;;  %s4066_s25 = smov 19  }
  0x12   :  { %233 = vmatpush.bf16.msra.mxu0 %v3666_v7  ;;  %351 = vmatmul.bf16.vlgmr.msra.gmra.mxu2 %v4043_v0  ;;  %s4671_s29 = sld [smem:[%s4942_s0 + %s4066_s25]]   ;;  %s4067_s30 = smov 20  }
  0x13   :  { %474 = vmatpush.bf16.msrb.mxu2 %v4102_v10  ;;  %s4708_s3 = sld [smem:[%s4942_s0 + %s4067_s30]]   ;;  %s4068_s4 = smov 21  }
  0x14   :  { %534 = vmatpush.bf16.msrb.mxu3 %v4102_v10  ;;  %s4768_s8 = sld [smem:[%s4942_s0 + %s4068_s4]]   ;;  %s4076_s7 = smov 29  }
  0x16   :  { %234 = vmatpush.bf16.msra.mxu0 %v3665_v8 }
  0x17   :  { %475 = vmatpush.bf16.msrb.mxu2 %v4105_v12 }
  0x18   :  { %535 = vmatpush.bf16.msrb.mxu3 %v4105_v12 }
  0x1a   :  { %235 = vmatpush.bf16.msra.mxu0 %v3664_v9 }
  0x1b   :  { %594 = vmatpush.bf16.msra.mxu2 %v4102_v10 }
  0x1f   :  { %595 = vmatpush.bf16.msra.mxu2 %v4105_v12 }
  0x7a   :  { %v141_v14 = vpop.permute.xlu0 %140 }
  0x7b   :  { %vm163_vm1 = vcmp.eq.s32.totalorder %v141_v14, %v4118_v15 }
  0x7c   :  { %v171_v18 = vsel %vm163_vm1, 1.0, %v4048_v17 }
  0x7d   :  { %v4133_v23 = vpop.permute.xlu1 %378 }
  0x82   :  { %v144_v16 = vpop.permute.xlu0 %143 }
  0x83   :  { %vm164_vm2 = vcmp.eq.s32.totalorder %v144_v16, %v4118_v15 }
  0x84   :  { %v172_v19 = vsel %vm164_vm2, 1.0, %v4048_v17 }
  0x85   :  { %v179_v20 = vpack.c.bf16 %v172_v19, %v171_v18 }
  0x87   :  { %3309 = vmatmul.msk.bf16.vlgmr.msra.gmra.mxu0 %vm211_vm3, %v179_v20 }
  0x95   :  { %v352_v24 = vpop.f32.mrf.mxu2 }
  0x96   :  { %v381_v25 = vadd.f32 %v4133_v23, %v352_v24 }
  0x98   :  { %383 = vrot.lane.b32.xlu1 %v381_v25, %s4047_s18 }
  0x9d   :  { %v354_v26 = vpop.f32.mrf.mxu2 }
 0x104   :  { %v237_v27 = vpop.f32.mrf.mxu0 }
 0x10a   :  { %v384_v44 = vpop.permute.xlu1 %383 }
 0x10c   :  { %v239_v28 = vpop.f32.mrf.mxu0 }
 0x10d   :  { %v267_v29 = vpack.c.bf16 %v239_v28, %v237_v27 }
 0x10f   :  { %3321 = vmatmul.msk.bf16.vlgmr.msra.gmra.mxu1 %vm286_vm4, %v267_v29 }
 0x18c   :  { %v308_v31 = vpop.f32.mrf.mxu1 }
 0x18d   :  { %v309_v32 = vadd.f32 %v4139_v30, %v308_v31 }
 0x18f   :  { %v356_v33 = vadd.f32 %v352_v24, %v309_v32 }
 0x191   :  { %v3333_v34 = vmul.f32 -1.442695, %v356_v33 }
 0x193   :  { %3781 = vpow2.f32 %v3333_v34 }
 0x194   :  { %v310_v9 = vpop.f32.mrf.mxu1 }
 0x195   :  { %v311_v11 = vadd.f32 %v4139_v30, %v310_v9 }
 0x199   :  { %v3782_v35 = vpop.eup %3781 }
 0x19a   :  { %v360_v36 = vadd.f32 1.0, %v3782_v35 }
 0x19c   :  { %3783 = vrcp.f32 %v360_v36  ;;  %v372_v40 = vand.u32 2147483648, %v360_v36  ;;  %v370_v42 = vand.u32 2147483647, %v360_v36  ;;  %vm366_vm6 = vweird.f32 %v360_v36 }
 0x19e   :  { %v373_v45 = vor.u32 1.1754944e-38, %v372_v40  ;;  %vm371_vm8 = vcmp.eq.f32.partialorder %v370_v42, 8.507059e+37 }
 0x1a2   :  { %v3784_v37 = vpop.eup %3783 }
 0x1a3   :  { %v362_v38 = vmul.f32 %v3784_v37, %v360_v36  ;;  %vm367_vm5 = vweird.f32 %v3784_v37 }
 0x1a4   :  { %vm368_vm7 = vmor %vm366_vm6, %vm367_vm5 }
 0x1a5   :  { %v363_v39 = vsub.f32 1.0, %v362_v38 }
 0x1a7   :  { %v364_v41 = vmul.f32 %v3784_v37, %v363_v39 }
 0x1a9   :  { %v365_v43 = vadd.f32 %v3784_v37, %v364_v41 }
 0x1ab   :  { %v369_v46 = vsel %vm368_vm7, %v3784_v37, %v365_v43 }
 0x1ac   :  { %v374_v47 = vsel %vm371_vm8, %v373_v45, %v369_v46 }
 0x1ad   :  { %v386_v48 = vmul.f32 %v384_v44, %v374_v47  ;;  %v393_v53 = vsub.f32 1.0, %v374_v47  ;;  %v399_v55 = vmul.f32 0.0, %v374_v47 }
 0x1af   :  { %388 = vrot.lane.b32.xlu2 %v386_v48, %s4047_s18 }
 0x209   :  { %v389_v49 = vpop.permute.xlu2 %388 }
 0x20a   :  { %v391_v50 = vadd.f32 %v389_v49, %v309_v32 }
 0x20c   :  { %3785 = vtanh.f32 %v391_v50 }
 0x212   :  { %v3786_v51 = vpop.eup %3785 }
 0x213   :  { %395 = vrot.lane.b32.xlu2 %v3786_v51, %s4051_s27 }
 0x21b   :  { %146 = vperm.xlu2 %3767, %v131_v52  }
 0x26d   :  { %v396_v54 = vpop.permute.xlu2 %395 }
 0x26e   :  { %v398_v56 = vmul.f32 %v396_v54, %v393_v53 }
 0x270   :  { %v4145_v57 = vadd.f32 %v399_v55, %v398_v56 }
 0x272   :  { %v401_v58 = vpack.c.bf16 %v4145_v57, %v4145_v57 }
 0x274   :  { %403 = vrot.lane.b32.xlu0 %v401_v58, %s4051_s27 }
 0x275   :  { %v147_v61 = vpop.permute.xlu2 %146 }
 0x276   :  { %vm165_vm9 = vcmp.eq.s32.totalorder %v147_v61, %v4118_v15 }
 0x277   :  { %v173_v63 = vsel %vm165_vm9, 1.0, %v4048_v17 }
 0x27c   :  { %149 = vperm.xlu0 %3766, %v132_v59  }
 0x2e6   :  { %v404_v60 = vpop.permute.xlu0 %403 }
 0x2e7   :  { %3334 = vmatmul.msk.bf16.vlgmr.msra.gmra.mxu3 %vm286_vm4, %v404_v60 }
 0x2e8   :  { %654 = vmatpush.bf16.msra.mxu3 %v4102_v10 }
 0x2ec   :  { %655 = vmatpush.bf16.msra.mxu3 %v4105_v12 }
 0x2ee   :  { %v150_v62 = vpop.permute.xlu0 %149 }
 0x2ef   :  { %vm166_vm10 = vcmp.eq.s32.totalorder %v150_v62, %v4118_v15 }
 0x2f0   :  { %v174_v1 = vsel %vm166_vm10, 1.0, %v4048_v17 }
 0x2f1   :  { %v180_v2 = vpack.c.bf16 %v174_v1, %v173_v63 }
 0x2f3   :  { %3310 = vmatmul.msk.bf16.gmra.mxu0 %vm211_vm3, %v180_v2 }
 0x36a   :  { %v417_v3 = vpop.f32.mrf.mxu3 }
 0x36b   :  { %v441_v4 = vadd.f32 %v417_v3, %v4133_v23  ;;  %v421_v13 = vadd.f32 %v417_v3, %v311_v11 }
 0x36d   :  { %443 = vrot.lane.b32.xlu1 %v441_v4, %s4047_s18  ;;  %v3335_v14 = vmul.f32 -1.442695, %v421_v13 }
 0x36f   :  { %3787 = vpow2.f32 %v3335_v14  ;;  %v134_v14 = vld [vmem:[%s4087_s5 + $0x28] sm:$0xff] }
 0x370   :  { %v242_v5 = vpop.f32.mrf.mxu0 }
 0x372   :  { %v419_v6 = vpop.f32.mrf.mxu3 }
 0x375   :  { %v3788_v16 = vpop.eup %3787 }
 0x376   :  { %v425_v18 = vadd.f32 1.0, %v3788_v16 }
 0x378   :  { %v244_v7 = vpop.f32.mrf.mxu0  ;;  %3789 = vrcp.f32 %v425_v18  ;;  %v437_v25 = vand.u32 2147483648, %v425_v18  ;;  %vm431_vm12 = vweird.f32 %v425_v18  ;;  %v435_v26 = vand.u32 2147483647, %v425_v18 }
 0x379   :  { %v268_v8 = vpack.c.bf16 %v244_v7, %v242_v5  ;;  %v133_v5 = vld [vmem:[%s4087_s5 + $0x20] sm:$0xff] }
 0x37a   :  { %v438_v28 = vor.u32 1.1754944e-38, %v437_v25  ;;  %vm436_vm14 = vcmp.eq.f32.partialorder %v435_v26, 8.507059e+37 }
 0x37b   :  { %3322 = vmatmul.msk.bf16.gmra.mxu1 %vm286_vm4, %v268_v8 }
 0x37e   :  { %v3790_v19 = vpop.eup %3789 }
 0x37f   :  { %v427_v20 = vmul.f32 %v3790_v19, %v425_v18  ;;  %vm432_vm11 = vweird.f32 %v3790_v19 }
 0x380   :  { %vm433_vm13 = vmor %vm431_vm12, %vm432_vm11 }
 0x381   :  { %v428_v21 = vsub.f32 1.0, %v427_v20 }
 0x383   :  { %v429_v22 = vmul.f32 %v3790_v19, %v428_v21 }
 0x385   :  { %v430_v24 = vadd.f32 %v3790_v19, %v429_v22 }
 0x387   :  { %v434_v27 = vsel %vm433_vm13, %v3790_v19, %v430_v24 }
 0x388   :  { %v439_v31 = vsel %vm436_vm14, %v438_v28, %v434_v27 }
 0x389   :  { %v453_v36 = vsub.f32 1.0, %v439_v31  ;;  %v459_v38 = vmul.f32 %v439_v31, %v4145_v57 }
 0x3df   :  { %v444_v29 = vpop.permute.xlu1 %443 }
 0x3e0   :  { %v446_v32 = vmul.f32 %v444_v29, %v439_v31 }
 0x3e2   :  { %448 = vrot.lane.b32.xlu1 %v446_v32, %s4047_s18 }
 0x3f8   :  { %v313_v46 = vpop.f32.mrf.mxu1 }
 0x3f9   :  { %v314_v47 = vadd.f32 %v4139_v30, %v313_v46 }
 0x400   :  { %v315_v28 = vpop.f32.mrf.mxu1 }
 0x401   :  { %v316_v29 = vadd.f32 %v4139_v30, %v315_v28 }
 0x454   :  { %v449_v33 = vpop.permute.xlu1 %448 }
 0x455   :  { %v451_v34 = vadd.f32 %v449_v33, %v311_v11 }
 0x457   :  { %3791 = vtanh.f32 %v451_v34 }
 0x45d   :  { %v3792_v35 = vpop.eup %3791 }
 0x45e   :  { %455 = vrot.lane.b32.xlu2 %v3792_v35, %s4051_s27 }
 0x4b8   :  { %v456_v37 = vpop.permute.xlu2 %455 }
 0x4b9   :  { %v458_v39 = vmul.f32 %v456_v37, %v453_v36 }
 0x4bb   :  { %v4166_v40 = vadd.f32 %v459_v38, %v458_v39 }
 0x4bd   :  { %v461_v41 = vpack.c.bf16 %v4166_v40, %v4166_v40 }
 0x4bf   :  { %463 = vrot.lane.b32.xlu0 %v461_v41, %s4051_s27 }
 0x531   :  { %v464_v42 = vpop.permute.xlu0 %463 }
 0x532   :  { %3336 = vmatmul.msk.bf16.vlgmr.msrb.gmra.mxu2 %vm286_vm4, %v464_v42 }
 0x533   :  { %714 = vmatpush.bf16.msrb.mxu2 %v4102_v10 }
 0x537   :  { %715 = vmatpush.bf16.msrb.mxu2 %v4105_v12 }
 0x5b5   :  { %v477_v43 = vpop.f32.mrf.mxu2 }
 0x5b6   :  { %v501_v44 = vadd.f32 %v477_v43, %v4133_v23  ;;  %v481_v48 = vadd.f32 %v477_v43, %v314_v47 }
 0x5b8   :  { %503 = vrot.lane.b32.xlu1 %v501_v44, %s4047_s18  ;;  %v3337_v49 = vmul.f32 -1.442695, %v481_v48 }
 0x5ba   :  { %3793 = vpow2.f32 %v3337_v49 }
 0x5bd   :  { %v479_v45 = vpop.f32.mrf.mxu2 }
 0x5c0   :  { %v3794_v50 = vpop.eup %3793 }
 0x5c1   :  { %v485_v51 = vadd.f32 1.0, %v3794_v50 }
 0x5c3   :  { %3795 = vrcp.f32 %v485_v51  ;;  %v497_v58 = vand.u32 2147483648, %v485_v51  ;;  %vm491_vm0 = vweird.f32 %v485_v51  ;;  %v495_v59 = vand.u32 2147483647, %v485_v51 }
 0x5c5   :  { %v498_v61 = vor.u32 1.1754944e-38, %v497_v58  ;;  %vm496_vm2 = vcmp.eq.f32.partialorder %v495_v59, 8.507059e+37 }
 0x5c9   :  { %v3796_v52 = vpop.eup %3795 }
 0x5ca   :  { %v487_v53 = vmul.f32 %v3796_v52, %v485_v51  ;;  %vm492_vm15 = vweird.f32 %v3796_v52 }
 0x5cb   :  { %vm493_vm1 = vmor %vm491_vm0, %vm492_vm15 }
 0x5cc   :  { %v488_v54 = vsub.f32 1.0, %v487_v53 }
 0x5ce   :  { %v489_v55 = vmul.f32 %v3796_v52, %v488_v54 }
 0x5d0   :  { %v490_v56 = vadd.f32 %v3796_v52, %v489_v55 }
 0x5d2   :  { %v494_v60 = vsel %vm493_vm1, %v3796_v52, %v490_v56 }
 0x5d3   :  { %v499_v63 = vsel %vm496_vm2, %v498_v61, %v494_v60 }
 0x5d4   :  { %v513_v6 = vsub.f32 1.0, %v499_v63  ;;  %v519_v8 = vmul.f32 %v499_v63, %v4166_v40 }
 0x62a   :  { %v504_v62 = vpop.permute.xlu1 %503 }
 0x62b   :  { %v506_v1 = vmul.f32 %v504_v62, %v499_v63 }
 0x62d   :  { %508 = vrot.lane.b32.xlu2 %v506_v1, %s4047_s18 }
 0x687   :  { %v509_v2 = vpop.permute.xlu2 %508 }
 0x688   :  { %v511_v3 = vadd.f32 %v509_v2, %v314_v47 }
 0x68a   :  { %3797 = vtanh.f32 %v511_v3 }
 0x690   :  { %v3798_v4 = vpop.eup %3797 }
 0x691   :  { %515 = vrot.lane.b32.xlu0 %v3798_v4, %s4051_s27 }
 0x699   :  { %152 = vperm.xlu0 %3766, %v133_v5  }
 0x703   :  { %v516_v7 = vpop.permute.xlu0 %515 }
 0x704   :  { %v518_v9 = vmul.f32 %v516_v7, %v513_v6 }
 0x706   :  { %v4181_v11 = vadd.f32 %v519_v8, %v518_v9 }
 0x708   :  { %v521_v13 = vpack.c.bf16 %v4181_v11, %v4181_v11 }
 0x70a   :  { %523 = vrot.lane.b32.xlu1 %v521_v13, %s4051_s27 }
 0x70b   :  { %v153_v18 = vpop.permute.xlu0 %152 }
 0x70c   :  { %vm167_vm5 = vcmp.eq.s32.totalorder %v153_v18, %v4118_v15 }
 0x70d   :  { %v175_v20 = vsel %vm167_vm5, 1.0, %v4048_v17 }
 0x712   :  { %155 = vperm.xlu1 %3768, %v134_v14  }
 0x77c   :  { %v524_v16 = vpop.permute.xlu1 %523 }
 0x77d   :  { %3338 = vmatmul.msk.bf16.vlgmr.msrb.gmra.mxu3 %vm286_vm4, %v524_v16 }
 0x77e   :  { %774 = vmatpush.bf16.msrb.mxu3 %v4102_v10 }
 0x782   :  { %775 = vmatpush.bf16.msrb.mxu3 %v4105_v12 }
 0x784   :  { %v156_v19 = vpop.permute.xlu1 %155 }
 0x785   :  { %vm168_vm6 = vcmp.eq.s32.totalorder %v156_v19, %v4118_v15 }
 0x786   :  { %v176_v21 = vsel %vm168_vm6, 1.0, %v4048_v17 }
 0x787   :  { %v181_v22 = vpack.c.bf16 %v176_v21, %v175_v20 }
 0x789   :  { %3311 = vmatmul.msk.bf16.gmra.mxu0 %vm211_vm3, %v181_v22 }
 0x800   :  { %v537_v24 = vpop.f32.mrf.mxu3 }
 0x801   :  { %v561_v25 = vadd.f32 %v537_v24, %v4133_v23  ;;  %v541_v31 = vadd.f32 %v537_v24, %v316_v29 }
 0x803   :  { %563 = vrot.lane.b32.xlu2 %v561_v25, %s4047_s18  ;;  %v3339_v32 = vmul.f32 -1.442695, %v541_v31 }
 0x805   :  { %3799 = vpow2.f32 %v3339_v32  ;;  %v136_v32 = vld [vmem:[%s4087_s5 + $0x38] sm:$0xff] }
 0x806   :  { %v247_v10 = vpop.f32.mrf.mxu0 }
 0x808   :  { %v539_v26 = vpop.f32.mrf.mxu3 }
 0x80b   :  { %v3800_v33 = vpop.eup %3799 }
 0x80c   :  { %v545_v34 = vadd.f32 1.0, %v3800_v33 }
 0x80e   :  { %v249_v12 = vpop.f32.mrf.mxu0  ;;  %3801 = vrcp.f32 %v545_v34  ;;  %v557_v41 = vand.u32 2147483648, %v545_v34  ;;  %vm551_vm8 = vweird.f32 %v545_v34  ;;  %v555_v42 = vand.u32 2147483647, %v545_v34 }
 0x80f   :  { %v269_v27 = vpack.c.bf16 %v249_v12, %v247_v10  ;;  %v135_v10 = vld [vmem:[%s4087_s5 + $0x30] sm:$0xff]  ;;  %s4241_s5 = sld [smem:[%s4942_s0 + %s4053_s2]]   ;;  %s4060_s2 = smov 11  }
 0x810   :  { %v558_v44 = vor.u32 1.1754944e-38, %v557_v41  ;;  %vm556_vm10 = vcmp.eq.f32.partialorder %v555_v42, 8.507059e+37  ;;  %s3277_s6 = sld [smem:[%s4942_s0 + %s4060_s2]]   ;;  %s4075_s2 = smov 28  }
 0x811   :  { %3323 = vmatmul.msk.bf16.gmra.mxu1 %vm286_vm4, %v269_v27 }
 0x814   :  { %v3802_v35 = vpop.eup %3801 }
 0x815   :  { %v547_v36 = vmul.f32 %v3802_v35, %v545_v34  ;;  %vm552_vm7 = vweird.f32 %v3802_v35 }
 0x816   :  { %vm553_vm9 = vmor %vm551_vm8, %vm552_vm7 }
 0x817   :  { %v548_v37 = vsub.f32 1.0, %v547_v36 }
 0x819   :  { %v549_v38 = vmul.f32 %v3802_v35, %v548_v37 }
 0x81b   :  { %v550_v39 = vadd.f32 %v3802_v35, %v549_v38 }
 0x81d   :  { %v554_v43 = vsel %vm553_vm9, %v3802_v35, %v550_v39 }
 0x81e   :  { %v559_v46 = vsel %vm556_vm10, %v558_v44, %v554_v43 }
 0x81f   :  { %v573_v51 = vsub.f32 1.0, %v559_v46  ;;  %v579_v53 = vmul.f32 %v559_v46, %v4181_v11 }
 0x85d   :  { %v564_v45 = vpop.permute.xlu2 %563 }
 0x85e   :  { %v566_v47 = vmul.f32 %v564_v45, %v559_v46 }
 0x860   :  { %568 = vrot.lane.b32.xlu2 %v566_v47, %s4047_s18 }
 0x88e   :  { %v318_v62 = vpop.f32.mrf.mxu1 }
 0x88f   :  { %v319_v63 = vadd.f32 %v4139_v30, %v318_v62 }
 0x896   :  { %v320_v46 = vpop.f32.mrf.mxu1 }
 0x8ba   :  { %v569_v48 = vpop.permute.xlu2 %568 }
 0x8bb   :  { %v571_v49 = vadd.f32 %v569_v48, %v316_v29 }
 0x8bd   :  { %3803 = vtanh.f32 %v571_v49 }
 0x8c3   :  { %v3804_v50 = vpop.eup %3803 }
 0x8c4   :  { %575 = vrot.lane.b32.xlu0 %v3804_v50, %s4051_s27 }
 0x936   :  { %v576_v52 = vpop.permute.xlu0 %575 }
 0x937   :  { %v578_v54 = vmul.f32 %v576_v52, %v573_v51 }
 0x939   :  { %v4202_v55 = vadd.f32 %v579_v53, %v578_v54 }
 0x93b   :  { %v581_v56 = vpack.c.bf16 %v4202_v55, %v4202_v55 }
 0x93d   :  { %583 = vrot.lane.b32.xlu1 %v581_v56, %s4051_s27 }
 0x9af   :  { %v584_v58 = vpop.permute.xlu1 %583 }
 0x9b0   :  { %3340 = vmatmul.msk.bf16.vlgmr.msra.gmra.mxu2 %vm286_vm4, %v584_v58 }
 0xa33   :  { %v597_v59 = vpop.f32.mrf.mxu2 }
 0xa34   :  { %v621_v60 = vadd.f32 %v597_v59, %v4133_v23  ;;  %v601_v1 = vadd.f32 %v597_v59, %v319_v63 }
 0xa36   :  { %623 = vrot.lane.b32.xlu2 %v621_v60, %s4047_s18  ;;  %v3341_v2 = vmul.f32 -1.442695, %v601_v1  ;;  %v831_v1 = vpack.c.bf16 %v4166_v40, %v4145_v57 }
 0xa38   :  { %3805 = vpow2.f32 %v3341_v2  ;;  %v3672_v2 = vld [vmem:[%s3273_s1 + $0x8] sm:$0xff] }
 0xa39   :  { %880 = vmatpush.bf16.msrb.mxu1 %v3672_v2 }
 0xa3b   :  { %v599_v61 = vpop.f32.mrf.mxu2 }
 0xa3e   :  { %v3806_v3 = vpop.eup %3805 }
 0xa3f   :  { %v605_v4 = vadd.f32 1.0, %v3806_v3  ;;  %v3671_v3 = vld [vmem:[%s3273_s1] sm:$0xff]  ;;  %s4429_s1 = sld [smem:[%s4942_s0 + %s4059_s28]]   ;;  %s4074_s28 = smov 27  }
 0xa40   :  { %881 = vmatpush.bf16.msrb.mxu1 %v3671_v3 }
 0xa41   :  { %3807 = vrcp.f32 %v605_v4  ;;  %v617_v13 = vand.u32 2147483648, %v605_v4  ;;  %vm611_vm12 = vweird.f32 %v605_v4  ;;  %v615_v14 = vand.u32 2147483647, %v605_v4 }
 0xa43   :  { %v618_v18 = vor.u32 1.1754944e-38, %v617_v13  ;;  %vm616_vm14 = vcmp.eq.f32.partialorder %v615_v14, 8.507059e+37 }
 0xa47   :  { %v3808_v5 = vpop.eup %3807 }
 0xa48   :  { %v607_v6 = vmul.f32 %v3808_v5, %v605_v4  ;;  %vm612_vm11 = vweird.f32 %v3808_v5 }
 0xa49   :  { %vm613_vm13 = vmor %vm611_vm12, %vm612_vm11 }
 0xa4a   :  { %v608_v7 = vsub.f32 1.0, %v607_v6 }
 0xa4c   :  { %v609_v8 = vmul.f32 %v3808_v5, %v608_v7 }
 0xa4e   :  { %v610_v9 = vadd.f32 %v3808_v5, %v609_v8 }
 0xa50   :  { %v614_v16 = vsel %vm613_vm13, %v3808_v5, %v610_v9 }
 0xa51   :  { %v619_v20 = vsel %vm616_vm14, %v618_v18, %v614_v16  ;;  %v4257_v16 = vld [vmem:[%s3274_s13 + $0x8] sm:$0xff]  ;;  %v4260_v18 = vld [vmem:[%s3274_s13] sm:$0xff] }
 0xa52   :  { %v633_v26 = vsub.f32 1.0, %v619_v20  ;;  %v639_v27 = vmul.f32 %v619_v20, %v4202_v55  ;;  %921 = vmatpush.bf16.msra.mxu2 %v4257_v16  ;;  %1046 = vmatpush.bf16.msrb.mxu0 %v4257_v16 }
 0xa56   :  { %922 = vmatpush.bf16.msra.mxu2 %v4260_v18  ;;  %1047 = vmatpush.bf16.msrb.mxu0 %v4260_v18 }
 0xa5a   :  { %1226 = vmatpush.bf16.msra.mxu0 %v4257_v16 }
 0xa5e   :  { %1227 = vmatpush.bf16.msra.mxu0 %v4260_v18 }
 0xa90   :  { %v624_v19 = vpop.permute.xlu2 %623 }
 0xa91   :  { %v626_v21 = vmul.f32 %v624_v19, %v619_v20  ;;  %v3772_v19 = vld [vmem:[%s3276_s9] ss:$0 sm:$0xff]  ;;  %s3295_s9 = sld [smem:[%s4942_s0 + %s4076_s7]]  }
 0xa93   :  { %628 = vrot.lane.b32.xlu0 %v626_v21, %s4047_s18 }
 0xb05   :  { %v629_v22 = vpop.permute.xlu0 %628 }
 0xb06   :  { %v631_v24 = vadd.f32 %v629_v22, %v319_v63 }
 0xb08   :  { %3809 = vtanh.f32 %v631_v24 }
 0xb0e   :  { %v3810_v25 = vpop.eup %3809 }
 0xb0f   :  { %635 = vrot.lane.b32.xlu1 %v3810_v25, %s4051_s27 }
 0xb17   :  { %158 = vperm.xlu1 %3768, %v135_v10  }
 0xb81   :  { %v636_v12 = vpop.permute.xlu1 %635 }
 0xb82   :  { %v638_v28 = vmul.f32 %v636_v12, %v633_v26 }
 0xb84   :  { %v4215_v29 = vadd.f32 %v639_v27, %v638_v28 }
 0xb86   :  { %v641_v31 = vpack.c.bf16 %v4215_v29, %v4215_v29 }
 0xb88   :  { %643 = vrot.lane.b32.xlu2 %v641_v31, %s4051_s27 }
 0xb89   :  { %v159_v34 = vpop.permute.xlu1 %158 }
 0xb8a   :  { %vm169_vm15 = vcmp.eq.s32.totalorder %v159_v34, %v4118_v15 }
 0xb8b   :  { %v177_v36 = vsel %vm169_vm15, 1.0, %v4048_v17 }
 0xb90   :  { %161 = vperm.xlu2 %3767, %v136_v32  }
 0xbe2   :  { %v644_v33 = vpop.permute.xlu2 %643 }
 0xbe3   :  { %3342 = vmatmul.msk.bf16.vlgmr.msra.gmra.mxu3 %vm286_vm4, %v644_v33 }
 0xbe4   :  { %986 = vmatpush.bf16.msra.mxu3 %v4257_v16 }
 0xbe8   :  { %987 = vmatpush.bf16.msra.mxu3 %v4260_v18 }
 0xbea   :  { %v162_v35 = vpop.permute.xlu2 %161 }
 0xbeb   :  { %vm170_vm0 = vcmp.eq.s32.totalorder %v162_v35, %v4118_v15  ;;  %v321_v15 = vadd.f32 %v4139_v30, %v320_v46 }
 0xbec   :  { %v178_v37 = vsel %vm170_vm0, 1.0, %v4048_v17 }
 0xbed   :  { %v182_v38 = vpack.c.bf16 %v178_v37, %v177_v36 }
 0xbef   :  { %3312 = vmatmul.msk.bf16.gmra.mxu0 %vm211_vm3, %v182_v38  ;;  %v4286_v38 = vld [vmem:[%s4241_s5] ss:$0 sm:$0xff] }
 0xc66   :  { %v657_v39 = vpop.f32.mrf.mxu3 }
 0xc67   :  { %v681_v41 = vadd.f32 %v657_v39, %v4133_v23  ;;  %v661_v47 = vadd.f32 %v657_v39, %v321_v15 }
 0xc69   :  { %683 = vrot.lane.b32.xlu0 %v681_v41, %s4047_s18  ;;  %v3343_v48 = vmul.f32 -1.442695, %v661_v47 }
 0xc6b   :  { %3811 = vpow2.f32 %v3343_v48 }
 0xc6c   :  { %v252_v42 = vpop.f32.mrf.mxu0 }
 0xc6e   :  { %v659_v43 = vpop.f32.mrf.mxu3 }
 0xc71   :  { %v3812_v17 = vpop.eup %3811 }
 0xc72   :  { %v665_v49 = vadd.f32 1.0, %v3812_v17 }
 0xc74   :  { %v254_v44 = vpop.f32.mrf.mxu0  ;;  %3813 = vrcp.f32 %v665_v49  ;;  %v677_v56 = vand.u32 2147483648, %v665_v49  ;;  %vm671_vm1 = vweird.f32 %v665_v49  ;;  %v675_v58 = vand.u32 2147483647, %v665_v49 }
 0xc75   :  { %v270_v45 = vpack.c.bf16 %v254_v44, %v252_v42 }
 0xc76   :  { %v678_v60 = vor.u32 1.1754944e-38, %v677_v56  ;;  %vm676_vm5 = vcmp.eq.f32.partialorder %v675_v58, 8.507059e+37 }
 0xc77   :  { %3324 = vmatmul.msk.bf16.gmra.mxu1 %vm286_vm4, %v270_v45 }
 0xc7a   :  { %v3814_v50 = vpop.eup %3813 }
 0xc7b   :  { %v667_v51 = vmul.f32 %v3814_v50, %v665_v49  ;;  %vm672_vm3 = vweird.f32 %v3814_v50 }
 0xc7c   :  { %vm673_vm2 = vmor %vm671_vm1, %vm672_vm3 }
 0xc7d   :  { %v668_v52 = vsub.f32 1.0, %v667_v51 }
 0xc7f   :  { %v669_v53 = vmul.f32 %v3814_v50, %v668_v52 }
 0xc81   :  { %v670_v54 = vadd.f32 %v3814_v50, %v669_v53 }
 0xc83   :  { %v674_v59 = vsel %vm673_vm2, %v3814_v50, %v670_v54 }
 0xc84   :  { %v679_v62 = vsel %vm676_vm5, %v678_v60, %v674_v59 }
 0xc85   :  { %v693_v6 = vsub.f32 1.0, %v679_v62  ;;  %v699_v8 = vmul.f32 %v679_v62, %v4215_v29 }
 0xcdb   :  { %v684_v61 = vpop.permute.xlu0 %683 }
 0xcdc   :  { %v686_v63 = vmul.f32 %v684_v61, %v679_v62 }
 0xcde   :  { %688 = vrot.lane.b32.xlu0 %v686_v63, %s4047_s18 }
 0xce6   :  { %842 = vrot.lane.b32.xlu0 %v831_v1, %s4051_s27 }
 0xcf4   :  { %v323_v27 = vpop.f32.mrf.mxu1 }
 0xcf5   :  { %v324_v28 = vadd.f32 %v4139_v30, %v323_v27 }
 0xcfc   :  { %v4283_v36 = vpop.f32.mrf.mxu1 }
 0xd50   :  { %v689_v4 = vpop.permute.xlu0 %688 }
 0xd51   :  { %v691_v5 = vadd.f32 %v689_v4, %v321_v15 }
 0xd53   :  { %3815 = vtanh.f32 %v691_v5 }
 0xd58   :  { %v843_v57 = vpop.permute.xlu0 %842 }
 0xd59   :  { %v3816_v40 = vpop.eup %3815  ;;  %3356 = vmatmul.msk.bf16.vlgmr.msrb.gmra.mxu1 %vm286_vm4, %v843_v57 }
 0xd5a   :  { %695 = vrot.lane.b32.xlu1 %v3816_v40, %s4051_s27 }
 0xd62   :  { %950 = vrot.lane.b32.xlu1 %v3772_v19, %s4047_s18 }
 0xdcc   :  { %v696_v7 = vpop.permute.xlu1 %695 }
 0xdcd   :  { %v698_v9 = vmul.f32 %v696_v7, %v693_v6 }
 0xdcf   :  { %v4249_v13 = vadd.f32 %v699_v8, %v698_v9 }
 0xdd1   :  { %v701_v14 = vpack.c.bf16 %v4249_v13, %v4249_v13 }
 0xdd3   :  { %703 = vrot.lane.b32.xlu2 %v701_v14, %s4051_s27 }
 0xdd4   :  { %v4278_v25 = vpop.permute.xlu1 %950 }
 0xdd6   :  { %v883_v41 = vpop.f32.mrf.mxu1 }
 0xdd7   :  { %v884_v42 = vadd.f32 %v4286_v38, %v883_v41 }
 0xe2d   :  { %v704_v20 = vpop.permute.xlu2 %703 }
 0xe2e   :  { %3344 = vmatmul.msk.bf16.vlgmr.msrb.gmra.mxu2 %vm286_vm4, %v704_v20 }
 0xe2f   :  { %1106 = vmatpush.bf16.msrb.mxu2 %v4257_v16 }
 0xe33   :  { %1107 = vmatpush.bf16.msrb.mxu2 %v4260_v18 }
 0xe3e   :  { %923 = vmatmul.bf16.vlgmr.msra.gmra.mxu2 %v4043_v0 }
 0xe3f   :  { %1286 = vmatpush.bf16.msra.mxu2 %v4257_v16 }
 0xe43   :  { %1287 = vmatpush.bf16.msra.mxu2 %v4260_v18 }
 0xeb1   :  { %v717_v21 = vpop.f32.mrf.mxu2 }
 0xeb2   :  { %v741_v22 = vadd.f32 %v717_v21, %v4133_v23  ;;  %v721_v31 = vadd.f32 %v717_v21, %v324_v28 }
 0xeb4   :  { %743 = vrot.lane.b32.xlu2 %v741_v22, %s4047_s18  ;;  %v3345_v32 = vmul.f32 -1.442695, %v721_v31 }
 0xeb6   :  { %3817 = vpow2.f32 %v3345_v32 }
 0xeb9   :  { %v719_v24 = vpop.f32.mrf.mxu2 }
 0xebc   :  { %v3818_v33 = vpop.eup %3817 }
 0xebd   :  { %v725_v34 = vadd.f32 1.0, %v3818_v33 }
 0xebf   :  { %3819 = vrcp.f32 %v725_v34  ;;  %v737_v30 = vand.u32 2147483648, %v725_v34  ;;  %vm731_vm7 = vweird.f32 %v725_v34  ;;  %v735_v15 = vand.u32 2147483647, %v725_v34 }
 0xec1   :  { %v924_v10 = vpop.f32.mrf.mxu2  ;;  %v738_v48 = vor.u32 1.1754944e-38, %v737_v30  ;;  %vm736_vm9 = vcmp.eq.f32.partialorder %v735_v15, 8.507059e+37 }
 0xec2   :  { %v953_v26 = vadd.f32 %v4278_v25, %v924_v10  ;;  %v928_v44 = vadd.f32 %v924_v10, %v884_v42 }
 0xec4   :  { %955 = vrot.lane.b32.xlu0 %v953_v26, %s4047_s18  ;;  %v3368_v46 = vmul.f32 -1.442695, %v928_v44 }
 0xec5   :  { %v3820_v35 = vpop.eup %3819 }
 0xec6   :  { %v727_v37 = vmul.f32 %v3820_v35, %v725_v34  ;;  %vm732_vm6 = vweird.f32 %v3820_v35  ;;  %3821 = vpow2.f32 %v3368_v46 }
 0xec7   :  { %vm733_vm8 = vmor %vm731_vm7, %vm732_vm6 }
 0xec8   :  { %v728_v39 = vsub.f32 1.0, %v727_v37 }
 0xec9   :  { %v926_v12 = vpop.f32.mrf.mxu2 }
 0xeca   :  { %v729_v43 = vmul.f32 %v3820_v35, %v728_v39  ;;  %v885_v39 = vpop.f32.mrf.mxu1 }
 0xecb   :  { %v886_v41 = vadd.f32 %v4286_v38, %v885_v39 }
 0xecc   :  { %v730_v45 = vadd.f32 %v3820_v35, %v729_v43  ;;  %v3822_v51 = vpop.eup %3821 }
 0xecd   :  { %v932_v52 = vadd.f32 1.0, %v3822_v51 }
 0xece   :  { %v734_v47 = vsel %vm733_vm8, %v3820_v35, %v730_v45 }
 0xecf   :  { %v739_v49 = vsel %vm736_vm9, %v738_v48, %v734_v47  ;;  %3823 = vrcp.f32 %v932_v52  ;;  %v944_v60 = vand.u32 2147483648, %v932_v52  ;;  %vm938_vm11 = vweird.f32 %v932_v52 }
 0xed0   :  { %v942_v61 = vand.u32 2147483647, %v932_v52  ;;  %v753_v8 = vsub.f32 1.0, %v739_v49  ;;  %v759_v14 = vmul.f32 %v739_v49, %v4249_v13 }
 0xed1   :  { %v945_v63 = vor.u32 1.1754944e-38, %v944_v60 }
 0xed2   :  { %vm943_vm13 = vcmp.eq.f32.partialorder %v942_v61, 8.507059e+37 }
 0xed5   :  { %v3824_v53 = vpop.eup %3823 }
 0xed6   :  { %v934_v54 = vmul.f32 %v3824_v53, %v932_v52  ;;  %vm939_vm10 = vweird.f32 %v3824_v53 }
 0xed7   :  { %vm940_vm12 = vmor %vm938_vm11, %vm939_vm10 }
 0xed8   :  { %v935_v56 = vsub.f32 1.0, %v934_v54 }
 0xeda   :  { %v936_v58 = vmul.f32 %v3824_v53, %v935_v56 }
 0xedc   :  { %v937_v59 = vadd.f32 %v3824_v53, %v936_v58 }
 0xede   :  { %v941_v62 = vsel %vm940_vm12, %v3824_v53, %v937_v59  ;;  %v832_v53 = vpack.c.bf16 %v4202_v55, %v4181_v11 }
 0xedf   :  { %v946_v2 = vsel %vm943_vm13, %v945_v63, %v941_v62 }
 0xee0   :  { %v965_v22 = vsub.f32 1.0, %v946_v2  ;;  %v971_v10 = vmul.f32 0.0, %v946_v2 }
 0xf0e   :  { %v744_v17 = vpop.permute.xlu2 %743 }
 0xf0f   :  { %v746_v50 = vmul.f32 %v744_v17, %v739_v49 }
 0xf11   :  { %748 = vrot.lane.b32.xlu1 %v746_v50, %s4047_s18 }
 0xf36   :  { %v956_v1 = vpop.permute.xlu0 %955 }
 0xf37   :  { %v958_v3 = vmul.f32 %v956_v1, %v946_v2 }
 0xf39   :  { %960 = vrot.lane.b32.xlu2 %v958_v3, %s4047_s18 }
 0xf83   :  { %v749_v4 = vpop.permute.xlu1 %748 }
 0xf84   :  { %v751_v5 = vadd.f32 %v749_v4, %v324_v28 }
 0xf86   :  { %3825 = vtanh.f32 %v751_v5 }
 0xf8c   :  { %v3826_v57 = vpop.eup %3825 }
 0xf8d   :  { %755 = vrot.lane.b32.xlu0 %v3826_v57, %s4051_s27 }
 0xf93   :  { %v961_v40 = vpop.permute.xlu2 %960 }
 0xf94   :  { %v963_v6 = vadd.f32 %v961_v40, %v884_v42 }
 0xf96   :  { %3827 = vtanh.f32 %v963_v6 }
 0xf9c   :  { %v3828_v7 = vpop.eup %3827 }
 0xf9d   :  { %967 = vrot.lane.b32.xlu1 %v3828_v7, %s4051_s27 }
 0xfff   :  { %v756_v9 = vpop.permute.xlu0 %755 }
0x1000   :  { %v758_v19 = vmul.f32 %v756_v9, %v753_v8 }
0x1002   :  { %v4294_v20 = vadd.f32 %v759_v14, %v758_v19 }
0x1004   :  { %v761_v21 = vpack.c.bf16 %v4294_v20, %v4294_v20 }
0x1006   :  { %763 = vrot.lane.b32.xlu2 %v761_v21, %s4051_s27 }
0x100f   :  { %v968_v24 = vpop.permute.xlu1 %967 }
0x1010   :  { %v970_v26 = vmul.f32 %v968_v24, %v965_v22 }
0x1012   :  { %v972_v12 = vadd.f32 %v971_v10, %v970_v26 }
0x1014   :  { %v973_v27 = vpack.c.bf16 %v972_v12, %v972_v12 }
0x1016   :  { %975 = vrot.lane.b32.xlu0 %v973_v27, %s4051_s27 }
0x1060   :  { %v764_v28 = vpop.permute.xlu2 %763 }
0x1061   :  { %3346 = vmatmul.msk.bf16.vlgmr.msrb.gmra.mxu3 %vm286_vm4, %v764_v28 }
0x1062   :  { %1166 = vmatpush.bf16.msrb.mxu3 %v4257_v16 }
0x1066   :  { %1167 = vmatpush.bf16.msrb.mxu3 %v4260_v18 }
0x1088   :  { %v976_v31 = vpop.permute.xlu0 %975 }
0x1089   :  { %3369 = vmatmul.msk.bf16.vlgmr.msra.gmra.mxu3 %vm286_vm4, %v976_v31 }
0x108a   :  { %1346 = vmatpush.bf16.msra.mxu3 %v4257_v16 }
0x108e   :  { %1347 = vmatpush.bf16.msra.mxu3 %v4260_v18 }
0x10e4   :  { %v4306_v32 = vpop.f32.mrf.mxu3 }
0x10ec   :  { %v779_v33 = vpop.f32.mrf.mxu3 }
0x110c   :  { %v989_v34 = vpop.f32.mrf.mxu3 }
0x110d   :  { %v1013_v35 = vadd.f32 %v989_v34, %v4278_v25  ;;  %v993_v42 = vadd.f32 %v989_v34, %v886_v41 }
0x110f   :  { %1015 = vrot.lane.b32.xlu1 %v1013_v35, %s4047_s18  ;;  %v3370_v43 = vmul.f32 -1.442695, %v993_v42 }
0x1111   :  { %3829 = vpow2.f32 %v3370_v43 }
0x1114   :  { %v991_v37 = vpop.f32.mrf.mxu3 }
0x1117   :  { %v3830_v44 = vpop.eup %3829 }
0x1118   :  { %v997_v45 = vadd.f32 1.0, %v3830_v44 }
0x111a   :  { %3831 = vrcp.f32 %v997_v45  ;;  %v1009_v47 = vand.u32 2147483648, %v997_v45  ;;  %vm1003_vm15 = vweird.f32 %v997_v45  ;;  %v1007_v48 = vand.u32 2147483647, %v997_v45 }
0x111c   :  { %v1010_v49 = vor.u32 1.1754944e-38, %v1009_v47  ;;  %vm1008_vm3 = vcmp.eq.f32.partialorder %v1007_v48, 8.507059e+37 }
0x1120   :  { %v3832_v16 = vpop.eup %3831 }
0x1121   :  { %v999_v18 = vmul.f32 %v3832_v16, %v997_v45  ;;  %vm1004_vm14 = vweird.f32 %v3832_v16 }
0x1122   :  { %vm1005_vm0 = vmor %vm1003_vm15, %vm1004_vm14 }
0x1123   :  { %v1000_v30 = vsub.f32 1.0, %v999_v18 }
0x1125   :  { %v1001_v46 = vmul.f32 %v3832_v16, %v1000_v30 }
0x1127   :  { %v1002_v15 = vadd.f32 %v3832_v16, %v1001_v46 }
0x1129   :  { %v1006_v17 = vsel %vm1005_vm0, %v3832_v16, %v1002_v15 }
0x112a   :  { %v1011_v51 = vsel %vm1008_vm3, %v1010_v49, %v1006_v17 }
0x112b   :  { %v1025_v60 = vsub.f32 1.0, %v1011_v51  ;;  %v1031_v62 = vmul.f32 %v1011_v51, %v972_v12 }
0x1181   :  { %v1016_v50 = vpop.permute.xlu1 %1015 }
0x1182   :  { %v1018_v52 = vmul.f32 %v1016_v50, %v1011_v51 }
0x1184   :  { %1020 = vrot.lane.b32.xlu2 %v1018_v52, %s4047_s18 }
0x118c   :  { %844 = vrot.lane.b32.xlu2 %v832_v53, %s4051_s27 }
0x11de   :  { %v1021_v54 = vpop.permute.xlu2 %1020 }
0x11df   :  { %v1023_v56 = vadd.f32 %v1021_v54, %v886_v41 }
0x11e1   :  { %3833 = vtanh.f32 %v1023_v56 }
0x11e6   :  { %v845_v58 = vpop.permute.xlu2 %844 }
0x11e7   :  { %v3834_v59 = vpop.eup %3833  ;;  %3357 = vmatmul.msk.bf16.gmra.mxu1 %vm286_vm4, %v845_v58 }
0x11e8   :  { %1027 = vrot.lane.b32.xlu0 %v3834_v59, %s4051_s27 }
0x125a   :  { %v1028_v61 = vpop.permute.xlu0 %1027 }
0x125b   :  { %v1030_v63 = vmul.f32 %v1028_v61, %v1025_v60 }
0x125d   :  { %v1032_v1 = vadd.f32 %v1031_v62, %v1030_v63 }
0x125f   :  { %v1033_v2 = vpack.c.bf16 %v1032_v1, %v1032_v1 }
0x1261   :  { %1035 = vrot.lane.b32.xlu1 %v1033_v2, %s4051_s27 }
0x1264   :  { %v888_v5 = vpop.f32.mrf.mxu1 }
0x1265   :  { %v889_v57 = vadd.f32 %v4286_v38, %v888_v5 }
0x126c   :  { %v890_v46 = vpop.f32.mrf.mxu1 }
0x126d   :  { %v891_v15 = vadd.f32 %v4286_v38, %v890_v46 }
0x12d3   :  { %v1036_v11 = vpop.permute.xlu1 %1035 }
0x12d4   :  { %3371 = vmatmul.msk.bf16.vlgmr.msrb.gmra.mxu0 %vm286_vm4, %v1036_v11 }
0x1351   :  { %v1049_v55 = vpop.f32.mrf.mxu0 }
0x1352   :  { %v1073_v3 = vadd.f32 %v1049_v55, %v4278_v25  ;;  %v1053_v40 = vadd.f32 %v1049_v55, %v889_v57 }
0x1354   :  { %1075 = vrot.lane.b32.xlu0 %v1073_v3, %s4047_s18  ;;  %v3372_v6 = vmul.f32 -1.442695, %v1053_v40 }
0x1356   :  { %3835 = vpow2.f32 %v3372_v6 }
0x1359   :  { %v1051_v4 = vpop.f32.mrf.mxu0 }
0x135c   :  { %v3836_v7 = vpop.eup %3835 }
0x135d   :  { %v1057_v8 = vadd.f32 1.0, %v3836_v7 }
0x135f   :  { %3837 = vrcp.f32 %v1057_v8  ;;  %v1069_v24 = vand.u32 2147483648, %v1057_v8  ;;  %vm1063_vm2 = vweird.f32 %v1057_v8  ;;  %v1067_v10 = vand.u32 2147483647, %v1057_v8 }
0x1361   :  { %v1070_v12 = vor.u32 1.1754944e-38, %v1069_v24  ;;  %vm1068_vm6 = vcmp.eq.f32.partialorder %v1067_v10, 8.507059e+37 }
0x1365   :  { %v3838_v9 = vpop.eup %3837 }
0x1366   :  { %v1059_v14 = vmul.f32 %v3838_v9, %v1057_v8  ;;  %vm1064_vm1 = vweird.f32 %v3838_v9 }
0x1367   :  { %vm1065_vm5 = vmor %vm1063_vm2, %vm1064_vm1 }
0x1368   :  { %v1060_v19 = vsub.f32 1.0, %v1059_v14 }
0x136a   :  { %v1061_v21 = vmul.f32 %v3838_v9, %v1060_v19 }
0x136c   :  { %v1062_v22 = vadd.f32 %v3838_v9, %v1061_v21 }
0x136e   :  { %v1066_v26 = vsel %vm1065_vm5, %v3838_v9, %v1062_v22 }
0x136f   :  { %v1071_v28 = vsel %vm1068_vm6, %v1070_v12, %v1066_v26 }
0x1370   :  { %v1085_v37 = vsub.f32 1.0, %v1071_v28  ;;  %v1091_v41 = vmul.f32 %v1071_v28, %v1032_v1  ;;  %v833_v1 = vpack.c.bf16 %v4249_v13, %v4215_v29 }
0x13c6   :  { %v1076_v27 = vpop.permute.xlu0 %1075 }
0x13c7   :  { %v1078_v31 = vmul.f32 %v1076_v27, %v1071_v28 }
0x13c9   :  { %1080 = vrot.lane.b32.xlu1 %v1078_v31, %s4047_s18 }
0x143b   :  { %v1081_v33 = vpop.permute.xlu1 %1080 }
0x143c   :  { %v1083_v34 = vadd.f32 %v1081_v33, %v889_v57 }
0x143e   :  { %3839 = vtanh.f32 %v1083_v34 }
0x1444   :  { %v3840_v35 = vpop.eup %3839 }
0x1445   :  { %1087 = vrot.lane.b32.xlu2 %v3840_v35, %s4051_s27 }
0x149f   :  { %v1088_v39 = vpop.permute.xlu2 %1087 }
0x14a0   :  { %v1090_v42 = vmul.f32 %v1088_v39, %v1085_v37 }
0x14a2   :  { %v1092_v43 = vadd.f32 %v1091_v41, %v1090_v42 }
0x14a4   :  { %v1093_v44 = vpack.c.bf16 %v1092_v43, %v1092_v43 }
0x14a6   :  { %1095 = vrot.lane.b32.xlu0 %v1093_v44, %s4051_s27 }
0x1518   :  { %v1096_v45 = vpop.permute.xlu0 %1095 }
0x1519   :  { %3373 = vmatmul.msk.bf16.vlgmr.msrb.gmra.mxu2 %vm286_vm4, %v1096_v45 }
0x159c   :  { %v1109_v16 = vpop.f32.mrf.mxu2 }
0x159d   :  { %v1133_v18 = vadd.f32 %v1109_v16, %v4278_v25  ;;  %v1113_v47 = vadd.f32 %v1109_v16, %v891_v15  ;;  %v801_v16 = vadd.f32 %v4306_v32, %v4133_v23 }
0x159f   :  { %1135 = vrot.lane.b32.xlu1 %v1133_v18, %s4047_s18  ;;  %v3374_v48 = vmul.f32 -1.442695, %v1113_v47 }
0x15a1   :  { %3841 = vpow2.f32 %v3374_v48 }
0x15a4   :  { %v1111_v30 = vpop.f32.mrf.mxu2 }
0x15a7   :  { %v3842_v17 = vpop.eup %3841 }
0x15a8   :  { %v1117_v49 = vadd.f32 1.0, %v3842_v17 }
0x15aa   :  { %3843 = vrcp.f32 %v1117_v49  ;;  %v1129_v56 = vand.u32 2147483648, %v1117_v49  ;;  %vm1123_vm8 = vweird.f32 %v1117_v49  ;;  %v1127_v58 = vand.u32 2147483647, %v1117_v49 }
0x15ac   :  { %v1130_v60 = vor.u32 1.1754944e-38, %v1129_v56  ;;  %vm1128_vm10 = vcmp.eq.f32.partialorder %v1127_v58, 8.507059e+37 }
0x15b0   :  { %v3844_v50 = vpop.eup %3843 }
0x15b1   :  { %v1119_v51 = vmul.f32 %v3844_v50, %v1117_v49  ;;  %vm1124_vm7 = vweird.f32 %v3844_v50  ;;  %v4041_v49 = vld [vmem:[%s4128_s22] ss:$0 sm:$0xff]  ;;  %s4383_s22 = sld [smem:[%s4942_s0 + %s4057_s19]]  }
0x15b2   :  { %vm1125_vm9 = vmor %vm1123_vm8, %vm1124_vm7 }
0x15b3   :  { %v1120_v52 = vsub.f32 1.0, %v1119_v51 }
0x15b5   :  { %v1121_v53 = vmul.f32 %v3844_v50, %v1120_v52 }
0x15b7   :  { %v1122_v54 = vadd.f32 %v3844_v50, %v1121_v53 }
0x15b9   :  { %v1126_v59 = vsel %vm1125_vm9, %v3844_v50, %v1122_v54  ;;  %v326_v50 = vadd.f32 %v4041_v49, %v4283_v36 }
0x15ba   :  { %v1131_v62 = vsel %vm1128_vm10, %v1130_v60, %v1126_v59 }
0x15bb   :  { %v1145_v4 = vsub.f32 1.0, %v1131_v62  ;;  %v1151_v57 = vmul.f32 %v1131_v62, %v1092_v43  ;;  %v781_v23 = vadd.f32 %v4306_v32, %v326_v50 }
0x15bd   :  { %v3347_v51 = vmul.f32 -1.442695, %v781_v23 }
0x1611   :  { %v1136_v61 = vpop.permute.xlu1 %1135 }
0x1612   :  { %v1138_v63 = vmul.f32 %v1136_v61, %v1131_v62 }
0x1614   :  { %1140 = vrot.lane.b32.xlu2 %v1138_v63, %s4047_s18 }
0x161c   :  { %846 = vrot.lane.b32.xlu2 %v833_v1, %s4051_s27 }
0x166e   :  { %v1141_v2 = vpop.permute.xlu2 %1140 }
0x166f   :  { %v1143_v11 = vadd.f32 %v1141_v2, %v891_v15 }
0x1671   :  { %3845 = vtanh.f32 %v1143_v11 }
0x1676   :  { %v847_v55 = vpop.permute.xlu2 %846 }
0x1677   :  { %v3846_v3 = vpop.eup %3845  ;;  %3358 = vmatmul.msk.bf16.gmra.mxu1 %vm286_vm4, %v847_v55 }
0x1678   :  { %1147 = vrot.lane.b32.xlu0 %v3846_v3, %s4051_s27 }
0x16ea   :  { %v1148_v5 = vpop.permute.xlu0 %1147 }
0x16eb   :  { %v1150_v40 = vmul.f32 %v1148_v5, %v1145_v4 }
0x16ed   :  { %v1152_v6 = vadd.f32 %v1151_v57, %v1150_v40 }
0x16ef   :  { %v1153_v7 = vpack.c.bf16 %v1152_v6, %v1152_v6 }
0x16f1   :  { %1155 = vrot.lane.b32.xlu1 %v1153_v7, %s4051_s27 }
0x16f4   :  { %v893_v14 = vpop.f32.mrf.mxu1 }
0x16f5   :  { %v894_v19 = vadd.f32 %v4286_v38, %v893_v14 }
0x16fc   :  { %v895_v4 = vpop.f32.mrf.mxu1 }
0x16fd   :  { %v896_v5 = vadd.f32 %v4286_v38, %v895_v4  ;;  %v1453_v4 = vld [vmem:[%s3278_s17] sm:$0x3] }
0x1763   :  { %v1156_v29 = vpop.permute.xlu1 %1155 }
0x1764   :  { %3375 = vmatmul.msk.bf16.vlgmr.msrb.gmra.mxu3 %vm286_vm4, %v1156_v29 }
0x17e7   :  { %v1169_v13 = vpop.f32.mrf.mxu3 }
0x17e8   :  { %v1193_v8 = vadd.f32 %v1169_v13, %v4278_v25  ;;  %v1173_v21 = vadd.f32 %v1169_v13, %v894_v19 }
0x17ea   :  { %1195 = vrot.lane.b32.xlu0 %v1193_v8, %s4047_s18  ;;  %v3376_v22 = vmul.f32 -1.442695, %v1173_v21 }
0x17ec   :  { %3847 = vpow2.f32 %v3376_v22 }
0x17ef   :  { %v1171_v9 = vpop.f32.mrf.mxu3 }
0x17f2   :  { %v3848_v24 = vpop.eup %3847 }
0x17f3   :  { %v1177_v10 = vadd.f32 1.0, %v3848_v24 }
0x17f5   :  { %3849 = vrcp.f32 %v1177_v10  ;;  %v1189_v33 = vand.u32 2147483648, %v1177_v10  ;;  %vm1183_vm12 = vweird.f32 %v1177_v10  ;;  %v1187_v34 = vand.u32 2147483647, %v1177_v10 }
0x17f7   :  { %v1190_v37 = vor.u32 1.1754944e-38, %v1189_v33  ;;  %vm1188_vm14 = vcmp.eq.f32.partialorder %v1187_v34, 8.507059e+37 }
0x17fb   :  { %v3850_v26 = vpop.eup %3849 }
0x17fc   :  { %v1179_v12 = vmul.f32 %v3850_v26, %v1177_v10  ;;  %vm1184_vm11 = vweird.f32 %v3850_v26 }
0x17fd   :  { %vm1185_vm13 = vmor %vm1183_vm12, %vm1184_vm11  ;;  %vm1426_vm12 = vcmask 1041408  }
0x17fe   :  { %v1180_v27 = vsub.f32 1.0, %v1179_v12 }
0x1800   :  { %v1181_v28 = vmul.f32 %v3850_v26, %v1180_v27 }
0x1802   :  { %v1182_v31 = vadd.f32 %v3850_v26, %v1181_v28 }
0x1804   :  { %v1186_v35 = vsel %vm1185_vm13, %v3850_v26, %v1182_v31  ;;  %vm1416_vm13 = vcmask 31744  }
0x1805   :  { %v1191_v41 = vsel %vm1188_vm14, %v1190_v37, %v1186_v35 }
0x1806   :  { %v1205_v18 = vsub.f32 1.0, %v1191_v41  ;;  %v1211_v46 = vmul.f32 %v1191_v41, %v1152_v6 }
0x185c   :  { %v1196_v39 = vpop.permute.xlu0 %1195 }
0x185d   :  { %v1198_v42 = vmul.f32 %v1196_v39, %v1191_v41 }
0x185f   :  { %1200 = vrot.lane.b32.xlu1 %v1198_v42, %s4047_s18 }
0x18d1   :  { %v1201_v43 = vpop.permute.xlu1 %1200 }
0x18d2   :  { %v1203_v44 = vadd.f32 %v1201_v43, %v894_v19 }
0x18d4   :  { %3851 = vtanh.f32 %v1203_v44 }
0x18d5   :  { %3853 = vpow2.f32 %v3347_v51 }
0x18da   :  { %v3852_v45 = vpop.eup %3851 }
0x18db   :  { %1207 = vrot.lane.b32.xlu2 %v3852_v45, %s4051_s27  ;;  %v3854_v52 = vpop.eup %3853 }
0x18dc   :  { %v785_v53 = vadd.f32 1.0, %v3854_v52 }
0x18de   :  { %3855 = vrcp.f32 %v785_v53  ;;  %v797_v63 = vand.u32 2147483648, %v785_v53  ;;  %vm791_vm0 = vweird.f32 %v785_v53  ;;  %v795_v1 = vand.u32 2147483647, %v785_v53 }
0x18e0   :  { %v798_v32 = vor.u32 1.1754944e-38, %v797_v63  ;;  %vm796_vm1 = vcmp.eq.f32.partialorder %v795_v1, 8.507059e+37 }
0x18e3   :  { %803 = vrot.lane.b32.xlu2 %v801_v16, %s4047_s18 }
0x18e4   :  { %v3856_v54 = vpop.eup %3855 }
0x18e5   :  { %v787_v56 = vmul.f32 %v3856_v54, %v785_v53  ;;  %vm792_vm15 = vweird.f32 %v3856_v54 }
0x18e6   :  { %vm793_vm3 = vmor %vm791_vm0, %vm792_vm15 }
0x18e7   :  { %v788_v58 = vsub.f32 1.0, %v787_v56 }
0x18e9   :  { %v789_v59 = vmul.f32 %v3856_v54, %v788_v58 }
0x18eb   :  { %v790_v61 = vadd.f32 %v3856_v54, %v789_v59 }
0x18ed   :  { %v794_v36 = vsel %vm793_vm3, %v3856_v54, %v790_v61 }
0x18ee   :  { %v799_v11 = vsel %vm796_vm1, %v798_v32, %v794_v36 }
0x18ef   :  { %v813_v37 = vsub.f32 1.0, %v799_v11  ;;  %v819_v41 = vmul.f32 %v799_v11, %v4294_v20 }
0x1935   :  { %v1208_v30 = vpop.permute.xlu2 %1207 }
0x1936   :  { %v1210_v15 = vmul.f32 %v1208_v30, %v1205_v18 }
0x1938   :  { %v4345_v47 = vadd.f32 %v1211_v46, %v1210_v15 }
0x193a   :  { %v1213_v48 = vpack.c.bf16 %v4345_v47, %v4345_v47 }
0x193c   :  { %1215 = vrot.lane.b32.xlu0 %v1213_v48, %s4051_s27 }
0x193d   :  { %v804_v2 = vpop.permute.xlu2 %803 }
0x193e   :  { %v806_v3 = vmul.f32 %v804_v2, %v799_v11 }
0x19ae   :  { %v1216_v17 = vpop.permute.xlu0 %1215 }
0x19af   :  { %3377 = vmatmul.msk.bf16.vlgmr.msra.gmra.mxu0 %vm286_vm4, %v1216_v17 }
0x1a2c   :  { %v1229_v60 = vpop.f32.mrf.mxu0 }
0x1a2d   :  { %v1253_v62 = vadd.f32 %v1229_v60, %v4278_v25  ;;  %v1233_v57 = vadd.f32 %v1229_v60, %v896_v5 }
0x1a2f   :  { %1255 = vrot.lane.b32.xlu1 %v1253_v62, %s4047_s18  ;;  %v3378_v40 = vmul.f32 -1.442695, %v1233_v57  ;;  %v3675_v57 = vld [vmem:[%s4383_s22] sm:$0xff] }
0x1a31   :  { %3857 = vpow2.f32 %v3378_v40  ;;  %v3683_v40 = vld [vmem:[%s4388_s26 + $0x34] sm:$0xf] }
0x1a34   :  { %v1231_v55 = vpop.f32.mrf.mxu0 }
0x1a37   :  { %808 = vrot.lane.b32.xlu1 %v806_v3, %s4047_s18  ;;  %v3858_v6 = vpop.eup %3857 }
0x1a38   :  { %v1237_v7 = vadd.f32 1.0, %v3858_v6  ;;  %v3425_v6 = vld [vmem:[%s4388_s26 + $0x38] sm:$0xf0] }
0x1a3a   :  { %3859 = vrcp.f32 %v1237_v7  ;;  %v1249_v19 = vand.u32 2147483648, %v1237_v7  ;;  %vm1243_vm5 = vweird.f32 %v1237_v7  ;;  %v1247_v21 = vand.u32 2147483647, %v1237_v7 }
0x1a3c   :  { %v1250_v24 = vor.u32 1.1754944e-38, %v1249_v19  ;;  %vm1248_vm7 = vcmp.eq.f32.partialorder %v1247_v21, 8.507059e+37  ;;  %v3677_v21 = vld [vmem:[%s4388_s26 + $0x4] sm:$0xf] }
0x1a40   :  { %v3860_v29 = vpop.eup %3859 }
0x1a41   :  { %v1239_v13 = vmul.f32 %v3860_v29, %v1237_v7  ;;  %vm1244_vm2 = vweird.f32 %v3860_v29  ;;  %v4394_v7 = vor.u32 %v3683_v40, %v3425_v6 }
0x1a42   :  { %vm1245_vm6 = vmor %vm1243_vm5, %vm1244_vm2 }
0x1a43   :  { %v1240_v8 = vsub.f32 1.0, %v1239_v13  ;;  %v3417_v13 = vld [vmem:[%s4388_s26 + $0x28] sm:$0xf0]  ;;  %1552 = vmatpush.bf16.msra.mxu1 %v4394_v7 }
0x1a45   :  { %v1241_v9 = vmul.f32 %v3860_v29, %v1240_v8 }
0x1a47   :  { %v1242_v14 = vadd.f32 %v3860_v29, %v1241_v9  ;;  %v3679_v9 = vld [vmem:[%s4388_s26 + $0x14] sm:$0xf] }
0x1a49   :  { %v1246_v22 = vsel %vm1245_vm6, %v3860_v29, %v1242_v14  ;;  %v3681_v29 = vld [vmem:[%s4388_s26 + $0x24] sm:$0xf]  ;;  %v3409_v14 = vld [vmem:[%s4388_s26 + $0x18] sm:$0xf0] }
0x1a4a   :  { %v1251_v26 = vsel %vm1248_vm7, %v1250_v24, %v1246_v22  ;;  %v4399_v8 = vor.u32 %v3681_v29, %v3417_v13  ;;  %v4406_v19 = vor.u32 %v3679_v9, %v3409_v14  ;;  %v3401_v22 = vld [vmem:[%s4388_s26 + $0x8] sm:$0xf0]  ;;  %vm1532_vm7 = vcmask 523264  }
0x1a4b   :  { %v1265_v45 = vsub.f32 1.0, %v1251_v26  ;;  %v1271_v18 = vmul.f32 %v1251_v26, %v4345_v47  ;;  %v3404_v24 = vor.u32 %v3677_v21, %v3401_v22 }
0x1a4c   :  { %1553 = vmatpush.bf16.msra.mxu1 %v4399_v8 }
0x1a50   :  { %1554 = vmatpush.bf16.msra.mxu1 %v4406_v19 }
0x1a54   :  { %1555 = vmatpush.bf16.msra.mxu1 %v3404_v24 }
0x1a58   :  { %1667 = vmatpush.bf16.msrb.mxu1 %v4394_v7 }
0x1a5c   :  { %1668 = vmatpush.bf16.msrb.mxu1 %v4399_v8 }
0x1a60   :  { %1669 = vmatpush.bf16.msrb.mxu1 %v4406_v19 }
0x1a64   :  { %1670 = vmatpush.bf16.msrb.mxu1 %v3404_v24 }
0x1aa1   :  { %v1256_v10 = vpop.permute.xlu1 %1255 }
0x1aa2   :  { %v1258_v12 = vmul.f32 %v1256_v10, %v1251_v26  ;;  %v3676_v10 = vld [vmem:[%s4383_s22 + $0x8] sm:$0xff] }
0x1aa4   :  { %1260 = vrot.lane.b32.xlu0 %v1258_v12, %s4047_s18 }
0x1aa9   :  { %v809_v27 = vpop.permute.xlu1 %808 }
0x1aaa   :  { %v811_v28 = vadd.f32 %v809_v27, %v326_v50 }
0x1aac   :  { %3861 = vtanh.f32 %v811_v28 }
0x1ab2   :  { %v3862_v31 = vpop.eup %3861 }
0x1ab3   :  { %815 = vrot.lane.b32.xlu0 %v3862_v31, %s4051_s27  ;;  %v1397_v31 = vld [vmem:[%s4383_s22 + $0x10] sm:$0xf] }
0x1b16   :  { %v1261_v33 = vpop.permute.xlu0 %1260 }
0x1b17   :  { %v1263_v34 = vadd.f32 %v1261_v33, %v896_v5  ;;  %v1459_v5 = vsel %vm1426_vm12, %v1453_v4, 0 }
0x1b18   :  { %1468 = vmatpush.bf16.msrb.mxu2 %v1459_v5 }
0x1b19   :  { %3863 = vtanh.f32 %v1263_v34  ;;  %v1412_v34 = vunpack.c.l.b16 %v1397_v31 }
0x1b1f   :  { %v3864_v35 = vpop.eup %3863 }
0x1b20   :  { %1267 = vrot.lane.b32.xlu2 %v3864_v35, %s4051_s27 }
0x1b25   :  { %v816_v39 = vpop.permute.xlu0 %815 }
0x1b26   :  { %v818_v42 = vmul.f32 %v816_v39, %v813_v37  ;;  %v1415_v37 = vpack.c.b16 %v1412_v34, %v1412_v34  ;;  %v3423_v39 = vld [vmem:[%s4388_s26 + $0x30] sm:$0xf] }
0x1b28   :  { %v820_v43 = vadd.f32 %v819_v41, %v818_v42  ;;  %v3684_v41 = vld [vmem:[%s4388_s26 + $0x34] sm:$0xf0] }
0x1b29   :  { %v4437_v42 = vor.u32 %v3684_v41, %v3423_v39 }
0x1b2a   :  { %v834_v44 = vpack.c.bf16 %v820_v43, %v4294_v20  ;;  %v1398_v43 = vld [vmem:[%s3277_s6] sm:$0x3]  ;;  %s3294_s6 = sld [smem:[%s4942_s0 + %s4075_s2]]  }
0x1b2b   :  { %1539 = vmatpush.bf16.msrb.mxu3 %v4437_v42 }
0x1b2c   :  { %848 = vrot.lane.b32.xlu2 %v834_v44, %s4051_s27  ;;  %v3415_v44 = vld [vmem:[%s4388_s26 + $0x20] sm:$0xf] }
0x1b7a   :  { %v1268_v16 = vpop.permute.xlu2 %1267 }
0x1b7b   :  { %v1270_v30 = vmul.f32 %v1268_v16, %v1265_v45  ;;  %v3682_v45 = vld [vmem:[%s4388_s26 + $0x24] sm:$0xf0]  ;;  %v1428_v16 = vsel %vm1426_vm12, %v1398_v43, 0 }
0x1b7c   :  { %1437 = vmatpush.bf16.msrb.mxu0 %v1428_v16 }
0x1b7d   :  { %v4365_v46 = vadd.f32 %v1271_v18, %v1270_v30  ;;  %v4443_v18 = vor.u32 %v3682_v45, %v3415_v44  ;;  %v3407_v30 = vld [vmem:[%s4388_s26 + $0x10] sm:$0xf] }
0x1b7f   :  { %v1273_v15 = vpack.c.bf16 %v4365_v46, %v4365_v46  ;;  %3391 = vmatmul.msk.bf16.vlgmr.msrb.gmra.mxu0 %vm1416_vm13, %v3675_v57  ;;  %1540 = vmatpush.bf16.msrb.mxu3 %v4443_v18 }
0x1b80   :  { %1782 = vmatpush.bf16.msra.mxu0 %v4394_v7 }
0x1b81   :  { %1275 = vrot.lane.b32.xlu1 %v1273_v15, %s4051_s27 }
0x1b84   :  { %1783 = vmatpush.bf16.msra.mxu0 %v4399_v8 }
0x1b86   :  { %v849_v48 = vpop.permute.xlu2 %848 }
0x1b87   :  { %3359 = vmatmul.msk.bf16.gmra.mxu1 %vm286_vm4, %v849_v48  ;;  %v3399_v48 = vld [vmem:[%s4388_s26] sm:$0xf] }
0x1b88   :  { %1784 = vmatpush.bf16.msra.mxu0 %v4406_v19 }
0x1b8c   :  { %1785 = vmatpush.bf16.msra.mxu0 %v3404_v24 }
0x1b8f   :  { %3392 = vmatmul.msk.bf16.gmra.mxu0 %vm1416_vm13, %v3676_v10 }
0x1b90   :  { %2012 = vmatpush.bf16.msrb.mxu0 %v4394_v7 }
0x1b94   :  { %2013 = vmatpush.bf16.msrb.mxu0 %v4399_v8 }
0x1b97   :  { %1556 = vmatmul.bf16.vlgmr.msra.gmra.mxu1 %v4043_v0 }
0x1b98   :  { %1884 = vmatpush.bf16.msra.mxu1 %v4437_v42  ;;  %2014 = vmatpush.bf16.msrb.mxu0 %v4406_v19 }
0x1b9c   :  { %1885 = vmatpush.bf16.msra.mxu1 %v4443_v18  ;;  %2015 = vmatpush.bf16.msrb.mxu0 %v3404_v24 }
0x1b9f   :  { %3393 = vmatmul.msk.bf16.gmra.mxu0 %vm1416_vm13, %v1415_v37 }
0x1bf3   :  { %v1276_v17 = vpop.permute.xlu1 %1275 }
0x1bf4   :  { %3379 = vmatmul.msk.bf16.vlgmr.msra.gmra.mxu2 %vm286_vm4, %v1276_v17  ;;  %v3678_v17 = vld [vmem:[%s4388_s26 + $0x4] sm:$0xf0] }
0x1bf5   :  { %1897 = vmatpush.bf16.msra.mxu2 %v4394_v7 }
0x1bf9   :  { %1898 = vmatpush.bf16.msra.mxu2 %v4399_v8 }
0x1bfc   :  { %v1439_v40 = vpop.f32.mrf.mxu0 }
0x1bfd   :  { %1899 = vmatpush.bf16.msra.mxu2 %v4406_v19 }
0x1c01   :  { %1900 = vmatpush.bf16.msra.mxu2 %v3404_v24 }
0x1c04   :  { %v898_v50 = vpop.f32.mrf.mxu1  ;;  %3394 = vmatmul.msk.bf16.vlgmr.msrb.gmra.mxu2 %vm1416_vm13, %v3675_v57  ;;  %v4496_v57 = vld [vmem:[%s3280_s10] ss:$0 sm:$0xff]  ;;  %s4077_s10 = smov 30  }
0x1c05   :  { %v899_v23 = vadd.f32 %v4286_v38, %v898_v50  ;;  %v1440_v7 = vadd.f32 %v4496_v57, %v1439_v40  ;;  %s3296_s12 = sld [smem:[%s4942_s0 + %s4077_s10]]  }
0x1c14   :  { %3395 = vmatmul.msk.bf16.gmra.mxu2 %vm1416_vm13, %v3676_v10 }
0x1c24   :  { %3396 = vmatmul.msk.bf16.gmra.mxu2 %vm1416_vm13, %v1415_v37 }
0x1c77   :  { %v1289_v20 = vpop.f32.mrf.mxu2 }
0x1c78   :  { %v1313_v49 = vadd.f32 %v1289_v20, %v4278_v25  ;;  %v1293_v51 = vadd.f32 %v1289_v20, %v899_v23  ;;  %v4458_v20 = vor.u32 %v3678_v17, %v3399_v48 }
0x1c7a   :  { %1315 = vrot.lane.b32.xlu0 %v1313_v49, %s4047_s18  ;;  %v3380_v52 = vmul.f32 -1.442695, %v1293_v51  ;;  %v3773_v49 = vld [vmem:[%s4429_s1] ss:$0 sm:$0xff]  ;;  %s3293_s1 = sld [smem:[%s4942_s0 + %s4074_s28]]  }
0x1c7c   :  { %3865 = vpow2.f32 %v3380_v52 }
0x1c7f   :  { %v1291_v47 = vpop.f32.mrf.mxu2 }
0x1c80   :  { %v4467_v47 = vpop.f32.mrf.mxu1 }
0x1c82   :  { %v3866_v53 = vpop.eup %3865 }
0x1c83   :  { %v1297_v54 = vadd.f32 1.0, %v3866_v53 }
0x1c85   :  { %3867 = vrcp.f32 %v1297_v54  ;;  %v1309_v62 = vand.u32 2147483648, %v1297_v54  ;;  %vm1303_vm9 = vweird.f32 %v1297_v54  ;;  %v1307_v63 = vand.u32 2147483647, %v1297_v54 }
0x1c87   :  { %v1310_v36 = vor.u32 1.1754944e-38, %v1309_v62  ;;  %vm1308_vm11 = vcmp.eq.f32.partialorder %v1307_v63, 8.507059e+37  ;;  %v1470_v50 = vpop.f32.mrf.mxu2 }
0x1c88   :  { %v1557_v52 = vpop.f32.mrf.mxu1 }
0x1c8b   :  { %v3868_v56 = vpop.eup %3867 }
0x1c8c   :  { %v1299_v58 = vmul.f32 %v3868_v56, %v1297_v54  ;;  %vm1304_vm8 = vweird.f32 %v3868_v56 }
0x1c8d   :  { %vm1305_vm10 = vmor %vm1303_vm9, %vm1304_vm8 }
0x1c8e   :  { %v1300_v59 = vsub.f32 1.0, %v1299_v58 }
0x1c8f   :  { %v1472_v51 = vpop.f32.mrf.mxu2 }
0x1c90   :  { %v1301_v60 = vmul.f32 %v3868_v56, %v1300_v59  ;;  %v4473_v53 = vadd.f32 %v3773_v49, %v1472_v51  ;;  %v1559_v58 = vpop.f32.mrf.mxu1 }
0x1c92   :  { %v1302_v61 = vadd.f32 %v3868_v56, %v1301_v60 }
0x1c94   :  { %v1306_v1 = vsel %vm1305_vm10, %v3868_v56, %v1302_v61 }
0x1c95   :  { %v1311_v32 = vsel %vm1308_vm11, %v1310_v36, %v1306_v1 }
0x1c96   :  { %v1325_v26 = vsub.f32 1.0, %v1311_v32  ;;  %v1331_v27 = vmul.f32 %v1311_v32, %v4365_v46  ;;  %v3680_v46 = vld [vmem:[%s4388_s26 + $0x14] sm:$0xf0] }
0x1c97   :  { %v4451_v15 = vor.u32 %v3680_v46, %v3407_v30  ;;  %v1475_v56 = vpop.f32.mrf.mxu2 }
0x1c98   :  { %v4479_v59 = vadd.f32 %v3773_v49, %v1475_v56 }
0x1c99   :  { %1541 = vmatpush.bf16.msrb.mxu3 %v4451_v15  ;;  %1886 = vmatpush.bf16.msra.mxu1 %v4451_v15 }
0x1c9d   :  { %1542 = vmatpush.bf16.msrb.mxu3 %v4458_v20  ;;  %1887 = vmatpush.bf16.msra.mxu1 %v4458_v20 }
0x1c9f   :  { %v1477_v60 = vpop.f32.mrf.mxu2 }
0x1ca0   :  { %v4486_v61 = vadd.f32 %v3773_v49, %v1477_v60 }
0x1ca7   :  { %v1480_v62 = vpop.f32.mrf.mxu2 }
0x1ca8   :  { %v1481_v63 = vadd.f32 %v3773_v49, %v1480_v62 }
0x1caa   :  { %v1599_v1 = vadd.f32 %v1557_v52, %v1481_v63 }
0x1caf   :  { %v1482_v36 = vpop.f32.mrf.mxu2 }
0x1cec   :  { %v1316_v38 = vpop.permute.xlu0 %1315 }
0x1ced   :  { %v1318_v2 = vmul.f32 %v1316_v38, %v1311_v32  ;;  %v3430_v32 = vmul.f32 -1.442695, %v1599_v1 }
0x1cef   :  { %1320 = vrot.lane.b32.xlu1 %v1318_v2, %s4047_s18 }
0x1d61   :  { %v1321_v11 = vpop.permute.xlu1 %1320 }
0x1d62   :  { %v1323_v55 = vadd.f32 %v1321_v11, %v899_v23  ;;  %v4470_v23 = vadd.f32 %v3773_v49, %v1470_v50 }
0x1d64   :  { %3869 = vtanh.f32 %v1323_v55 }
0x1d65   :  { %3871 = vtanh.f32 %v1599_v1 }
0x1d66   :  { %3873 = vpow2.f32 %v3430_v32 }
0x1d6a   :  { %v3870_v3 = vpop.eup %3869 }
0x1d6b   :  { %1327 = vrot.lane.b32.xlu2 %v3870_v3, %s4051_s27  ;;  %v3872_v38 = vpop.eup %3871 }
0x1d6c   :  { %v3874_v2 = vpop.eup %3873 }
0x1d6d   :  { %v1603_v11 = vadd.f32 1.0, %v3874_v2 }
0x1d6f   :  { %3875 = vrcp.f32 %v1603_v11  ;;  %vm1609_vm14 = vweird.f32 %v1603_v11  ;;  %v1615_v9 = vand.u32 2147483648, %v1603_v11  ;;  %v1613_v19 = vand.u32 2147483647, %v1603_v11 }
0x1d71   :  { %v1616_v21 = vor.u32 1.1754944e-38, %v1615_v9  ;;  %vm1614_vm3 = vcmp.eq.f32.partialorder %v1613_v19, 8.507059e+37 }
0x1d73   :  { %1622 = vrot.lane.b32.xlu2 %v3872_v38, %s4047_s18 }
0x1d75   :  { %v3876_v3 = vpop.eup %3875 }
0x1d76   :  { %v1605_v5 = vmul.f32 %v3876_v3, %v1603_v11  ;;  %vm1610_vm15 = vweird.f32 %v3876_v3 }
0x1d77   :  { %vm1611_vm0 = vmor %vm1609_vm14, %vm1610_vm15 }
0x1d78   :  { %v1606_v6 = vsub.f32 1.0, %v1605_v5  ;;  %v1441_v5 = vpop.f32.mrf.mxu0 }
0x1d79   :  { %v1442_v40 = vadd.f32 %v4496_v57, %v1441_v5 }
0x1d7a   :  { %v1607_v13 = vmul.f32 %v3876_v3, %v1606_v6 }
0x1d7c   :  { %v1608_v14 = vadd.f32 %v3876_v3, %v1607_v13 }
0x1d7e   :  { %v1612_v24 = vsel %vm1611_vm0, %v3876_v3, %v1608_v14 }
0x1dc5   :  { %v1328_v12 = vpop.permute.xlu2 %1327 }
0x1dc6   :  { %v1330_v28 = vmul.f32 %v1328_v12, %v1325_v26  ;;  %v1617_v12 = vsel %vm1614_vm3, %v1616_v21, %v1612_v24 }
0x1dc7   :  { %v1620_v49 = vmul.f32 0.0, %v1617_v12 }
0x1dc8   :  { %v4421_v33 = vadd.f32 %v1331_v27, %v1330_v28 }
0x1dca   :  { %v1333_v35 = vpack.c.bf16 %v4421_v33, %v4421_v33 }
0x1dcc   :  { %1335 = vrot.lane.b32.xlu0 %v1333_v35, %s4051_s27 }
0x1dcd   :  { %v1623_v26 = vpop.permute.xlu2 %1622 }
0x1dce   :  { %v1625_v27 = vmul.f32 %v1623_v26, %v1617_v12 }
0x1e3e   :  { %v1336_v54 = vpop.permute.xlu0 %1335 }
0x1e3f   :  { %3381 = vmatmul.msk.bf16.vlgmr.msra.gmra.mxu3 %vm286_vm4, %v1336_v54 }
0x1e40   :  { %1654 = vmatpush.bf16.msra.mxu3 %v4437_v42 }
0x1e44   :  { %1655 = vmatpush.bf16.msra.mxu3 %v4443_v18 }
0x1e48   :  { %1656 = vmatpush.bf16.msra.mxu3 %v4451_v15 }
0x1e4c   :  { %1657 = vmatpush.bf16.msra.mxu3 %v4458_v20 }
0x1e4f   :  { %1543 = vmatmul.bf16.vlgmr.msrb.gmra.mxu3 %v4043_v0 }
0x1e50   :  { %1769 = vmatpush.bf16.msrb.mxu3 %v4437_v42 }
0x1e54   :  { %1770 = vmatpush.bf16.msrb.mxu3 %v4443_v18 }
0x1e58   :  { %1771 = vmatpush.bf16.msrb.mxu3 %v4451_v15 }
0x1e5c   :  { %1772 = vmatpush.bf16.msrb.mxu3 %v4458_v20 }
0x1ec2   :  { %v4494_v55 = vpop.f32.mrf.mxu3 }
0x1eca   :  { %v1351_v4 = vpop.f32.mrf.mxu3 }
0x1ed2   :  { %v1544_v29 = vpop.f32.mrf.mxu3 }
0x1ed3   :  { %v1561_v8 = vadd.f32 %v1544_v29, %v1440_v7 }
0x1ed5   :  { %3877 = vtanh.f32 %v1561_v8  ;;  %v3429_v28 = vmul.f32 -1.442695, %v1561_v8 }
0x1ed7   :  { %3879 = vpow2.f32 %v3429_v28 }
0x1eda   :  { %v1546_v22 = vpop.f32.mrf.mxu3 }
0x1edb   :  { %v3878_v10 = vpop.eup %3877 }
0x1edc   :  { %1584 = vrot.lane.b32.xlu1 %v3878_v10, %s4047_s18 }
0x1edd   :  { %v3880_v31 = vpop.eup %3879 }
0x1ede   :  { %v1565_v34 = vadd.f32 1.0, %v3880_v31 }
0x1ee0   :  { %3881 = vrcp.f32 %v1565_v34  ;;  %v1577_v44 = vand.u32 2147483648, %v1565_v34  ;;  %vm1571_vm2 = vweird.f32 %v1565_v34  ;;  %v1575_v45 = vand.u32 2147483647, %v1565_v34 }
0x1ee2   :  { %v1578_v30 = vor.u32 1.1754944e-38, %v1577_v44  ;;  %vm1576_vm6 = vcmp.eq.f32.partialorder %v1575_v45, 8.507059e+37 }
0x1ee4   :  { %1627 = vrot.lane.b32.xlu1 %v1625_v27, %s4062_s11 }
0x1ee6   :  { %v3882_v35 = vpop.eup %3881 }
0x1ee7   :  { %v1567_v37 = vmul.f32 %v3882_v35, %v1565_v34  ;;  %vm1572_vm1 = vweird.f32 %v3882_v35 }
0x1ee8   :  { %vm1573_vm5 = vmor %vm1571_vm2, %vm1572_vm1 }
0x1ee9   :  { %v1568_v39 = vsub.f32 1.0, %v1567_v37 }
0x1eeb   :  { %v1569_v41 = vmul.f32 %v3882_v35, %v1568_v39 }
0x1eed   :  { %v1570_v43 = vadd.f32 %v3882_v35, %v1569_v41 }
0x1eef   :  { %v1574_v16 = vsel %vm1573_vm5, %v3882_v35, %v1570_v43 }
0x1ef0   :  { %v1579_v48 = vsel %vm1576_vm6, %v1578_v30, %v1574_v16 }
0x1ef1   :  { %v1582_v54 = vmul.f32 0.0, %v1579_v48 }
0x1f4e   :  { %v1585_v46 = vpop.permute.xlu1 %1584 }
0x1f4f   :  { %v1587_v17 = vmul.f32 %v1585_v46, %v1579_v48 }
0x1f51   :  { %1589 = vrot.lane.b32.xlu0 %v1587_v17, %s4062_s11 }
0x1f56   :  { %v1628_v50 = vpop.permute.xlu1 %1627 }
0x1f57   :  { %v4502_v51 = vadd.f32 %v1628_v50, %v1620_v49 }
0x1f59   :  { %3883 = vtanh.f32 %v4502_v51 }
0x1f5f   :  { %v3884_v52 = vpop.eup %3883 }
0x1f60   :  { %1633 = vrot.lane.b32.xlu0 %v3884_v52, %s4047_s18 }
0x1fc3   :  { %v1590_v56 = vpop.permute.xlu0 %1589 }
0x1fc4   :  { %v4506_v58 = vadd.f32 %v1590_v56, %v1582_v54 }
0x1fc6   :  { %3885 = vtanh.f32 %v4506_v58 }
0x1fcc   :  { %v3886_v60 = vpop.eup %3885 }
0x1fcd   :  { %1595 = vrot.lane.b32.xlu2 %v3886_v60, %s4047_s18 }
0x1fd2   :  { %v1634_v62 = vpop.permute.xlu0 %1633 }
0x1fd3   :  { %v1636_v63 = vmul.f32 %v1634_v62, %v1617_v12 }
0x1fd5   :  { %1642 = vrot.lane.b32.xlu2 %v1636_v63, %s4047_s18 }
0x2027   :  { %v1596_v1 = vpop.permute.xlu2 %1595 }
0x2028   :  { %v1598_v36 = vmul.f32 %v1596_v1, %v1579_v48 }
0x202a   :  { %1638 = vrot.lane.b32.xlu1 %v1598_v36, %s4062_s11 }
0x202f   :  { %v4512_v38 = vpop.permute.xlu2 %1642 }
0x209c   :  { %v4514_v32 = vpop.permute.xlu1 %1638 }
0x209d   :  { %v1645_v2 = vsel %vm286_vm4, %v4514_v32, %v4512_v38 }
0x209e   :  { %v1646_v11 = vpack.c.bf16 %v1645_v2, %v1645_v2 }
0x20a0   :  { %3431 = vmatmul.msk.bf16.vlgmr.msra.gmra.mxu3 %vm1532_vm7, %v1646_v11  ;;  %3432 = vmatmul.msk.bf16.vlgmr.msrb.gmra.mxu1 %vm1532_vm7, %v1646_v11 }
0x20a1   :  { %1999 = vmatpush.bf16.msra.mxu3 %v4437_v42 }
0x20a5   :  { %2000 = vmatpush.bf16.msra.mxu3 %v4443_v18 }
0x20a9   :  { %2001 = vmatpush.bf16.msra.mxu3 %v4451_v15 }
0x20ad   :  { %2002 = vmatpush.bf16.msra.mxu3 %v4458_v20 }
0x211d   :  { %v1672_v3 = vpop.f32.mrf.mxu1 }
0x211e   :  { %v1714_v4 = vadd.f32 %v1672_v3, %v4486_v61  ;;  %v1444_v3 = vpop.f32.mrf.mxu0 }
0x2120   :  { %3887 = vtanh.f32 %v1714_v4  ;;  %v3434_v15 = vmul.f32 -1.442695, %v1714_v4 }
0x2123   :  { %v1659_v6 = vpop.f32.mrf.mxu3 }
0x2124   :  { %v1676_v7 = vadd.f32 %v1659_v6, %v1442_v40 }
0x2125   :  { %v1674_v29 = vpop.f32.mrf.mxu1 }
0x2126   :  { %v3888_v13 = vpop.eup %3887  ;;  %3889 = vtanh.f32 %v1676_v7  ;;  %v3433_v20 = vmul.f32 -1.442695, %v1676_v7  ;;  %v4543_v4 = vpop.f32.mrf.mxu0 }
0x2127   :  { %1737 = vrot.lane.b32.xlu1 %v3888_v13, %s4047_s18  ;;  %3891 = vpow2.f32 %v3434_v15 }
0x2128   :  { %3893 = vpow2.f32 %v3433_v20 }
0x212b   :  { %v1661_v42 = vpop.f32.mrf.mxu3 }
0x212c   :  { %v3890_v18 = vpop.eup %3889 }
0x212d   :  { %1699 = vrot.lane.b32.xlu0 %v3890_v18, %s4047_s18  ;;  %v3892_v8 = vpop.eup %3891  ;;  %v1445_v18 = vadd.f32 %v4496_v57, %v1444_v3 }
0x212e   :  { %v1718_v61 = vadd.f32 1.0, %v3892_v8  ;;  %v3894_v9 = vpop.eup %3893 }
0x212f   :  { %v1680_v14 = vadd.f32 1.0, %v3894_v9 }
0x2130   :  { %3895 = vrcp.f32 %v1718_v61  ;;  %v1730_v28 = vand.u32 2147483648, %v1718_v61  ;;  %vm1724_vm9 = vweird.f32 %v1718_v61  ;;  %v1728_v31 = vand.u32 2147483647, %v1718_v61 }
0x2131   :  { %3897 = vrcp.f32 %v1680_v14  ;;  %v1692_v44 = vand.u32 2147483648, %v1680_v14  ;;  %vm1686_vm13 = vweird.f32 %v1680_v14  ;;  %v1690_v16 = vand.u32 2147483647, %v1680_v14 }
0x2132   :  { %v1731_v37 = vor.u32 1.1754944e-38, %v1730_v28  ;;  %vm1729_vm11 = vcmp.eq.f32.partialorder %v1728_v31, 8.507059e+37 }
0x2133   :  { %v1693_v46 = vor.u32 1.1754944e-38, %v1692_v44  ;;  %vm1691_vm15 = vcmp.eq.f32.partialorder %v1690_v16, 8.507059e+37 }
0x2136   :  { %v3896_v19 = vpop.eup %3895 }
0x2137   :  { %v1720_v21 = vmul.f32 %v3896_v19, %v1718_v61  ;;  %v3898_v22 = vpop.eup %3897  ;;  %vm1725_vm8 = vweird.f32 %v3896_v19 }
0x2138   :  { %v1682_v10 = vmul.f32 %v3898_v22, %v1680_v14  ;;  %vm1726_vm10 = vmor %vm1724_vm9, %vm1725_vm8  ;;  %vm1687_vm12 = vweird.f32 %v3898_v22 }
0x2139   :  { %v1721_v24 = vsub.f32 1.0, %v1720_v21  ;;  %vm1688_vm14 = vmor %vm1686_vm13, %vm1687_vm12 }
0x213a   :  { %v1683_v12 = vsub.f32 1.0, %v1682_v10 }
0x213b   :  { %v1722_v26 = vmul.f32 %v3896_v19, %v1721_v24 }
0x213c   :  { %v1684_v34 = vmul.f32 %v3898_v22, %v1683_v12 }
0x213d   :  { %v1723_v27 = vadd.f32 %v3896_v19, %v1722_v26 }
0x213e   :  { %v1685_v39 = vadd.f32 %v3898_v22, %v1684_v34 }
0x213f   :  { %v1727_v35 = vsel %vm1726_vm10, %v3896_v19, %v1723_v27 }
0x2140   :  { %v1732_v43 = vsel %vm1729_vm11, %v1731_v37, %v1727_v35  ;;  %v1689_v30 = vsel %vm1688_vm14, %v3898_v22, %v1685_v39 }
0x2141   :  { %v1694_v17 = vsel %vm1691_vm15, %v1693_v46, %v1689_v30  ;;  %v1735_v60 = vmul.f32 %v1732_v43, %v4502_v51  ;;  %v4545_v51 = vpop.f32.mrf.mxu0 }
0x2142   :  { %v1697_v50 = vmul.f32 %v1694_v17, %v4506_v58 }
0x2149   :  { %v1451_v5 = vpop.f32.mrf.mxu0 }
0x2199   :  { %v1738_v41 = vpop.permute.xlu1 %1737 }
0x219a   :  { %v1740_v45 = vmul.f32 %v1738_v41, %v1732_v43 }
0x219c   :  { %1742 = vrot.lane.b32.xlu0 %v1740_v45, %s4062_s11 }
0x219f   :  { %v1700_v48 = vpop.permute.xlu0 %1699 }
0x21a0   :  { %v1702_v49 = vmul.f32 %v1700_v48, %v1694_v17 }
0x21a2   :  { %1704 = vrot.lane.b32.xlu2 %v1702_v49, %s4062_s11 }
0x21fc   :  { %v1705_v52 = vpop.permute.xlu2 %1704 }
0x21fd   :  { %v4532_v54 = vadd.f32 %v1705_v52, %v1697_v50 }
0x21ff   :  { %3899 = vtanh.f32 %v4532_v54 }
0x2205   :  { %v3900_v56 = vpop.eup %3899 }
0x2206   :  { %1710 = vrot.lane.b32.xlu1 %v3900_v56, %s4047_s18 }
0x220e   :  { %v1743_v62 = vpop.permute.xlu0 %1742 }
0x220f   :  { %v4537_v63 = vadd.f32 %v1743_v62, %v1735_v60 }
0x2211   :  { %3901 = vtanh.f32 %v4537_v63 }
0x2217   :  { %v3902_v1 = vpop.eup %3901 }
0x2218   :  { %1748 = vrot.lane.b32.xlu2 %v3902_v1, %s4047_s18 }
0x2272   :  { %v1749_v36 = vpop.permute.xlu2 %1748 }
0x2273   :  { %v1751_v58 = vmul.f32 %v1749_v36, %v1732_v43 }
0x2275   :  { %1757 = vrot.lane.b32.xlu1 %v1751_v58, %s4047_s18 }
0x2278   :  { %v1711_v2 = vpop.permute.xlu1 %1710 }
0x2279   :  { %v1713_v11 = vmul.f32 %v1711_v2, %v1694_v17 }
0x227b   :  { %1753 = vrot.lane.b32.xlu0 %v1713_v11, %s4062_s11 }
0x22e7   :  { %v4547_v40 = vpop.permute.xlu1 %1757 }
0x22ed   :  { %v4549_v6 = vpop.permute.xlu0 %1753 }
0x22ee   :  { %v1760_v7 = vsel %vm286_vm4, %v4549_v6, %v4547_v40 }
0x22ef   :  { %v1761_v29 = vpack.c.bf16 %v1760_v7, %v1760_v7 }
0x22f1   :  { %3435 = vmatmul.msk.bf16.vlgmr.msrb.gmra.mxu3 %vm1532_vm7, %v1761_v29  ;;  %3436 = vmatmul.msk.bf16.vlgmr.msra.gmra.mxu0 %vm1532_vm7, %v1761_v29 }
0x236e   :  { %v1787_v13 = vpop.f32.mrf.mxu0 }
0x236f   :  { %v1829_v42 = vadd.f32 %v1787_v13, %v4479_v59 }
0x2371   :  { %3903 = vtanh.f32 %v1829_v42  ;;  %v3438_v59 = vmul.f32 -1.442695, %v1829_v42 }
0x2374   :  { %v1774_v15 = vpop.f32.mrf.mxu3 }
0x2375   :  { %v1791_v20 = vadd.f32 %v1774_v15, %v1445_v18 }
0x2376   :  { %v1789_v8 = vpop.f32.mrf.mxu0 }
0x2377   :  { %v3904_v61 = vpop.eup %3903  ;;  %3905 = vtanh.f32 %v1791_v20  ;;  %v3437_v19 = vmul.f32 -1.442695, %v1791_v20  ;;  %v1447_v8 = vadd.f32 %v4496_v57, %v4543_v4 }
0x2378   :  { %1852 = vrot.lane.b32.xlu0 %v3904_v61, %s4047_s18 }
0x2379   :  { %3907 = vpow2.f32 %v3437_v19 }
0x237c   :  { %v1776_v9 = vpop.f32.mrf.mxu3 }
0x237d   :  { %v3906_v14 = vpop.eup %3905 }
0x237e   :  { %1814 = vrot.lane.b32.xlu2 %v3906_v14, %s4047_s18 }
0x237f   :  { %v3908_v21 = vpop.eup %3907 }
0x2380   :  { %v1795_v22 = vadd.f32 1.0, %v3908_v21 }
0x2382   :  { %3909 = vrcp.f32 %v1795_v22  ;;  %v1807_v34 = vand.u32 2147483648, %v1795_v22  ;;  %vm1801_vm3 = vweird.f32 %v1795_v22  ;;  %v1805_v35 = vand.u32 2147483647, %v1795_v22 }
0x2383   :  { %3911 = vpow2.f32 %v3438_v59 }
0x2384   :  { %v1808_v41 = vor.u32 1.1754944e-38, %v1807_v34  ;;  %vm1806_vm2 = vcmp.eq.f32.partialorder %v1805_v35, 8.507059e+37 }
0x2388   :  { %v3910_v24 = vpop.eup %3909 }
0x2389   :  { %v1797_v10 = vmul.f32 %v3910_v24, %v1795_v22  ;;  %v3912_v26 = vpop.eup %3911  ;;  %vm1802_vm0 = vweird.f32 %v3910_v24 }
0x238a   :  { %v1833_v27 = vadd.f32 1.0, %v3912_v26  ;;  %vm1803_vm1 = vmor %vm1801_vm3, %vm1802_vm0 }
0x238b   :  { %v1798_v12 = vsub.f32 1.0, %v1797_v10 }
0x238c   :  { %3913 = vrcp.f32 %v1833_v27  ;;  %v1845_v17 = vand.u32 2147483648, %v1833_v27  ;;  %vm1839_vm6 = vweird.f32 %v1833_v27  ;;  %v1843_v49 = vand.u32 2147483647, %v1833_v27 }
0x238d   :  { %v1799_v28 = vmul.f32 %v3910_v24, %v1798_v12 }
0x238e   :  { %v1846_v52 = vor.u32 1.1754944e-38, %v1845_v17  ;;  %vm1844_vm9 = vcmp.eq.f32.partialorder %v1843_v49, 8.507059e+37 }
0x238f   :  { %v1800_v31 = vadd.f32 %v3910_v24, %v1799_v28 }
0x2391   :  { %v1804_v39 = vsel %vm1803_vm1, %v3910_v24, %v1800_v31 }
0x2392   :  { %v3914_v37 = vpop.eup %3913  ;;  %v1809_v45 = vsel %vm1806_vm2, %v1808_v41, %v1804_v39 }
0x2393   :  { %v1835_v43 = vmul.f32 %v3914_v37, %v1833_v27  ;;  %vm1840_vm5 = vweird.f32 %v3914_v37  ;;  %v1812_v2 = vmul.f32 %v1809_v45, %v4532_v54 }
0x2394   :  { %vm1841_vm8 = vmor %vm1839_vm6, %vm1840_vm5 }
0x2395   :  { %v1836_v30 = vsub.f32 1.0, %v1835_v43 }
0x2397   :  { %v1837_v46 = vmul.f32 %v3914_v37, %v1836_v30 }
0x2399   :  { %v1838_v48 = vadd.f32 %v3914_v37, %v1837_v46 }
0x239b   :  { %v1842_v50 = vsel %vm1841_vm8, %v3914_v37, %v1838_v48 }
0x239c   :  { %v1847_v60 = vsel %vm1844_vm9, %v1846_v52, %v1842_v50 }
0x239d   :  { %v1850_v1 = vmul.f32 %v1847_v60, %v4537_v63 }
0x23d8   :  { %v1815_v44 = vpop.permute.xlu2 %1814 }
0x23d9   :  { %v1817_v16 = vmul.f32 %v1815_v44, %v1809_v45 }
0x23db   :  { %1819 = vrot.lane.b32.xlu1 %v1817_v16, %s4062_s11 }
0x23ea   :  { %v1853_v56 = vpop.permute.xlu0 %1852 }
0x23eb   :  { %v1855_v62 = vmul.f32 %v1853_v56, %v1847_v60 }
0x23ed   :  { %1857 = vrot.lane.b32.xlu2 %v1855_v62, %s4062_s11 }
0x2447   :  { %v1858_v36 = vpop.permute.xlu2 %1857 }
0x2448   :  { %v4563_v58 = vadd.f32 %v1858_v36, %v1850_v1 }
0x244a   :  { %3915 = vtanh.f32 %v4563_v58 }
0x244d   :  { %v1820_v11 = vpop.permute.xlu1 %1819 }
0x244e   :  { %v4567_v3 = vadd.f32 %v1820_v11, %v1812_v2 }
0x2450   :  { %v3916_v5 = vpop.eup %3915  ;;  %3917 = vtanh.f32 %v4567_v3 }
0x2451   :  { %1863 = vrot.lane.b32.xlu1 %v3916_v5, %s4047_s18 }
0x2456   :  { %v3918_v7 = vpop.eup %3917 }
0x2457   :  { %1825 = vrot.lane.b32.xlu0 %v3918_v7, %s4047_s18 }
0x24c3   :  { %v1864_v29 = vpop.permute.xlu1 %1863 }
0x24c4   :  { %v1866_v63 = vmul.f32 %v1864_v29, %v1847_v60 }
0x24c6   :  { %1872 = vrot.lane.b32.xlu0 %v1866_v63, %s4047_s18 }
0x24c9   :  { %v1826_v13 = vpop.permute.xlu0 %1825 }
0x24ca   :  { %v1828_v42 = vmul.f32 %v1826_v13, %v1809_v45 }
0x24cc   :  { %1868 = vrot.lane.b32.xlu2 %v1828_v42, %s4062_s11 }
0x2526   :  { %v1869_v54 = vpop.permute.xlu2 %1868 }
0x2538   :  { %v1873_v18 = vpop.permute.xlu0 %1872 }
0x2539   :  { %v4575_v15 = vsel %vm286_vm4, %v1869_v54, %v1873_v18 }
0x253a   :  { %v1876_v20 = vpack.c.bf16 %v4575_v15, %v4575_v15 }
0x253c   :  { %3439 = vmatmul.msk.bf16.vlgmr.msra.gmra.mxu1 %vm1532_vm7, %v1876_v20  ;;  %3440 = vmatmul.msk.bf16.vlgmr.msra.gmra.mxu2 %vm1532_vm7, %v1876_v20 }
0x25b9   :  { %v1889_v61 = vpop.f32.mrf.mxu1 }
0x25ba   :  { %v1906_v9 = vadd.f32 %v1889_v61, %v1447_v8 }
0x25bc   :  { %3919 = vtanh.f32 %v1906_v9  ;;  %v3441_v4 = vmul.f32 -1.442695, %v1906_v9 }
0x25bf   :  { %v1902_v14 = vpop.f32.mrf.mxu2 }
0x25c0   :  { %v1944_v19 = vadd.f32 %v1902_v14, %v4473_v53 }
0x25c1   :  { %v1891_v21 = vpop.f32.mrf.mxu1 }
0x25c2   :  { %v3920_v22 = vpop.eup %3919  ;;  %3921 = vtanh.f32 %v1944_v19  ;;  %v3442_v10 = vmul.f32 -1.442695, %v1944_v19 }
0x25c3   :  { %1929 = vrot.lane.b32.xlu1 %v3920_v22, %s4047_s18  ;;  %v1450_v22 = vadd.f32 %v4496_v57, %v4545_v51 }
0x25c4   :  { %3923 = vpow2.f32 %v3442_v10 }
0x25c7   :  { %v1904_v59 = vpop.f32.mrf.mxu2 }
0x25c8   :  { %v3922_v24 = vpop.eup %3921 }
0x25c9   :  { %1967 = vrot.lane.b32.xlu2 %v3922_v24, %s4047_s18 }
0x25ca   :  { %v3924_v26 = vpop.eup %3923 }
0x25cb   :  { %v1948_v12 = vadd.f32 1.0, %v3924_v26 }
0x25cd   :  { %3925 = vrcp.f32 %v1948_v12  ;;  %v1960_v39 = vand.u32 2147483648, %v1948_v12  ;;  %vm1954_vm11 = vweird.f32 %v1948_v12  ;;  %v1958_v41 = vand.u32 2147483647, %v1948_v12 }
0x25ce   :  { %3927 = vpow2.f32 %v3441_v4 }
0x25cf   :  { %v1961_v45 = vor.u32 1.1754944e-38, %v1960_v39  ;;  %vm1959_vm13 = vcmp.eq.f32.partialorder %v1958_v41, 8.507059e+37 }
0x25d3   :  { %v3926_v27 = vpop.eup %3925 }
0x25d4   :  { %v1950_v28 = vmul.f32 %v3926_v27, %v1948_v12  ;;  %v3928_v31 = vpop.eup %3927  ;;  %vm1955_vm10 = vweird.f32 %v3926_v27 }
0x25d5   :  { %v1910_v34 = vadd.f32 1.0, %v3928_v31  ;;  %vm1956_vm12 = vmor %vm1954_vm11, %vm1955_vm10 }
0x25d6   :  { %v1951_v53 = vsub.f32 1.0, %v1950_v28 }
0x25d7   :  { %3929 = vrcp.f32 %v1910_v34  ;;  %v1922_v52 = vand.u32 2147483648, %v1910_v34  ;;  %vm1916_vm15 = vweird.f32 %v1910_v34  ;;  %v1920_v56 = vand.u32 2147483647, %v1910_v34 }
0x25d8   :  { %v1952_v35 = vmul.f32 %v3926_v27, %v1951_v53 }
0x25d9   :  { %v1923_v62 = vor.u32 1.1754944e-38, %v1922_v52  ;;  %vm1921_vm3 = vcmp.eq.f32.partialorder %v1920_v56, 8.507059e+37 }
0x25da   :  { %v1953_v37 = vadd.f32 %v3926_v27, %v1952_v35 }
0x25dc   :  { %v1957_v44 = vsel %vm1956_vm12, %v3926_v27, %v1953_v37 }
0x25dd   :  { %v3930_v43 = vpop.eup %3929  ;;  %v1962_v46 = vsel %vm1959_vm13, %v1961_v45, %v1957_v44 }
0x25de   :  { %v1912_v16 = vmul.f32 %v3930_v43, %v1910_v34  ;;  %vm1917_vm14 = vweird.f32 %v3930_v43  ;;  %v1965_v11 = vmul.f32 %v1962_v46, %v4563_v58 }
0x25df   :  { %vm1918_vm0 = vmor %vm1916_vm15, %vm1917_vm14 }
0x25e0   :  { %v1913_v17 = vsub.f32 1.0, %v1912_v16 }
0x25e2   :  { %v1914_v49 = vmul.f32 %v3930_v43, %v1913_v17 }
0x25e4   :  { %v1915_v50 = vadd.f32 %v3930_v43, %v1914_v49 }
0x25e6   :  { %v1919_v60 = vsel %vm1918_vm0, %v3930_v43, %v1915_v50 }
0x25e7   :  { %v1924_v36 = vsel %vm1921_vm3, %v1923_v62, %v1919_v60 }
0x25e8   :  { %v1927_v63 = vmul.f32 %v1924_v36, %v4567_v3 }
0x2623   :  { %v1968_v30 = vpop.permute.xlu2 %1967 }
0x2624   :  { %v1970_v48 = vmul.f32 %v1968_v30, %v1962_v46 }
0x2626   :  { %1972 = vrot.lane.b32.xlu1 %v1970_v48, %s4062_s11 }
0x2635   :  { %v1930_v1 = vpop.permute.xlu1 %1929 }
0x2636   :  { %v1932_v2 = vmul.f32 %v1930_v1, %v1924_v36 }
0x2638   :  { %1934 = vrot.lane.b32.xlu0 %v1932_v2, %s4062_s11 }
0x2698   :  { %v1973_v5 = vpop.permute.xlu1 %1972 }
0x2699   :  { %v4589_v7 = vadd.f32 %v1973_v5, %v1965_v11 }
0x269b   :  { %3931 = vtanh.f32 %v4589_v7 }
0x26a1   :  { %v3932_v29 = vpop.eup %3931 }
0x26a2   :  { %1978 = vrot.lane.b32.xlu0 %v3932_v29, %s4047_s18 }
0x26aa   :  { %v1935_v13 = vpop.permute.xlu0 %1934 }
0x26ab   :  { %v4594_v42 = vadd.f32 %v1935_v13, %v1927_v63 }
0x26ad   :  { %3933 = vtanh.f32 %v4594_v42 }
0x26b3   :  { %v3934_v54 = vpop.eup %3933 }
0x26b4   :  { %1940 = vrot.lane.b32.xlu2 %v3934_v54, %s4047_s18 }
0x270e   :  { %v1941_v18 = vpop.permute.xlu2 %1940 }
0x270f   :  { %v1943_v58 = vmul.f32 %v1941_v18, %v1924_v36 }
0x2711   :  { %1983 = vrot.lane.b32.xlu1 %v1943_v58, %s4062_s11 }
0x2714   :  { %v1979_v20 = vpop.permute.xlu0 %1978 }
0x2715   :  { %v1981_v8 = vmul.f32 %v1979_v20, %v1962_v46 }
0x2717   :  { %1987 = vrot.lane.b32.xlu2 %v1981_v8, %s4047_s18  ;;  %v3692_v8 = vld [vmem:[%s3283_s20 + $0x18] sm:$0xff] }
0x2718   :  { %2220 = vmatpush.bf16.msrb.mxu2 %v3692_v8 }
0x2771   :  { %v4600_v61 = vpop.permute.xlu2 %1987 }
0x2783   :  { %v4602_v9 = vpop.permute.xlu1 %1983 }
0x2784   :  { %v1990_v3 = vsel %vm286_vm4, %v4602_v9, %v4600_v61 }
0x2785   :  { %v1991_v14 = vpack.c.bf16 %v1990_v3, %v1990_v3 }
0x2787   :  { %3443 = vmatmul.msk.bf16.vlgmr.msra.gmra.mxu3 %vm1532_vm7, %v1991_v14  ;;  %3444 = vmatmul.msk.bf16.vlgmr.msrb.gmra.mxu0 %vm1532_vm7, %v1991_v14  ;;  %v3688_v14 = vld [vmem:[%s4635_s24 + $0x18] sm:$0xff] }
0x2788   :  { %2161 = vmatpush.bf16.msrb.mxu1 %v3688_v14 }
0x2804   :  { %v2017_v19 = vpop.f32.mrf.mxu0 }
0x2805   :  { %v2059_v21 = vadd.f32 %v2017_v19, %v4470_v23  ;;  %v3503_v19 = vld [vmem:[%s4627_s15 + $0x20] sm:$0xf] }
0x2807   :  { %3935 = vtanh.f32 %v2059_v21  ;;  %v3446_v27 = vmul.f32 -1.442695, %v2059_v21  ;;  %v3698_v21 = vld [vmem:[%s4627_s15 + $0x24] sm:$0xf0] }
0x280a   :  { %v2004_v59 = vpop.f32.mrf.mxu3 }
0x280b   :  { %v2021_v24 = vadd.f32 %v2004_v59, %v1450_v22  ;;  %v3691_v22 = vld [vmem:[%s3283_s20 + $0x10] sm:$0xff]  ;;  %v4645_v59 = vor.u32 %v3698_v21, %v3503_v19 }
0x280c   :  { %v2019_v10 = vpop.f32.mrf.mxu0  ;;  %2221 = vmatpush.bf16.msrb.mxu2 %v3691_v22 }
0x280d   :  { %v3936_v26 = vpop.eup %3935  ;;  %3937 = vtanh.f32 %v2021_v24  ;;  %v3445_v28 = vmul.f32 -1.442695, %v2021_v24  ;;  %v3687_v24 = vld [vmem:[%s4635_s24 + $0x10] sm:$0xff] }
0x280e   :  { %2082 = vrot.lane.b32.xlu0 %v3936_v26, %s4047_s18  ;;  %3939 = vpow2.f32 %v3446_v27  ;;  %v3495_v10 = vld [vmem:[%s4627_s15 + $0x10] sm:$0xf]  ;;  %v3696_v26 = vld [vmem:[%s4627_s15 + $0x14] sm:$0xf0]  ;;  %2162 = vmatpush.bf16.msrb.mxu1 %v3687_v24  ;;  %v3686_v27 = vld [vmem:[%s4635_s24 + $0x8] sm:$0xff] }
0x280f   :  { %3941 = vpow2.f32 %v3445_v28  ;;  %v3487_v28 = vld [vmem:[%s4627_s15] sm:$0xf] }
0x2812   :  { %v2006_v12 = vpop.f32.mrf.mxu3  ;;  %2163 = vmatpush.bf16.msrb.mxu1 %v3686_v27 }
0x2813   :  { %v3938_v4 = vpop.eup %3937  ;;  %v3690_v12 = vld [vmem:[%s3283_s20 + $0x8] sm:$0xff] }
0x2814   :  { %2044 = vrot.lane.b32.xlu1 %v3938_v4, %s4047_s18  ;;  %v3940_v31 = vpop.eup %3939  ;;  %v4651_v4 = vor.u32 %v3696_v26, %v3495_v10  ;;  %2222 = vmatpush.bf16.msrb.mxu2 %v3690_v12 }
0x2815   :  { %v2063_v23 = vadd.f32 1.0, %v3940_v31  ;;  %v3942_v53 = vpop.eup %3941  ;;  %v3694_v31 = vld [vmem:[%s4627_s15 + $0x4] sm:$0xf0] }
0x2816   :  { %v2025_v57 = vadd.f32 1.0, %v3942_v53  ;;  %v4657_v53 = vor.u32 %v3694_v31, %v3487_v28 }
0x2817   :  { %3943 = vrcp.f32 %v2063_v23  ;;  %v2075_v45 = vand.u32 2147483648, %v2063_v23  ;;  %vm2069_vm2 = vweird.f32 %v2063_v23  ;;  %v2073_v16 = vand.u32 2147483647, %v2063_v23 }
0x2818   :  { %3945 = vrcp.f32 %v2025_v57  ;;  %v2037_v52 = vand.u32 2147483648, %v2025_v57  ;;  %vm2031_vm9 = vweird.f32 %v2025_v57  ;;  %v2035_v60 = vand.u32 2147483647, %v2025_v57 }
0x2819   :  { %v2076_v48 = vor.u32 1.1754944e-38, %v2075_v45  ;;  %vm2074_vm6 = vcmp.eq.f32.partialorder %v2073_v16, 8.507059e+37  ;;  %v3505_v45 = vld [vmem:[%s4627_s15 + $0x28] sm:$0xf0] }
0x281a   :  { %v2038_v1 = vor.u32 1.1754944e-38, %v2037_v52  ;;  %vm2036_vm11 = vcmp.eq.f32.partialorder %v2035_v60, 8.507059e+37 }
0x281d   :  { %v3944_v51 = vpop.eup %3943 }
0x281e   :  { %v2065_v34 = vmul.f32 %v3944_v51, %v2063_v23  ;;  %v3946_v35 = vpop.eup %3945  ;;  %vm2070_vm1 = vweird.f32 %v3944_v51  ;;  %v3689_v23 = vld [vmem:[%s3283_s20] sm:$0xff]  ;;  %s4072_s20 = smov 25  }
0x281f   :  { %v2027_v39 = vmul.f32 %v3946_v35, %v2025_v57  ;;  %vm2071_vm5 = vmor %vm2069_vm2, %vm2070_vm1  ;;  %vm2032_vm8 = vweird.f32 %v3946_v35  ;;  %2223 = vmatpush.bf16.msrb.mxu2 %v3689_v23  ;;  %s3291_s23 = sld [smem:[%s4942_s0 + %s4072_s20]]  }
0x2820   :  { %v2066_v37 = vsub.f32 1.0, %v2065_v34  ;;  %vm2033_vm10 = vmor %vm2031_vm9, %vm2032_vm8 }
0x2821   :  { %v2028_v43 = vsub.f32 1.0, %v2027_v39  ;;  %v3699_v39 = vld [vmem:[%s4627_s15 + $0x34] sm:$0xf] }
0x2822   :  { %v2067_v41 = vmul.f32 %v3944_v51, %v2066_v37  ;;  %v3685_v37 = vld [vmem:[%s4635_s24] sm:$0xff]  ;;  %s4073_s24 = smov 26  }
0x2823   :  { %v2029_v30 = vmul.f32 %v3946_v35, %v2028_v43  ;;  %2164 = vmatpush.bf16.msrb.mxu1 %v3685_v37  ;;  %s3292_s26 = sld [smem:[%s4942_s0 + %s4073_s24]]  }
0x2824   :  { %v2068_v44 = vadd.f32 %v3944_v51, %v2067_v41  ;;  %v3513_v41 = vld [vmem:[%s4627_s15 + $0x38] sm:$0xf0] }
0x2825   :  { %v2030_v17 = vadd.f32 %v3946_v35, %v2029_v30  ;;  %v4680_v43 = vor.u32 %v3699_v39, %v3513_v41  ;;  %v3695_v30 = vld [vmem:[%s4627_s15 + $0x14] sm:$0xf] }
0x2826   :  { %v2072_v46 = vsel %vm2071_vm5, %v3944_v51, %v2068_v44  ;;  %v3697_v44 = vld [vmem:[%s4627_s15 + $0x24] sm:$0xf] }
0x2827   :  { %v4614_v50 = vsel %vm2074_vm6, %v2076_v48, %v2072_v46  ;;  %v2034_v62 = vsel %vm2033_vm10, %v3946_v35, %v2030_v17  ;;  %2344 = vmatpush.bf16.msra.mxu0 %v4680_v43  ;;  %v4685_v16 = vor.u32 %v3697_v44, %v3505_v45  ;;  %2648 = vmatpush.bf16.msra.mxu2 %v4680_v43  ;;  %v3497_v46 = vld [vmem:[%s4627_s15 + $0x18] sm:$0xf0]  ;;  %v3693_v17 = vld [vmem:[%s4627_s15 + $0x4] sm:$0xf] }
0x2828   :  { %v2039_v2 = vsel %vm2036_vm11, %v2038_v1, %v2034_v62  ;;  %v2080_v5 = vmul.f32 %v4614_v50, %v4589_v7  ;;  %v3511_v7 = vld [vmem:[%s4627_s15 + $0x30] sm:$0xf]  ;;  %v4691_v48 = vor.u32 %v3695_v30, %v3497_v46 }
0x2829   :  { %v2042_v54 = vmul.f32 %v2039_v2, %v4594_v42  ;;  %v3700_v42 = vld [vmem:[%s4627_s15 + $0x34] sm:$0xf0] }
0x282a   :  { %v4639_v3 = vor.u32 %v3700_v42, %v3511_v7 }
0x282b   :  { %2345 = vmatpush.bf16.msra.mxu0 %v4685_v16  ;;  %2649 = vmatpush.bf16.msra.mxu2 %v4685_v16 }
0x282c   :  { %2331 = vmatpush.bf16.msrb.mxu3 %v4639_v3  ;;  %2635 = vmatpush.bf16.msra.mxu1 %v4639_v3 }
0x282f   :  { %2346 = vmatpush.bf16.msra.mxu0 %v4691_v48  ;;  %2650 = vmatpush.bf16.msra.mxu2 %v4691_v48 }
0x2830   :  { %2332 = vmatpush.bf16.msrb.mxu3 %v4645_v59  ;;  %2636 = vmatpush.bf16.msra.mxu1 %v4645_v59 }
0x2834   :  { %2333 = vmatpush.bf16.msrb.mxu3 %v4651_v4  ;;  %2637 = vmatpush.bf16.msra.mxu1 %v4651_v4 }
0x2838   :  { %2334 = vmatpush.bf16.msrb.mxu3 %v4657_v53  ;;  %2638 = vmatpush.bf16.msra.mxu1 %v4657_v53 }
0x283b   :  { %2335 = vmatmul.bf16.vlgmr.msrb.gmra.mxu3 %v4043_v0 }
0x283c   :  { %2446 = vmatpush.bf16.msra.mxu3 %v4639_v3 }
0x2840   :  { %2447 = vmatpush.bf16.msra.mxu3 %v4645_v59 }
0x2844   :  { %2448 = vmatpush.bf16.msra.mxu3 %v4651_v4 }
0x2848   :  { %2449 = vmatpush.bf16.msra.mxu3 %v4657_v53 }
0x2880   :  { %v2083_v49 = vpop.permute.xlu0 %2082 }
0x2881   :  { %v2085_v56 = vmul.f32 %v2083_v49, %v4614_v50  ;;  %v3489_v49 = vld [vmem:[%s4627_s15 + $0x8] sm:$0xf0]  ;;  %s4071_s15 = smov 23  }
0x2882   :  { %s3289_s19 = sld [smem:[%s4942_s0 + %s4071_s15]]  }
0x2883   :  { %2087 = vrot.lane.b32.xlu2 %v2085_v56, %s4062_s11  ;;  %v2102_v56 = vsel %vm286_vm4, %v4549_v6, %v4600_v61 }
0x2886   :  { %v2045_v36 = vpop.permute.xlu1 %2044 }
0x2887   :  { %v2047_v11 = vmul.f32 %v2045_v36, %v2039_v2  ;;  %v3775_v36 = vld [vmem:[%s4671_s29] ss:$0 sm:$0xff] }
0x2889   :  { %2049 = vrot.lane.b32.xlu0 %v2047_v11, %s4062_s11 }
0x28dd   :  { %v2088_v29 = vpop.permute.xlu2 %2087 }
0x28de   :  { %v2090_v63 = vadd.f32 %v2088_v29, %v2080_v5  ;;  %v3776_v29 = vld [vmem:[%s4708_s3] ss:$0 sm:$0xff] }
0x28e0   :  { %3947 = vtanh.f32 %v2090_v63 }
0x28e6   :  { %v3948_v13 = vpop.eup %3947 }
0x28e7   :  { %2093 = vrot.lane.b32.xlu1 %v3948_v13, %s4047_s18 }
0x28fb   :  { %v2050_v18 = vpop.permute.xlu0 %2049 }
0x28fc   :  { %v2052_v58 = vadd.f32 %v2050_v18, %v2042_v54 }
0x28fe   :  { %3949 = vtanh.f32 %v2052_v58 }
0x2904   :  { %v3950_v20 = vpop.eup %3949 }
0x2905   :  { %2055 = vrot.lane.b32.xlu2 %v3950_v20, %s4047_s18 }
0x2959   :  { %v2094_v57 = vpop.permute.xlu1 %2093 }
0x295a   :  { %v2096_v51 = vmul.f32 %v2094_v57, %v4614_v50  ;;  %v4697_v50 = vor.u32 %v3693_v17, %v3489_v49 }
0x295c   :  { %2098 = vrot.lane.b32.xlu0 %v2096_v51, %s4047_s18  ;;  %2347 = vmatpush.bf16.msra.mxu0 %v4697_v50 }
0x295d   :  { %2651 = vmatpush.bf16.msra.mxu2 %v4697_v50 }
0x295f   :  { %v2056_v34 = vpop.permute.xlu2 %2055  ;;  %2348 = vmatmul.bf16.vlgmr.msra.gmra.mxu0 %v4043_v0 }
0x2960   :  { %v2058_v35 = vmul.f32 %v2056_v34, %v2039_v2  ;;  %2459 = vmatpush.bf16.msrb.mxu0 %v4680_v43 }
0x2962   :  { %2105 = vrot.lane.b32.xlu1 %v2058_v35, %s4062_s11 }
0x2964   :  { %2460 = vmatpush.bf16.msrb.mxu0 %v4685_v16 }
0x2968   :  { %2461 = vmatpush.bf16.msrb.mxu0 %v4691_v48 }
0x296c   :  { %2462 = vmatpush.bf16.msrb.mxu0 %v4697_v50 }
0x29ce   :  { %v2099_v52 = vpop.permute.xlu0 %2098 }
0x29cf   :  { %v2101_v60 = vsel %vm286_vm4, %v4514_v32, %v2099_v52  ;;  %v2103_v32 = vsel %vm286_vm4, %v4602_v9, %v4547_v40  ;;  %v2336_v40 = vpop.f32.mrf.mxu3 }
0x29d0   :  { %v2117_v62 = vpack.c.bf16 %v2102_v56, %v2101_v60  ;;  %v2118_v0 = vpack.c.bf16 %v2103_v32, %v4575_v15 }
0x29d2   :  { %3463 = vmatmul.msk.bf16.vlgmr.msrb.gmra.mxu1 %vm1532_vm7, %v2117_v62  ;;  %3482 = vmatmul.msk.bf16.vlgmr.msrb.gmra.mxu2 %vm1532_vm7, %v2117_v62 }
0x29d3   :  { %2801 = vmatpush.bf16.msrb.mxu1 %v4680_v43 }
0x29d4   :  { %v2106_v6 = vpop.permute.xlu1 %2105 }
0x29d5   :  { %v2108_v61 = vsel %vm286_vm4, %v2106_v6, %v4512_v38 }
0x29d6   :  { %v2119_v1 = vpack.c.bf16 %v2108_v61, %v2108_v61 }
0x29d7   :  { %2802 = vmatpush.bf16.msrb.mxu1 %v4685_v16  ;;  %v2338_v9 = vpop.f32.mrf.mxu3 }
0x29db   :  { %2803 = vmatpush.bf16.msrb.mxu1 %v4691_v48 }
0x29dc   :  { %v2349_v5 = vpop.f32.mrf.mxu0 }
0x29df   :  { %2804 = vmatpush.bf16.msrb.mxu1 %v4697_v50 }
0x29e2   :  { %3464 = vmatmul.msk.bf16.gmra.mxu1 %vm1532_vm7, %v2118_v0  ;;  %3483 = vmatmul.msk.bf16.gmra.mxu2 %vm1532_vm7, %v2118_v0 }
0x29e4   :  { %v2351_v38 = vpop.f32.mrf.mxu0 }
0x29f2   :  { %3465 = vmatmul.msk.bf16.gmra.mxu1 %vm1532_vm7, %v2119_v1  ;;  %3484 = vmatmul.msk.bf16.gmra.mxu2 %vm1532_vm7, %v2119_v1 }
0x2a4f   :  { %v2166_v2 = vpop.f32.mrf.mxu1 }
0x2a50   :  { %v2167_v11 = vadd.f32 %v3775_v36, %v2166_v2 }
0x2a52   :  { %v2353_v15 = vadd.f32 %v2336_v40, %v2167_v11 }
0x2a54   :  { %3951 = vtanh.f32 %v2353_v15  ;;  %v3517_v34 = vmul.f32 -1.442695, %v2353_v15 }
0x2a55   :  { %v2225_v63 = vpop.f32.mrf.mxu2 }
0x2a56   :  { %v4735_v13 = vadd.f32 %v3776_v29, %v2225_v63 }
0x2a57   :  { %v2168_v54 = vpop.f32.mrf.mxu1 }
0x2a58   :  { %v4737_v18 = vadd.f32 %v3775_v36, %v2168_v54 }
0x2a5a   :  { %v3952_v58 = vpop.eup %3951 }
0x2a5b   :  { %2376 = vrot.lane.b32.xlu2 %v3952_v58, %s4047_s18 }
0x2a5d   :  { %v2227_v20 = vpop.f32.mrf.mxu2 }
0x2a5e   :  { %v4740_v7 = vadd.f32 %v3776_v29, %v2227_v20 }
0x2a5f   :  { %v2171_v42 = vpop.f32.mrf.mxu1 }
0x2a60   :  { %v4742_v8 = vadd.f32 %v3775_v36, %v2171_v42 }
0x2a65   :  { %v2230_v14 = vpop.f32.mrf.mxu2 }
0x2a66   :  { %v4744_v19 = vadd.f32 %v3776_v29, %v2230_v14 }
0x2a67   :  { %v2173_v21 = vpop.f32.mrf.mxu1 }
0x2a68   :  { %v4746_v22 = vadd.f32 %v3775_v36, %v2173_v21 }
0x2a6d   :  { %v2232_v24 = vpop.f32.mrf.mxu2 }
0x2a6e   :  { %v4748_v10 = vadd.f32 %v3776_v29, %v2232_v24 }
0x2a6f   :  { %v2176_v26 = vpop.f32.mrf.mxu1 }
0x2a70   :  { %v4750_v12 = vadd.f32 %v3775_v36, %v2176_v26 }
0x2a75   :  { %v2235_v27 = vpop.f32.mrf.mxu2 }
0x2a76   :  { %v2236_v28 = vadd.f32 %v3776_v29, %v2235_v27 }
0x2a77   :  { %v2178_v31 = vpop.f32.mrf.mxu1 }
0x2a78   :  { %v2391_v23 = vadd.f32 %v2349_v5, %v2236_v28 }
0x2a7a   :  { %3953 = vtanh.f32 %v2391_v23  ;;  %v3518_v32 = vmul.f32 -1.442695, %v2391_v23 }
0x2a7b   :  { %3955 = vpow2.f32 %v3517_v34  ;;  %v3702_v34 = vld [vmem:[%s4768_s8 + $0x8] sm:$0xff] }
0x2a7d   :  { %v2237_v57 = vpop.f32.mrf.mxu2 }
0x2a7e   :  { %v3704_v57 = vld [vmem:[%s4768_s8 + $0x18] sm:$0xff] }
0x2a7f   :  { %2622 = vmatpush.bf16.msra.mxu0 %v3704_v57 }
0x2a80   :  { %v3954_v51 = vpop.eup %3953 }
0x2a81   :  { %2414 = vrot.lane.b32.xlu0 %v3954_v51, %s4047_s18  ;;  %v3956_v35 = vpop.eup %3955  ;;  %v3703_v51 = vld [vmem:[%s4768_s8 + $0x10] sm:$0xff] }
0x2a82   :  { %v2357_v37 = vadd.f32 1.0, %v3956_v35  ;;  %v3701_v35 = vld [vmem:[%s4768_s8] sm:$0xff] }
0x2a83   :  { %2623 = vmatpush.bf16.msra.mxu0 %v3703_v51 }
0x2a84   :  { %3957 = vrcp.f32 %v2357_v37  ;;  %v2369_v46 = vand.u32 2147483648, %v2357_v37  ;;  %vm2363_vm13 = vweird.f32 %v2357_v37  ;;  %v2367_v17 = vand.u32 2147483647, %v2357_v37 }
0x2a85   :  { %3959 = vpow2.f32 %v3518_v32 }
0x2a86   :  { %v2370_v52 = vor.u32 1.1754944e-38, %v2369_v46  ;;  %vm2368_vm15 = vcmp.eq.f32.partialorder %v2367_v17, 8.507059e+37 }
0x2a87   :  { %2624 = vmatpush.bf16.msra.mxu0 %v3702_v34 }
0x2a8a   :  { %v3958_v39 = vpop.eup %3957 }
0x2a8b   :  { %v2359_v41 = vmul.f32 %v3958_v39, %v2357_v37  ;;  %vm2364_vm12 = vweird.f32 %v3958_v39  ;;  %v3960_v0 = vpop.eup %3959  ;;  %2625 = vmatpush.bf16.msra.mxu0 %v3701_v35 }
0x2a8c   :  { %vm2365_vm14 = vmor %vm2363_vm13, %vm2364_vm12  ;;  %v2395_v6 = vadd.f32 1.0, %v3960_v0 }
0x2a8d   :  { %v2360_v44 = vsub.f32 1.0, %v2359_v41 }
0x2a8e   :  { %3961 = vrcp.f32 %v2395_v6  ;;  %v2407_v2 = vand.u32 2147483648, %v2395_v6  ;;  %vm2401_vm3 = vweird.f32 %v2395_v6  ;;  %v2405_v11 = vand.u32 2147483647, %v2395_v6 }
0x2a8f   :  { %v2361_v45 = vmul.f32 %v3958_v39, %v2360_v44 }
0x2a90   :  { %v2408_v15 = vor.u32 1.1754944e-38, %v2407_v2  ;;  %vm2406_vm2 = vcmp.eq.f32.partialorder %v2405_v11, 8.507059e+37 }
0x2a91   :  { %v2362_v30 = vadd.f32 %v3958_v39, %v2361_v45 }
0x2a93   :  { %v2366_v49 = vsel %vm2365_vm14, %v3958_v39, %v2362_v30 }
0x2a94   :  { %v2371_v60 = vsel %vm2368_vm15, %v2370_v52, %v2366_v49  ;;  %v3962_v61 = vpop.eup %3961 }
0x2a95   :  { %v2397_v1 = vmul.f32 %v3962_v61, %v2395_v6  ;;  %vm2402_vm0 = vweird.f32 %v3962_v61  ;;  %v2374_v38 = vmul.f32 0.0, %v2371_v60 }
0x2a96   :  { %vm2403_vm1 = vmor %vm2401_vm3, %vm2402_vm0 }
0x2a97   :  { %v2398_v40 = vsub.f32 1.0, %v2397_v1 }
0x2a99   :  { %v2399_v9 = vmul.f32 %v3962_v61, %v2398_v40 }
0x2a9b   :  { %v2400_v36 = vadd.f32 %v3962_v61, %v2399_v9 }
0x2a9d   :  { %v2404_v5 = vsel %vm2403_vm1, %v3962_v61, %v2400_v36 }
0x2a9e   :  { %v2409_v63 = vsel %vm2406_vm2, %v2408_v15, %v2404_v5 }
0x2a9f   :  { %v2412_v14 = vmul.f32 0.0, %v2409_v63 }
0x2ab5   :  { %v2377_v56 = vpop.permute.xlu2 %2376 }
0x2ab6   :  { %v2379_v62 = vmul.f32 %v2377_v56, %v2371_v60 }
0x2ab8   :  { %2381 = vrot.lane.b32.xlu1 %v2379_v62, %s4062_s11 }
0x2af3   :  { %v2415_v29 = vpop.permute.xlu0 %2414 }
0x2af4   :  { %v2417_v54 = vmul.f32 %v2415_v29, %v2409_v63 }
0x2af6   :  { %2419 = vrot.lane.b32.xlu2 %v2417_v54, %s4062_s11 }
0x2b2a   :  { %v2382_v58 = vpop.permute.xlu1 %2381 }
0x2b2b   :  { %v4755_v20 = vadd.f32 %v2382_v58, %v2374_v38 }
0x2b2d   :  { %3963 = vtanh.f32 %v4755_v20 }
0x2b33   :  { %v3964_v42 = vpop.eup %3963 }
0x2b34   :  { %2387 = vrot.lane.b32.xlu0 %v3964_v42, %s4047_s18 }
0x2b50   :  { %v2420_v21 = vpop.permute.xlu2 %2419 }
0x2b51   :  { %v4759_v24 = vadd.f32 %v2420_v21, %v2412_v14 }
0x2b53   :  { %3965 = vtanh.f32 %v4759_v24 }
0x2b59   :  { %v3966_v26 = vpop.eup %3965 }
0x2b5a   :  { %2425 = vrot.lane.b32.xlu1 %v3966_v26, %s4047_s18 }
0x2ba6   :  { %v2388_v27 = vpop.permute.xlu0 %2387 }
0x2ba7   :  { %v2390_v28 = vmul.f32 %v2388_v27, %v2371_v60 }
0x2ba9   :  { %2430 = vrot.lane.b32.xlu2 %v2390_v28, %s4062_s11 }
0x2bcc   :  { %v2426_v31 = vpop.permute.xlu1 %2425 }
0x2bcd   :  { %v2428_v23 = vmul.f32 %v2426_v31, %v2409_v63 }
0x2bcf   :  { %2434 = vrot.lane.b32.xlu0 %v2428_v23, %s4047_s18 }
0x2c03   :  { %v2431_v37 = vpop.permute.xlu2 %2430 }
0x2c41   :  { %v2435_v39 = vpop.permute.xlu0 %2434 }
0x2c42   :  { %v2437_v41 = vsel %vm286_vm4, %v2431_v37, %v2435_v39 }
0x2c43   :  { %v2438_v44 = vpack.c.bf16 %v2437_v41, %v2437_v41 }
0x2c45   :  { %3519 = vmatmul.msk.bf16.vlgmr.msra.gmra.mxu3 %vm1532_vm7, %v2438_v44  ;;  %3520 = vmatmul.msk.bf16.vlgmr.msrb.gmra.mxu0 %vm1532_vm7, %v2438_v44 }
0x2c46   :  { %2788 = vmatpush.bf16.msrb.mxu0 %v4639_v3 }
0x2c4a   :  { %2789 = vmatpush.bf16.msrb.mxu0 %v4645_v59 }
0x2c4e   :  { %2790 = vmatpush.bf16.msrb.mxu0 %v4651_v4 }
0x2c52   :  { %2791 = vmatpush.bf16.msrb.mxu0 %v4657_v53 }
0x2c55   :  { %3556 = vmatmul.msk.bf16.vlgmr.msra.gmra.mxu0 %vm1532_vm7, %v2438_v44 }
0x2c56   :  { %2954 = vmatpush.bf16.msra.mxu0 %v4680_v43 }
0x2c5a   :  { %2955 = vmatpush.bf16.msra.mxu0 %v4685_v16 }
0x2c5e   :  { %2956 = vmatpush.bf16.msra.mxu0 %v4691_v48 }
0x2c62   :  { %2957 = vmatpush.bf16.msra.mxu0 %v4697_v50 }
0x2cc2   :  { %v2464_v45 = vpop.f32.mrf.mxu0 }
0x2cc3   :  { %v2506_v30 = vadd.f32 %v2464_v45, %v4748_v10 }
0x2cc5   :  { %3967 = vtanh.f32 %v2506_v30  ;;  %v3522_v48 = vmul.f32 -1.442695, %v2506_v30 }
0x2cc8   :  { %v2451_v46 = vpop.f32.mrf.mxu3 }
0x2cc9   :  { %v2468_v17 = vadd.f32 %v2451_v46, %v4737_v18 }
0x2cca   :  { %v2466_v49 = vpop.f32.mrf.mxu0 }
0x2ccb   :  { %v3968_v52 = vpop.eup %3967  ;;  %3969 = vtanh.f32 %v2468_v17  ;;  %v3521_v18 = vmul.f32 -1.442695, %v2468_v17  ;;  %v3708_v17 = vld [vmem:[%s4768_s8 + $0x38] sm:$0xff]  ;;  %v3706_v49 = vld [vmem:[%s4768_s8 + $0x28] sm:$0xff] }
0x2ccc   :  { %2529 = vrot.lane.b32.xlu2 %v3968_v52, %s4047_s18  ;;  %3971 = vpow2.f32 %v3522_v48  ;;  %2585 = vmatpush.bf16.msrb.mxu3 %v3708_v17  ;;  %v3705_v52 = vld [vmem:[%s4768_s8 + $0x20] sm:$0xff] }
0x2cd0   :  { %v2453_v56 = vpop.f32.mrf.mxu3 }
0x2cd1   :  { %v3970_v43 = vpop.eup %3969 }
0x2cd2   :  { %v4789_v60 = vpop.f32.mrf.mxu0  ;;  %2491 = vrot.lane.b32.xlu1 %v3970_v43, %s4047_s18  ;;  %v3972_v50 = vpop.eup %3971 }
0x2cd3   :  { %v2510_v10 = vadd.f32 1.0, %v3972_v50 }
0x2cd5   :  { %3973 = vrcp.f32 %v2510_v10  ;;  %v2522_v1 = vand.u32 2147483648, %v2510_v10  ;;  %vm2516_vm6 = vweird.f32 %v2510_v10  ;;  %v2520_v9 = vand.u32 2147483647, %v2510_v10 }
0x2cd6   :  { %3975 = vpow2.f32 %v3521_v18 }
0x2cd7   :  { %v2523_v11 = vor.u32 1.1754944e-38, %v2522_v1  ;;  %vm2521_vm9 = vcmp.eq.f32.partialorder %v2520_v9, 8.507059e+37 }
0x2cda   :  { %v2629_v16 = vpop.f32.mrf.mxu0 }
0x2cdb   :  { %v3974_v62 = vpop.eup %3973 }
0x2cdc   :  { %v2512_v32 = vmul.f32 %v3974_v62, %v2510_v10  ;;  %vm2517_vm5 = vweird.f32 %v3974_v62  ;;  %v3976_v40 = vpop.eup %3975 }
0x2cdd   :  { %vm2518_vm8 = vmor %vm2516_vm6, %vm2517_vm5  ;;  %v2472_v2 = vadd.f32 1.0, %v3976_v40 }
0x2cde   :  { %v2513_v0 = vsub.f32 1.0, %v2512_v32 }
0x2cdf   :  { %3977 = vrcp.f32 %v2472_v2  ;;  %v2484_v14 = vand.u32 2147483648, %v2472_v2  ;;  %vm2478_vm11 = vweird.f32 %v2472_v2  ;;  %v2482_v21 = vand.u32 2147483647, %v2472_v2 }
0x2ce0   :  { %v2514_v6 = vmul.f32 %v3974_v62, %v2513_v0 }
0x2ce1   :  { %v2485_v27 = vor.u32 1.1754944e-38, %v2484_v14  ;;  %vm2483_vm13 = vcmp.eq.f32.partialorder %v2482_v21, 8.507059e+37 }
0x2ce2   :  { %v2515_v61 = vadd.f32 %v3974_v62, %v2514_v6 }
0x2ce4   :  { %v2519_v36 = vsel %vm2518_vm8, %v3974_v62, %v2515_v61 }
0x2ce5   :  { %v2524_v15 = vsel %vm2521_vm9, %v2523_v11, %v2519_v36  ;;  %v3978_v63 = vpop.eup %3977 }
0x2ce6   :  { %v2474_v54 = vmul.f32 %v3978_v63, %v2472_v2  ;;  %vm2479_vm10 = vweird.f32 %v3978_v63  ;;  %v2527_v57 = vmul.f32 %v2524_v15, %v4759_v24 }
0x2ce7   :  { %vm2480_vm12 = vmor %vm2478_vm11, %vm2479_vm10 }
0x2ce8   :  { %v2475_v38 = vsub.f32 1.0, %v2474_v54 }
0x2cea   :  { %v2476_v58 = vmul.f32 %v3978_v63, %v2475_v38 }
0x2cec   :  { %v2477_v42 = vadd.f32 %v3978_v63, %v2476_v58 }
0x2cee   :  { %v2481_v26 = vsel %vm2480_vm12, %v3978_v63, %v2477_v42 }
0x2cef   :  { %v2486_v31 = vsel %vm2483_vm13, %v2485_v27, %v2481_v26 }
0x2cf0   :  { %v2489_v37 = vmul.f32 %v2486_v31, %v4755_v20  ;;  %v3707_v20 = vld [vmem:[%s4768_s8 + $0x30] sm:$0xff] }
0x2cf1   :  { %2586 = vmatpush.bf16.msrb.mxu3 %v3707_v20 }
0x2cf5   :  { %2587 = vmatpush.bf16.msrb.mxu3 %v3706_v49 }
0x2cf9   :  { %2588 = vmatpush.bf16.msrb.mxu3 %v3705_v52 }
0x2d26   :  { %v2530_v5 = vpop.permute.xlu2 %2529 }
0x2d27   :  { %v2532_v29 = vmul.f32 %v2530_v5, %v2524_v15 }
0x2d29   :  { %2534 = vrot.lane.b32.xlu1 %v2532_v29, %s4062_s11 }
0x2d44   :  { %v2492_v28 = vpop.permute.xlu1 %2491 }
0x2d45   :  { %v2494_v23 = vmul.f32 %v2492_v28, %v2486_v31 }
0x2d47   :  { %2496 = vrot.lane.b32.xlu0 %v2494_v23, %s4062_s11 }
0x2d9b   :  { %v2535_v51 = vpop.permute.xlu1 %2534 }
0x2d9c   :  { %v4795_v34 = vadd.f32 %v2535_v51, %v2527_v57 }
0x2d9e   :  { %3979 = vtanh.f32 %v4795_v34 }
0x2da4   :  { %v3980_v35 = vpop.eup %3979 }
0x2da5   :  { %2540 = vrot.lane.b32.xlu0 %v3980_v35, %s4047_s18 }
0x2db9   :  { %v2497_v39 = vpop.permute.xlu0 %2496 }
0x2dba   :  { %v4800_v41 = vadd.f32 %v2497_v39, %v2489_v37 }
0x2dbc   :  { %3981 = vtanh.f32 %v4800_v41 }
0x2dc2   :  { %v3982_v24 = vpop.eup %3981 }
0x2dc3   :  { %2502 = vrot.lane.b32.xlu2 %v3982_v24, %s4047_s18 }
0x2e17   :  { %v2541_v44 = vpop.permute.xlu0 %2540 }
0x2e18   :  { %v2543_v45 = vmul.f32 %v2541_v44, %v2524_v15 }
0x2e1a   :  { %2549 = vrot.lane.b32.xlu2 %v2543_v45, %s4047_s18 }
0x2e1d   :  { %v2503_v30 = vpop.permute.xlu2 %2502 }
0x2e1e   :  { %v2505_v46 = vmul.f32 %v2503_v30, %v2486_v31 }
0x2e20   :  { %2545 = vrot.lane.b32.xlu1 %v2505_v46, %s4062_s11 }
0x2e74   :  { %v2550_v56 = vpop.permute.xlu2 %2549 }
0x2e92   :  { %v2546_v43 = vpop.permute.xlu1 %2545 }
0x2e93   :  { %v2552_v16 = vsel %vm286_vm4, %v2546_v43, %v2550_v56 }
0x2e94   :  { %v2553_v48 = vpack.c.bf16 %v2552_v16, %v2552_v16 }
0x2e96   :  { %3539 = vmatmul.msk.bf16.vlgmr.msrb.gmra.mxu3 %vm1532_vm7, %v2553_v48  ;;  %3557 = vmatmul.msk.bf16.vlgmr.msra.gmra.mxu1 %vm1532_vm7, %v2553_v48 }
0x2e97   :  { %3558 = vmatmul.msk.bf16.vlgmr.msra.gmra.mxu2 %vm1532_vm7, %v2553_v48  ;;  %v3711_v48 = vld [vmem:[%s4768_s8 + $0x50] sm:$0xff] }
0x2f13   :  { %v2640_v50 = vpop.f32.mrf.mxu1 }
0x2f14   :  { %v2657_v10 = vadd.f32 %v2640_v50, %v4742_v8 }
0x2f16   :  { %3983 = vtanh.f32 %v2657_v10  ;;  %v3559_v9 = vmul.f32 -1.442695, %v2657_v10 }
0x2f19   :  { %v4815_v62 = vpop.f32.mrf.mxu3 }
0x2f1a   :  { %v2653_v32 = vpop.f32.mrf.mxu2 }
0x2f1b   :  { %v2695_v18 = vadd.f32 %v2653_v32, %v4744_v19  ;;  %v2642_v0 = vpop.f32.mrf.mxu1 }
0x2f1c   :  { %v3984_v6 = vpop.eup %3983  ;;  %v3709_v0 = vld [vmem:[%s4768_s8 + $0x40] sm:$0xff] }
0x2f1d   :  { %3985 = vtanh.f32 %v2695_v18  ;;  %2680 = vrot.lane.b32.xlu0 %v3984_v6, %s4047_s18  ;;  %v3560_v36 = vmul.f32 -1.442695, %v2695_v18  ;;  %v3710_v18 = vld [vmem:[%s4768_s8 + $0x48] sm:$0xff] }
0x2f1e   :  { %3987 = vpow2.f32 %v3559_v9 }
0x2f1f   :  { %3989 = vpow2.f32 %v3560_v36 }
0x2f21   :  { %v2592_v61 = vpop.f32.mrf.mxu3 }
0x2f22   :  { %v2655_v1 = vpop.f32.mrf.mxu2 }
0x2f23   :  { %v3986_v40 = vpop.eup %3985 }
0x2f24   :  { %2718 = vrot.lane.b32.xlu1 %v3986_v40, %s4047_s18  ;;  %v3988_v8 = vpop.eup %3987 }
0x2f25   :  { %v2661_v2 = vadd.f32 1.0, %v3988_v8  ;;  %v3990_v11 = vpop.eup %3989 }
0x2f26   :  { %v2699_v5 = vadd.f32 1.0, %v3990_v11 }
0x2f27   :  { %3991 = vrcp.f32 %v2661_v2  ;;  %v2673_v14 = vand.u32 2147483648, %v2661_v2  ;;  %vm2667_vm15 = vweird.f32 %v2661_v2  ;;  %v2671_v21 = vand.u32 2147483647, %v2661_v2 }
0x2f28   :  { %3993 = vrcp.f32 %v2699_v5  ;;  %v2711_v35 = vand.u32 2147483648, %v2699_v5  ;;  %vm2705_vm2 = vweird.f32 %v2699_v5  ;;  %v2709_v37 = vand.u32 2147483647, %v2699_v5 }
0x2f29   :  { %v2674_v28 = vor.u32 1.1754944e-38, %v2673_v14  ;;  %vm2672_vm3 = vcmp.eq.f32.partialorder %v2671_v21, 8.507059e+37 }
0x2f2a   :  { %v2712_v24 = vor.u32 1.1754944e-38, %v2711_v35  ;;  %vm2710_vm6 = vcmp.eq.f32.partialorder %v2709_v37, 8.507059e+37 }
0x2f2d   :  { %v3992_v19 = vpop.eup %3991 }
0x2f2e   :  { %v2663_v15 = vmul.f32 %v3992_v19, %v2661_v2  ;;  %v3994_v29 = vpop.eup %3993  ;;  %vm2668_vm14 = vweird.f32 %v3992_v19 }
0x2f2f   :  { %v2701_v54 = vmul.f32 %v3994_v29, %v2699_v5  ;;  %vm2669_vm0 = vmor %vm2667_vm15, %vm2668_vm14  ;;  %vm2706_vm1 = vweird.f32 %v3994_v29 }
0x2f30   :  { %v2664_v63 = vsub.f32 1.0, %v2663_v15  ;;  %vm2707_vm5 = vmor %vm2705_vm2, %vm2706_vm1 }
0x2f31   :  { %v2702_v58 = vsub.f32 1.0, %v2701_v54 }
0x2f32   :  { %v2665_v38 = vmul.f32 %v3992_v19, %v2664_v63 }
0x2f33   :  { %v2703_v26 = vmul.f32 %v3994_v29, %v2702_v58 }
0x2f34   :  { %v2666_v42 = vadd.f32 %v3992_v19, %v2665_v38 }
0x2f35   :  { %v2704_v57 = vadd.f32 %v3994_v29, %v2703_v26 }
0x2f36   :  { %v2670_v27 = vsel %vm2669_vm0, %v3992_v19, %v2666_v42 }
0x2f37   :  { %v2675_v23 = vsel %vm2672_vm3, %v2674_v28, %v2670_v27  ;;  %v2708_v39 = vsel %vm2707_vm5, %v3994_v29, %v2704_v57 }
0x2f38   :  { %v2713_v45 = vsel %vm2710_vm6, %v2712_v24, %v2708_v39  ;;  %v2678_v46 = vmul.f32 %v2675_v23, %v4800_v41  ;;  %v3712_v41 = vld [vmem:[%s4768_s8 + $0x58] sm:$0xff] }
0x2f39   :  { %v2716_v52 = vmul.f32 %v2713_v45, %v4795_v34  ;;  %2774 = vmatpush.bf16.msra.mxu3 %v3712_v41 }
0x2f3d   :  { %2775 = vmatpush.bf16.msra.mxu3 %v3711_v48 }
0x2f41   :  { %2776 = vmatpush.bf16.msra.mxu3 %v3710_v18 }
0x2f45   :  { %2777 = vmatpush.bf16.msra.mxu3 %v3709_v0 }
0x2f49   :  { %2941 = vmatpush.bf16.msrb.mxu3 %v4639_v3 }
0x2f4d   :  { %2942 = vmatpush.bf16.msrb.mxu3 %v4645_v59 }
0x2f51   :  { %2943 = vmatpush.bf16.msrb.mxu3 %v4651_v4  ;;  %v2628_v4 = vadd.f32 %v4789_v60, %v4815_v62 }
0x2f55   :  { %2944 = vmatpush.bf16.msrb.mxu3 %v4657_v53 }
0x2f8f   :  { %v2681_v31 = vpop.permute.xlu0 %2680 }
0x2f90   :  { %v2683_v51 = vmul.f32 %v2681_v31, %v2675_v23 }
0x2f92   :  { %2685 = vrot.lane.b32.xlu2 %v2683_v51, %s4062_s11 }
0x2f96   :  { %v2719_v44 = vpop.permute.xlu1 %2718 }
0x2f97   :  { %v2721_v30 = vmul.f32 %v2719_v44, %v2713_v45 }
0x2f99   :  { %2723 = vrot.lane.b32.xlu0 %v2721_v30, %s4062_s11 }
0x2fec   :  { %v2686_v17 = vpop.permute.xlu2 %2685 }
0x2fed   :  { %v4823_v20 = vadd.f32 %v2686_v17, %v2678_v46 }
0x2fef   :  { %3995 = vtanh.f32 %v4823_v20 }
0x2ff5   :  { %v3996_v49 = vpop.eup %3995 }
0x2ff6   :  { %2691 = vrot.lane.b32.xlu1 %v3996_v49, %s4047_s18 }
0x300b   :  { %v2724_v56 = vpop.permute.xlu0 %2723 }
0x300c   :  { %v4828_v43 = vadd.f32 %v2724_v56, %v2716_v52 }
0x300e   :  { %3997 = vtanh.f32 %v4828_v43 }
0x3014   :  { %v3998_v16 = vpop.eup %3997 }
0x3015   :  { %2729 = vrot.lane.b32.xlu2 %v3998_v16, %s4047_s18 }
0x3068   :  { %v2692_v50 = vpop.permute.xlu1 %2691 }
0x3069   :  { %v2694_v10 = vmul.f32 %v2692_v50, %v2675_v23 }
0x306b   :  { %2734 = vrot.lane.b32.xlu0 %v2694_v10, %s4062_s11 }
0x306f   :  { %v2730_v32 = vpop.permute.xlu2 %2729 }
0x3070   :  { %v2732_v34 = vmul.f32 %v2730_v32, %v2713_v45 }
0x3072   :  { %2738 = vrot.lane.b32.xlu1 %v2732_v34, %s4047_s18 }
0x30dd   :  { %v2735_v6 = vpop.permute.xlu0 %2734 }
0x30e4   :  { %v2739_v61 = vpop.permute.xlu1 %2738 }
0x30e5   :  { %v2741_v1 = vsel %vm286_vm4, %v2735_v6, %v2739_v61  ;;  %v3716_v6 = vld [vmem:[%s4768_s8 + $0x78] sm:$0xff]  ;;  %v3715_v61 = vld [vmem:[%s4768_s8 + $0x70] sm:$0xff] }
0x30e6   :  { %v2742_v40 = vpack.c.bf16 %v2741_v1, %v2741_v1  ;;  %2927 = vmatpush.bf16.msrb.mxu2 %v3716_v6  ;;  %v3714_v1 = vld [vmem:[%s4768_s8 + $0x68] sm:$0xff] }
0x30e8   :  { %3577 = vmatmul.msk.bf16.vlgmr.msra.gmra.mxu3 %vm1532_vm7, %v2742_v40  ;;  %3578 = vmatmul.msk.bf16.vlgmr.msrb.gmra.mxu0 %vm1532_vm7, %v2742_v40 }
0x30e9   :  { %3579 = vmatmul.msk.bf16.vlgmr.msrb.gmra.mxu1 %vm1532_vm7, %v2742_v40  ;;  %v3713_v40 = vld [vmem:[%s4768_s8 + $0x60] sm:$0xff] }
0x30ea   :  { %2928 = vmatpush.bf16.msrb.mxu2 %v3715_v61 }
0x30ee   :  { %2929 = vmatpush.bf16.msrb.mxu2 %v3714_v1 }
0x30f2   :  { %2930 = vmatpush.bf16.msrb.mxu2 %v3713_v40 }
0x3165   :  { %v2793_v9 = vpop.f32.mrf.mxu0 }
0x3166   :  { %v2810_v3 = vadd.f32 %v2793_v9, %v4746_v22  ;;  %v2806_v36 = vpop.f32.mrf.mxu1 }
0x3167   :  { %v2848_v59 = vadd.f32 %v2806_v36, %v4740_v7 }
0x3168   :  { %3999 = vtanh.f32 %v2810_v3  ;;  %v3580_v15 = vmul.f32 -1.442695, %v2810_v3 }
0x3169   :  { %4001 = vtanh.f32 %v2848_v59  ;;  %v3581_v54 = vmul.f32 -1.442695, %v2848_v59 }
0x316a   :  { %4003 = vpow2.f32 %v3580_v15 }
0x316b   :  { %v2779_v53 = vpop.f32.mrf.mxu3 }
0x316c   :  { %v4850_v8 = vadd.f32 %v2779_v53, %v2628_v4 }
0x316d   :  { %v2795_v2 = vpop.f32.mrf.mxu0 }
0x316e   :  { %v4000_v11 = vpop.eup %3999  ;;  %v2808_v5 = vpop.f32.mrf.mxu1 }
0x316f   :  { %v4002_v19 = vpop.eup %4001  ;;  %2833 = vrot.lane.b32.xlu2 %v4000_v11, %s4047_s18 }
0x3170   :  { %2871 = vrot.lane.b32.xlu0 %v4002_v19, %s4047_s18  ;;  %v4004_v7 = vpop.eup %4003 }
0x3171   :  { %v2814_v29 = vadd.f32 1.0, %v4004_v7 }
0x3173   :  { %v2781_v22 = vpop.f32.mrf.mxu3  ;;  %4005 = vrcp.f32 %v2814_v29  ;;  %v2826_v21 = vand.u32 2147483648, %v2814_v29  ;;  %vm2820_vm9 = vweird.f32 %v2814_v29  ;;  %v2824_v26 = vand.u32 2147483647, %v2814_v29 }
0x3174   :  { %4007 = vpow2.f32 %v3581_v54 }
0x3175   :  { %v2827_v28 = vor.u32 1.1754944e-38, %v2826_v21  ;;  %vm2825_vm11 = vcmp.eq.f32.partialorder %v2824_v26, 8.507059e+37 }
0x3179   :  { %v4006_v63 = vpop.eup %4005 }
0x317a   :  { %v2816_v60 = vmul.f32 %v4006_v63, %v2814_v29  ;;  %v4008_v58 = vpop.eup %4007  ;;  %vm2821_vm8 = vweird.f32 %v4006_v63 }
0x317b   :  { %v2852_v42 = vadd.f32 1.0, %v4008_v58  ;;  %vm2822_vm10 = vmor %vm2820_vm9, %vm2821_vm8 }
0x317c   :  { %v2817_v62 = vsub.f32 1.0, %v2816_v60 }
0x317d   :  { %4009 = vrcp.f32 %v2852_v42  ;;  %v2864_v44 = vand.u32 2147483648, %v2852_v42  ;;  %vm2858_vm13 = vweird.f32 %v2852_v42  ;;  %v2862_v45 = vand.u32 2147483647, %v2852_v42 }
0x317e   :  { %v2818_v38 = vmul.f32 %v4006_v63, %v2817_v62 }
0x317f   :  { %v2865_v46 = vor.u32 1.1754944e-38, %v2864_v44  ;;  %vm2863_vm15 = vcmp.eq.f32.partialorder %v2862_v45, 8.507059e+37 }
0x3180   :  { %v2819_v14 = vadd.f32 %v4006_v63, %v2818_v38 }
0x3182   :  { %v2823_v27 = vsel %vm2822_vm10, %v4006_v63, %v2819_v14 }
0x3183   :  { %v2828_v23 = vsel %vm2825_vm11, %v2827_v28, %v2823_v27  ;;  %v4010_v51 = vpop.eup %4009 }
0x3184   :  { %v2854_v35 = vmul.f32 %v4010_v51, %v2852_v42  ;;  %vm2859_vm12 = vweird.f32 %v4010_v51  ;;  %v2831_v56 = vmul.f32 %v2828_v23, %v4823_v20 }
0x3185   :  { %vm2860_vm14 = vmor %vm2858_vm13, %vm2859_vm12 }
0x3186   :  { %v2855_v37 = vsub.f32 1.0, %v2854_v35 }
0x3188   :  { %v2856_v39 = vmul.f32 %v4010_v51, %v2855_v37 }
0x318a   :  { %v2857_v24 = vadd.f32 %v4010_v51, %v2856_v39 }
0x318c   :  { %v2861_v30 = vsel %vm2860_vm14, %v4010_v51, %v2857_v24 }
0x318d   :  { %v2866_v49 = vsel %vm2863_vm15, %v2865_v46, %v2861_v30 }
0x318e   :  { %v2869_v41 = vmul.f32 %v2866_v49, %v4828_v43 }
0x31c9   :  { %v2834_v31 = vpop.permute.xlu2 %2833 }
0x31ca   :  { %v2836_v57 = vmul.f32 %v2834_v31, %v2828_v23 }
0x31cc   :  { %2838 = vrot.lane.b32.xlu1 %v2836_v57, %s4062_s11 }
0x31e2   :  { %v2872_v17 = vpop.permute.xlu0 %2871 }
0x31e3   :  { %v2874_v52 = vmul.f32 %v2872_v17, %v2866_v49 }
0x31e5   :  { %2876 = vrot.lane.b32.xlu2 %v2874_v52, %s4062_s11 }
0x323e   :  { %v2839_v16 = vpop.permute.xlu1 %2838 }
0x323f   :  { %v4858_v48 = vadd.f32 %v2839_v16, %v2831_v56  ;;  %v2877_v50 = vpop.permute.xlu2 %2876 }
0x3240   :  { %v4860_v10 = vadd.f32 %v2877_v50, %v2869_v41 }
0x3241   :  { %4011 = vtanh.f32 %v4858_v48 }
0x3242   :  { %4013 = vtanh.f32 %v4860_v10 }
0x3247   :  { %v4012_v32 = vpop.eup %4011 }
0x3248   :  { %v4014_v34 = vpop.eup %4013  ;;  %2844 = vrot.lane.b32.xlu0 %v4012_v32, %s4047_s18 }
0x3249   :  { %2882 = vrot.lane.b32.xlu1 %v4014_v34, %s4047_s18  ;;  %v1373_v34 = vadd.f32 %v4494_v55, %v4278_v25 }
0x32ba   :  { %v2845_v20 = vpop.permute.xlu0 %2844 }
0x32bb   :  { %v2847_v43 = vmul.f32 %v2845_v20, %v2828_v23  ;;  %v2883_v18 = vpop.permute.xlu1 %2882 }
0x32bc   :  { %v2885_v0 = vmul.f32 %v2883_v18, %v2866_v49 }
0x32bd   :  { %2887 = vrot.lane.b32.xlu2 %v2847_v43, %s4062_s11 }
0x32be   :  { %2891 = vrot.lane.b32.xlu0 %v2885_v0, %s4047_s18 }
0x3317   :  { %v2888_v9 = vpop.permute.xlu2 %2887 }
0x3330   :  { %v2892_v3 = vpop.permute.xlu0 %2891 }
0x3331   :  { %v2894_v36 = vsel %vm286_vm4, %v2888_v9, %v2892_v3 }
0x3332   :  { %v2895_v59 = vpack.c.bf16 %v2894_v36, %v2894_v36 }
0x3334   :  { %3598 = vmatmul.msk.bf16.vlgmr.msrb.gmra.mxu2 %vm1532_vm7, %v2895_v59  ;;  %3599 = vmatmul.msk.bf16.vlgmr.msrb.gmra.mxu3 %vm1532_vm7, %v2895_v59 }
0x3335   :  { %3600 = vmatmul.msk.bf16.vlgmr.msra.gmra.mxu0 %vm1532_vm7, %v2895_v59 }
0x33b2   :  { %v2959_v4 = vpop.f32.mrf.mxu0 }
0x33b3   :  { %v3001_v53 = vadd.f32 %v2959_v4, %v4735_v13 }
0x33b5   :  { %4015 = vtanh.f32 %v3001_v53  ;;  %v3602_v54 = vmul.f32 -1.442695, %v3001_v53 }
0x33b7   :  { %v2932_v2 = vpop.f32.mrf.mxu2  ;;  %v2946_v11 = vpop.f32.mrf.mxu3 }
0x33b8   :  { %v4878_v5 = vadd.f32 %v2932_v2, %v4850_v8  ;;  %v2963_v19 = vadd.f32 %v2946_v11, %v4750_v12 }
0x33ba   :  { %4017 = vtanh.f32 %v2963_v19  ;;  %v2961_v22 = vpop.f32.mrf.mxu0  ;;  %v3601_v38 = vmul.f32 -1.442695, %v2963_v19 }
0x33bb   :  { %v4016_v15 = vpop.eup %4015  ;;  %4019 = vpow2.f32 %v3602_v54  ;;  %v3719_v54 = vld [vmem:[%s4768_s8 + $0x90] sm:$0xff] }
0x33bc   :  { %3024 = vrot.lane.b32.xlu2 %v4016_v15, %s4047_s18 }
0x33bf   :  { %v2934_v7 = vpop.f32.mrf.mxu2  ;;  %v2948_v29 = vpop.f32.mrf.mxu3 }
0x33c0   :  { %v4018_v63 = vpop.eup %4017 }
0x33c1   :  { %2986 = vrot.lane.b32.xlu1 %v4018_v63, %s4047_s18  ;;  %v4020_v13 = vpop.eup %4019  ;;  %v3720_v63 = vld [vmem:[%s4768_s8 + $0x98] sm:$0xff] }
0x33c2   :  { %v3005_v60 = vadd.f32 1.0, %v4020_v13  ;;  %3080 = vmatpush.bf16.msra.mxu1 %v3720_v63  ;;  %v3718_v13 = vld [vmem:[%s4768_s8 + $0x88] sm:$0xff] }
0x33c4   :  { %4021 = vrcp.f32 %v3005_v60  ;;  %v3017_v21 = vand.u32 2147483648, %v3005_v60  ;;  %vm3011_vm3 = vweird.f32 %v3005_v60  ;;  %v3015_v26 = vand.u32 2147483647, %v3005_v60 }
0x33c5   :  { %4023 = vpow2.f32 %v3601_v38 }
0x33c6   :  { %v3018_v31 = vor.u32 1.1754944e-38, %v3017_v21  ;;  %vm3016_vm2 = vcmp.eq.f32.partialorder %v3015_v26, 8.507059e+37  ;;  %3081 = vmatpush.bf16.msra.mxu1 %v3719_v54 }
0x33ca   :  { %v4022_v62 = vpop.eup %4021  ;;  %3082 = vmatpush.bf16.msra.mxu1 %v3718_v13 }
0x33cb   :  { %v3007_v8 = vmul.f32 %v4022_v62, %v3005_v60  ;;  %vm3012_vm0 = vweird.f32 %v4022_v62  ;;  %v4024_v14 = vpop.eup %4023  ;;  %v3717_v60 = vld [vmem:[%s4768_s8 + $0x80] sm:$0xff] }
0x33cc   :  { %vm3013_vm1 = vmor %vm3011_vm3, %vm3012_vm0  ;;  %v2967_v27 = vadd.f32 1.0, %v4024_v14 }
0x33cd   :  { %v3008_v58 = vsub.f32 1.0, %v3007_v8 }
0x33ce   :  { %4025 = vrcp.f32 %v2967_v27  ;;  %v2979_v45 = vand.u32 2147483648, %v2967_v27  ;;  %vm2973_vm6 = vweird.f32 %v2967_v27  ;;  %v2977_v30 = vand.u32 2147483647, %v2967_v27  ;;  %3083 = vmatpush.bf16.msra.mxu1 %v3717_v60 }
0x33cf   :  { %v3009_v12 = vmul.f32 %v4022_v62, %v3008_v58 }
0x33d0   :  { %v2980_v17 = vor.u32 1.1754944e-38, %v2979_v45  ;;  %vm2978_vm9 = vcmp.eq.f32.partialorder %v2977_v30, 8.507059e+37 }
0x33d1   :  { %v3010_v42 = vadd.f32 %v4022_v62, %v3009_v12 }
0x33d3   :  { %v3014_v28 = vsel %vm3013_vm1, %v4022_v62, %v3010_v42 }
0x33d4   :  { %v3019_v57 = vsel %vm3016_vm2, %v3018_v31, %v3014_v28  ;;  %v4026_v35 = vpop.eup %4025  ;;  %v3721_v31 = vld [vmem:[%s3289_s19] sm:$0xff] }
0x33d5   :  { %v2969_v37 = vmul.f32 %v4026_v35, %v2967_v27  ;;  %vm2974_vm5 = vweird.f32 %v4026_v35  ;;  %v3022_v16 = vmul.f32 %v3019_v57, %v4860_v10  ;;  %v4042_v10 = vld [vmem:[%s4241_s5] ss:$0 sm:$0xff]  ;;  %s4069_s5 = smov 22   ;;  %v3722_v27 = vld [vmem:[%s3289_s19 + $0x8] sm:$0xff] }
0x33d6   :  { %vm2975_vm8 = vmor %vm2973_vm6, %vm2974_vm5  ;;  %v901_v6 = vadd.f32 %v4042_v10, %v4467_v47  ;;  %3157 = vmatpush.bf16.msra.mxu3 %v3722_v27  ;;  %v3729_v10 = vld [vmem:[%s3294_s6] sm:$0xff] }
0x33d7   :  { %v2970_v39 = vsub.f32 1.0, %v2969_v37 }
0x33d8   :  { %v1353_v61 = vadd.f32 %v4494_v55, %v901_v6 }
0x33d9   :  { %v2971_v24 = vmul.f32 %v4026_v35, %v2970_v39 }
0x33da   :  { %v3382_v1 = vmul.f32 -1.442695, %v1353_v61  ;;  %3158 = vmatpush.bf16.msra.mxu3 %v3721_v31  ;;  %v3779_v61 = vld [vmem:[%s3293_s1] ss:$0 sm:$0xff] }
0x33db   :  { %v2972_v44 = vadd.f32 %v4026_v35, %v2971_v24 }
0x33dd   :  { %v2976_v46 = vsel %vm2975_vm8, %v4026_v35, %v2972_v44 }
0x33de   :  { %v2981_v52 = vsel %vm2978_vm9, %v2980_v17, %v2976_v46  ;;  %v3728_v17 = vld [vmem:[%s3292_s26 + $0x18] sm:$0xff] }
0x33df   :  { %v2984_v20 = vmul.f32 %v2981_v52, %v4858_v48  ;;  %3214 = vmatpush.bf16.msrb.mxu0 %v3728_v17 }
0x3416   :  { %v3025_v23 = vpop.permute.xlu2 %3024 }
0x3417   :  { %v3027_v51 = vmul.f32 %v3025_v23, %v3019_v57 }
0x3419   :  { %3029 = vrot.lane.b32.xlu1 %v3027_v51, %s4062_s11 }
0x3433   :  { %v2987_v49 = vpop.permute.xlu1 %2986 }
0x3434   :  { %v2989_v56 = vmul.f32 %v2987_v49, %v2981_v52 }
0x3436   :  { %2991 = vrot.lane.b32.xlu0 %v2989_v56, %s4062_s11  ;;  %v3726_v56 = vld [vmem:[%s3292_s26 + $0x8] sm:$0xff] }
0x348b   :  { %v3030_v41 = vpop.permute.xlu1 %3029 }
0x348c   :  { %v3032_v50 = vadd.f32 %v3030_v41, %v3022_v16  ;;  %v3725_v16 = vld [vmem:[%s3292_s26] sm:$0xff]  ;;  %v3730_v41 = vld [vmem:[%s3294_s6 + $0x8] sm:$0xff] }
0x348d   :  { %3254 = vmatpush.bf16.msrb.mxu1 %v3730_v41 }
0x348e   :  { %4027 = vtanh.f32 %v3032_v50  ;;  %v3778_v50 = vld [vmem:[%s3291_s23] ss:$0 sm:$0xff] }
0x3491   :  { %3255 = vmatpush.bf16.msrb.mxu1 %v3729_v10 }
0x3494   :  { %v4028_v32 = vpop.eup %4027 }
0x3495   :  { %3035 = vrot.lane.b32.xlu0 %v4028_v32, %s4047_s18 }
0x349d   :  { %1375 = vrot.lane.b32.xlu0 %v1373_v34, %s4047_s18 }
0x34a8   :  { %v2992_v43 = vpop.permute.xlu0 %2991 }
0x34a9   :  { %v2994_v18 = vadd.f32 %v2992_v43, %v2984_v20 }
0x34ab   :  { %4029 = vtanh.f32 %v2994_v18 }
0x34ac   :  { %4031 = vpow2.f32 %v3382_v1 }
0x34b1   :  { %v4030_v0 = vpop.eup %4029 }
0x34b2   :  { %2997 = vrot.lane.b32.xlu2 %v4030_v0, %s4047_s18  ;;  %v4032_v40 = vpop.eup %4031 }
0x34b3   :  { %v1357_v9 = vadd.f32 1.0, %v4032_v40 }
0x34b5   :  { %4033 = vrcp.f32 %v1357_v9  ;;  %v1369_v47 = vand.u32 2147483648, %v1357_v9  ;;  %vm1363_vm11 = vweird.f32 %v1357_v9  ;;  %v1367_v55 = vand.u32 2147483647, %v1357_v9 }
0x34b7   :  { %v1370_v22 = vor.u32 1.1754944e-38, %v1369_v47  ;;  %vm1368_vm13 = vcmp.eq.f32.partialorder %v1367_v55, 8.507059e+37 }
0x34bb   :  { %v4034_v25 = vpop.eup %4033 }
0x34bc   :  { %v1359_v3 = vmul.f32 %v4034_v25, %v1357_v9  ;;  %vm1364_vm10 = vweird.f32 %v4034_v25 }
0x34bd   :  { %vm1365_vm12 = vmor %vm1363_vm11, %vm1364_vm10 }
0x34be   :  { %v1360_v36 = vsub.f32 1.0, %v1359_v3 }
0x34c0   :  { %v1361_v4 = vmul.f32 %v4034_v25, %v1360_v36 }
0x34c2   :  { %v1362_v11 = vadd.f32 %v4034_v25, %v1361_v4 }
0x34c4   :  { %v1366_v19 = vsel %vm1365_vm12, %v4034_v25, %v1362_v11 }
0x34c5   :  { %v1371_v7 = vsel %vm1368_vm13, %v1370_v22, %v1366_v19 }
0x34c6   :  { %v1385_v28 = vsub.f32 1.0, %v1371_v7 }
0x3507   :  { %v3036_v48 = vpop.permute.xlu0 %3035 }
0x3508   :  { %v3038_v59 = vmul.f32 %v3036_v48, %v3019_v57  ;;  %v1391_v57 = vmul.f32 %v1371_v7, %v4421_v33 }
0x350a   :  { %3044 = vrot.lane.b32.xlu2 %v3038_v59, %s4047_s18 }
0x350c   :  { %v2998_v53 = vpop.permute.xlu2 %2997 }
0x350d   :  { %v3000_v2 = vmul.f32 %v2998_v53, %v2981_v52  ;;  %v3727_v52 = vld [vmem:[%s3292_s26 + $0x10] sm:$0xff] }
0x350e   :  { %3215 = vmatpush.bf16.msrb.mxu0 %v3727_v52 }
0x350f   :  { %3040 = vrot.lane.b32.xlu1 %v3000_v2, %s4062_s11  ;;  %v1376_v15 = vpop.permute.xlu0 %1375  ;;  %s4905_s11 = sld [smem:[%s4942_s0 + %s4069_s5]]  }
0x3510   :  { %v1378_v29 = vmul.f32 %v1376_v15, %v1371_v7 }
0x3512   :  { %3216 = vmatpush.bf16.msrb.mxu0 %v3726_v56 }
0x3515   :  { %v3777_v39 = vld [vmem:[%s4905_s11] ss:$0 sm:$0xff] }
0x3516   :  { %3217 = vmatpush.bf16.msrb.mxu0 %v3725_v16 }
0x3517   :  { %1380 = vrot.lane.b32.xlu1 %v1378_v29, %s4047_s18  ;;  %s4070_s18 = smov 24  }
0x3518   :  { %s3290_s14 = sld [smem:[%s4942_s0 + %s4070_s18]]  }
0x351e   :  { %v3724_v21 = vld [vmem:[%s3290_s14 + $0x8] sm:$0xff]  ;;  %v3723_v26 = vld [vmem:[%s3290_s14] sm:$0xff] }
0x351f   :  { %3126 = vmatpush.bf16.msra.mxu2 %v3724_v21 }
0x3523   :  { %3127 = vmatpush.bf16.msra.mxu2 %v3723_v26 }
0x3564   :  { %v3045_v62 = vpop.permute.xlu2 %3044 }
0x3581   :  { %v3041_v8 = vpop.permute.xlu1 %3040 }
0x3582   :  { %v3047_v38 = vsel %vm286_vm4, %v3041_v8, %v3045_v62 }
0x3583   :  { %v3048_v58 = vpack.c.bf16 %v3047_v38, %v3047_v38 }
0x3585   :  { %3619 = vmatmul.msk.bf16.vlgmr.msra.gmra.mxu1 %vm1532_vm7, %v3048_v58 }
0x3589   :  { %v1381_v12 = vpop.permute.xlu1 %1380 }
0x358a   :  { %v1383_v42 = vadd.f32 %v1381_v12, %v901_v6  ;;  %v66_v6 = vstv %s3295_s9 }
0x358b   :  { %67 = vst [vmem:[#allocation2] sm:$0x1] %v66_v6 }
0x358c   :  { %4035 = vtanh.f32 %v1383_v42 }
0x3592   :  { %v4036_v14 = vpop.eup %4035  ;;  %v3780_v36 = vld [vmem:[#allocation2] ss:$0 sm:$0xff] }
0x3593   :  { %1387 = vrot.lane.b32.xlu2 %v4036_v14, %s4051_s27 }
0x35ed   :  { %v1388_v23 = vpop.permute.xlu2 %1387 }
0x35ee   :  { %v1390_v51 = vmul.f32 %v1388_v23, %v1385_v28 }
0x35f0   :  { %v1392_v35 = vadd.f32 %v1391_v57, %v1390_v51 }
0x35f2   :  { %v3099_v37 = vpack.c.bf16 %v1392_v35, %v1392_v35 }
0x35f4   :  { %3134 = vrot.lane.b32.xlu0 %v3099_v37, %s4051_s27 }
0x3602   :  { %v3085_v24 = vpop.f32.mrf.mxu1 }
0x3603   :  { %v3089_v44 = vadd.f32 %v3085_v24, %v4878_v5 }
0x3605   :  { %v3094_v45 = vadd.f32 %v3777_v39, %v3089_v44 }
0x3607   :  { %v3104_v30 = vpack.c.bf16 %v3094_v45, %v3094_v45 }
0x3609   :  { %3628 = vmatmul.msk.bf16.vlgmr.msra.gmra.mxu2 %vm286_vm4, %v3104_v30 }
0x360a   :  { %v3087_v46 = vpop.f32.mrf.mxu1 }
0x3666   :  { %v3135_v33 = vpop.permute.xlu0 %3134 }
0x3667   :  { %3637 = vmatmul.msk.bf16.vlgmr.msra.gmra.mxu3 %vm286_vm4, %v3135_v33 }
0x368c   :  { %v3129_v5 = vpop.f32.mrf.mxu2 }
0x3694   :  { %v3131_v49 = vpop.f32.mrf.mxu2 }
0x36ea   :  { %v3160_v32 = vpop.f32.mrf.mxu3 }
0x36eb   :  { %v3161_v34 = vadd.f32 %v3160_v32, %v3129_v5 }
0x36ed   :  { %v3168_v20 = vadd.f32 %v3778_v50, %v3161_v34 }
0x36ef   :  { %4037 = vtanh.f32 %v3168_v20 }
0x36f2   :  { %v3162_v43 = vpop.f32.mrf.mxu3 }
0x36f5   :  { %v4038_v18 = vpop.eup %4037 }
0x36f6   :  { %v3178_v0 = vpack.c.bf16 %v4038_v18, %v4038_v18 }
0x36f8   :  { %3654 = vmatmul.msk.bf16.vlgmr.msrb.gmra.mxu0 %vm1532_vm7, %v3178_v0  ;;  %vm3261_vm7 = vcmask 7168  }
0x3775   :  { %v3219_v1 = vpop.f32.mrf.mxu0 }
0x3776   :  { %v3220_v40 = vadd.f32 %v3779_v61, %v3219_v1 }
0x3778   :  { %4039 = vtanh.f32 %v3220_v40 }
0x377d   :  { %v3221_v9 = vpop.f32.mrf.mxu0 }
0x377e   :  { %v4040_v25 = vpop.eup %4039 }
0x377f   :  { %v3228_v3 = vpack.c.bf16 %v4040_v25, %v4040_v25 }
0x3781   :  { %3663 = vmatmul.msk.bf16.vlgmr.msrb.gmra.mxu1 %vm286_vm4, %v3228_v3 }
0x37fe   :  { %v3257_v48 = vpop.f32.mrf.mxu1 }
0x37ff   :  { %v3258_v59 = vadd.f32 %v3780_v36, %v3257_v48 }
0x3801   :  { %3262 = vst.msk [vmem:[%s3296_s12] sm:$0xff] %vm3261_vm7, %v3258_v59 }
0x3806   :  { %v3259_v4 = vpop.f32.mrf.mxu1 }

</bundles_post_ra>
